<compile_context>
chip_gen: v6e
topology: v6e:2x2x1
jax: 0.10.0
libtpu: 0.0.40
codegen_flags: <defaults>
</compile_context>

<pallas_src>
import math

import jax
import jax.numpy as jnp
from jax.experimental import pallas as pl
from jax.experimental.pallas import tpu as pltpu

D_MODEL = 32
NUM_HEADS = 4
HEAD_DIM = D_MODEL // NUM_HEADS
FF_DIM = 64
LN_EPS = 1e-5  # PyTorch nn.LayerNorm default


def _layer_norm(z, gamma, beta):
    mu = jnp.mean(z, axis=-1, keepdims=True)
    var = jnp.mean((z - mu) ** 2, axis=-1, keepdims=True)
    return (z - mu) * jax.lax.rsqrt(var + LN_EPS) * gamma + beta


def _choose_batch_block(B, T, target_rows=256):
    """Pick how many sequences to process per grid step.

    Prefers (a) ~target_rows matmul rows per step, (b) at least 2 grid steps
    when possible so v7x's second TensorCore gets work, (c) bblk | B.
    """
    divs = [d for d in range(1, B + 1) if B % d == 0]
    pool = [d for d in divs if B // d >= 2] or divs
    want = max(1, target_rows // T)
    le = [d for d in pool if d <= want]
    return max(le) if le else min(pool)


def _make_kernel(compute_dtype):
    cd = compute_dtype

    def kernel(x_ref, wq_ref, wk_ref, wv_ref, bq_ref, bk_ref, bv_ref,
               wout_ref, bout_ref, w1_ref, b1_ref, w2_ref, b2_ref,
               g1_ref, be1_ref, g2_ref, be2_ref,
               y_ref, attnw_ref):
        x = x_ref[...]                                  # (bblk, T, D)
        bblk, T, D = x.shape
        rows = bblk * T
        x2d = x.reshape(rows, D)                        # flatten to row-major matmul LHS
        x2d_c = x2d.astype(cd)
        scale = 1.0 / math.sqrt(HEAD_DIM)

        ctx_heads = []
        attnw_heads = []
        # TODO(synk): mask=None path only; attention masking is not wired into the kernel.
        for h in range(NUM_HEADS):                      # static unroll (H=4)
            # Per-head projection weights were pre-split in the wrapper, so no
            # narrow lane slicing of activations happens here.
            q = jnp.dot(x2d_c, wq_ref[h].astype(cd),
                        preferred_element_type=jnp.float32) + bq_ref[h]
            k = jnp.dot(x2d_c, wk_ref[h].astype(cd),
                        preferred_element_type=jnp.float32) + bk_ref[h]
            v = jnp.dot(x2d_c, wv_ref[h].astype(cd),
                        preferred_element_type=jnp.float32) + bv_ref[h]
            q3 = q.reshape(bblk, T, HEAD_DIM)
            k3 = k.reshape(bblk, T, HEAD_DIM)
            v3 = v.reshape(bblk, T, HEAD_DIM)

            s = jnp.einsum("bqc,bkc->bqk", q3.astype(cd), k3.astype(cd),
                           preferred_element_type=jnp.float32) * scale
            s = s - jnp.max(s, axis=-1, keepdims=True)
            e = jnp.exp(s)
            # EUP reciprocal instead of a VPU divide.
            w = e * pl.reciprocal(jnp.sum(e, axis=-1, keepdims=True), approx=True)
            attnw_heads.append(w)                       # (bblk, T, T)

            ctx = jnp.einsum("bqk,bkc->bqc", w.astype(cd), v3.astype(cd),
                             preferred_element_type=jnp.float32)
            ctx_heads.append(ctx.reshape(rows, HEAD_DIM))

        # One store of the full attention-weight slab (lane width H*T) instead
        # of H separate masked (T, T) stores.
        attnw_ref[...] = jnp.concatenate(attnw_heads, axis=-1)   # (bblk, T, H*T)

        # Concatenate heads -> single (rows, D) @ (D, D) output projection.
        ctx_all = jnp.concatenate(ctx_heads, axis=-1)            # (rows, D)
        attn_out = jnp.dot(ctx_all.astype(cd), wout_ref[...].astype(cd),
                           preferred_element_type=jnp.float32) + bout_ref[...]

        # Residual + LayerNorm 1 (rows kept a multiple of 8).
        x1 = _layer_norm(x2d + attn_out, g1_ref[...], be1_ref[...])

        # FeedForward: Linear -> ReLU -> Linear on wide (rows, *) tiles.
        h1 = jnp.dot(x1.astype(cd), w1_ref[...].astype(cd),
                     preferred_element_type=jnp.float32) + b1_ref[...]
        h1 = jnp.maximum(h1, 0.0)
        ff = jnp.dot(h1.astype(cd), w2_ref[...].astype(cd),
                     preferred_element_type=jnp.float32) + b2_ref[...]

        # Residual + LayerNorm 2.
        y = _layer_norm(x1 + ff, g2_ref[...], be2_ref[...])
        y_ref[...] = y.reshape(bblk, T, D)

    return kernel


def encoder_block(x, params, *, compute_dtype=jnp.float32):
    """EncoderBlock forward.  Returns (y (B,T,D), attn_weights (B,H,T,T)).

    Pass compute_dtype=jnp.bfloat16 on v6e/v7x for bf16 MXU operands with f32
    accumulation; the default f32 matches the PyTorch reference numerics.
    """
    B, T, D = x.shape
    H, hd = NUM_HEADS, HEAD_DIM
    assert D == D_MODEL

    bblk = _choose_batch_block(B, T)
    grid = (B // bblk,)

    wqkv, bqkv = params["wqkv"], params["bqkv"]
    # Pre-split the fused QKV projection per head at trace time (free) so the
    # kernel indexes weights on a leading axis instead of lane-slicing.
    wq = wqkv[:, 0 * D:1 * D].reshape(D, H, hd).transpose(1, 0, 2)   # (H, D, hd)
    wk = wqkv[:, 1 * D:2 * D].reshape(D, H, hd).transpose(1, 0, 2)
    wv = wqkv[:, 2 * D:3 * D].reshape(D, H, hd).transpose(1, 0, 2)
    bq = bqkv[0, 0 * D:1 * D].reshape(H, 1, hd)
    bk = bqkv[0, 1 * D:2 * D].reshape(H, 1, hd)
    bv = bqkv[0, 2 * D:3 * D].reshape(H, 1, hd)

    operands = [x, wq, wk, wv, bq, bk, bv,
                params["wout"], params["bout"],
                params["w1"], params["b1"], params["w2"], params["b2"],
                params["g1"], params["be1"], params["g2"], params["be2"]]

    def const_spec(a):
        nd = a.ndim
        return pl.BlockSpec(a.shape, lambda b, _n=nd: (0,) * _n)

    in_specs = [pl.BlockSpec((bblk, T, D), lambda b: (b, 0, 0))]
    in_specs += [const_spec(a) for a in operands[1:]]

    out_specs = [
        pl.BlockSpec((bblk, T, D), lambda b: (b, 0, 0)),          # encoder output
        pl.BlockSpec((bblk, T, H * T), lambda b: (b, 0, 0)),      # attn weights slab
    ]
    out_shape = [
        jax.ShapeDtypeStruct((B, T, D), jnp.float32),
        jax.ShapeDtypeStruct((B, T, H * T), jnp.float32),
    ]

    y, attnw_tht = pl.pallas_call(
        _make_kernel(compute_dtype),
        out_shape=out_shape,
        grid_spec=pltpu.PrefetchScalarGridSpec(
            num_scalar_prefetch=0,
            grid=grid,
            in_specs=in_specs,
            out_specs=out_specs,
        ),
        compiler_params=pltpu.CompilerParams(
            dimension_semantics=("parallel",),
            # Explicit budget: tiny working set, well inside v7x's 64 MiB VMEM.
            vmem_limit_bytes=32 * 1024 * 1024,
        ),
    )(*operands)

    # Repack (B, T, H*T) -> (B, H, T, T) outside the kernel (free XLA reshape).
    attn_weights = attnw_tht.reshape(B, T, H, T).transpose(0, 2, 1, 3)
    return y, attn_weights


def ref_encoder_block(x, p):
    """Pure-JAX reference matching the PyTorch forward."""
    B, T, D = x.shape
    qkv = x @ p["wqkv"] + p["bqkv"][0]
    qkv = qkv.reshape(B, T, 3, NUM_HEADS, HEAD_DIM).transpose(2, 0, 3, 1, 4)
    q, k, v = qkv[0], qkv[1], qkv[2]
    scores = jnp.einsum("bhqd,bhkd->bhqk", q, k) / math.sqrt(HEAD_DIM)
    w = jax.nn.softmax(scores, axis=-1)
    out = jnp.einsum("bhqk,bhkd->bhqd", w, v)
    out = out.transpose(0, 2, 1, 3).reshape(B, T, D)
    attn_out = out @ p["wout"] + p["bout"][0]
    x1 = _layer_norm(x + attn_out, p["g1"][0], p["be1"][0])
    ff = jnp.maximum(x1 @ p["w1"] + p["b1"][0], 0.0) @ p["w2"] + p["b2"][0]
    x2 = _layer_norm(x1 + ff, p["g2"][0], p["be2"][0])
    return x2, w


def make_params(key):
    ks = jax.random.split(key, 8)
    s = 0.1
    return {
        "wqkv": s * jax.random.normal(ks[0], (D_MODEL, 3 * D_MODEL), jnp.float32),
        "bqkv": s * jax.random.normal(ks[1], (1, 3 * D_MODEL), jnp.float32),
        "wout": s * jax.random.normal(ks[2], (D_MODEL, D_MODEL), jnp.float32),
        "bout": s * jax.random.normal(ks[3], (1, D_MODEL), jnp.float32),
        "w1": s * jax.random.normal(ks[4], (D_MODEL, FF_DIM), jnp.float32),
        "b1": s * jax.random.normal(ks[5], (1, FF_DIM), jnp.float32),
        "w2": s * jax.random.normal(ks[6], (FF_DIM, D_MODEL), jnp.float32),
        "b2": s * jax.random.normal(ks[7], (1, D_MODEL), jnp.float32),
        # PyTorch LayerNorm defaults: weight=1, bias=0
        "g1": jnp.ones((1, D_MODEL), jnp.float32),
        "be1": jnp.zeros((1, D_MODEL), jnp.float32),
        "g2": jnp.ones((1, D_MODEL), jnp.float32),
        "be2": jnp.zeros((1, D_MODEL), jnp.float32),
    }


if __name__ == "__main__":
    key = jax.random.PRNGKey(0)
    kx, kp = jax.random.split(key)
    params = make_params(kp)

    # Main batched case (bblk=8, grid=(2,), 64-row matmuls) + tiny-batch fallback.
    for B, T in ((16, 8), (2, 8)):
        x = jax.random.normal(jax.random.fold_in(kx, B), (B, T, D_MODEL), jnp.float32)
        y, attn_w = encoder_block(x, params)
        jax.block_until_ready((y, attn_w))

        y_ref, w_ref = ref_encoder_block(x, params)
        assert y.shape == (B, T, D_MODEL)
        assert attn_w.shape == (B, NUM_HEADS, T, T)
        # Tolerance accounts for the approximate EUP reciprocal in the softmax.
        assert jnp.allclose(y, y_ref, atol=2e-3, rtol=2e-3), \
            float(jnp.max(jnp.abs(y - y_ref)))
        assert jnp.allclose(attn_w, w_ref, atol=2e-3, rtol=2e-3), \
            float(jnp.max(jnp.abs(attn_w - w_ref)))

    print("KERNEL_OK")
</pallas_src>

<mosaic_0001>
module attributes {stable_mosaic.version = 11 : i64} {
  func.func @kernel(%arg0: i32, %arg1: memref<8x8x32xf32, #tpu.memory_space<vmem>>, %arg2: memref<4x32x8xf32, #tpu.memory_space<vmem>>, %arg3: memref<4x32x8xf32, #tpu.memory_space<vmem>>, %arg4: memref<4x32x8xf32, #tpu.memory_space<vmem>>, %arg5: memref<4x1x8xf32, #tpu.memory_space<vmem>>, %arg6: memref<4x1x8xf32, #tpu.memory_space<vmem>>, %arg7: memref<4x1x8xf32, #tpu.memory_space<vmem>>, %arg8: memref<32x32xf32, #tpu.memory_space<vmem>>, %arg9: memref<1x32xf32, #tpu.memory_space<vmem>>, %arg10: memref<32x64xf32, #tpu.memory_space<vmem>>, %arg11: memref<1x64xf32, #tpu.memory_space<vmem>>, %arg12: memref<64x32xf32, #tpu.memory_space<vmem>>, %arg13: memref<1x32xf32, #tpu.memory_space<vmem>>, %arg14: memref<1x32xf32, #tpu.memory_space<vmem>>, %arg15: memref<1x32xf32, #tpu.memory_space<vmem>>, %arg16: memref<1x32xf32, #tpu.memory_space<vmem>>, %arg17: memref<1x32xf32, #tpu.memory_space<vmem>>, %arg18: memref<8x8x32xf32, #tpu.memory_space<vmem>>, %arg19: memref<8x8x32xf32, #tpu.memory_space<vmem>>) attributes {dimension_semantics = [#tpu.dimension_semantics<parallel>], iteration_bounds = array<i64: 2>, scalar_prefetch = 0 : i64, scratch_operands = 0 : i64, tpu.core_type = #tpu.core_type<tc>, window_params = [{transform_indices = @transform_0, window_bounds = array<i64: 8, 8, 32>}, {pipeline_mode = #tpu.pipeline_mode<synchronous>, transform_indices = @transform_1, window_bounds = array<i64: 4, 32, 8>}, {pipeline_mode = #tpu.pipeline_mode<synchronous>, transform_indices = @transform_2, window_bounds = array<i64: 4, 32, 8>}, {pipeline_mode = #tpu.pipeline_mode<synchronous>, transform_indices = @transform_3, window_bounds = array<i64: 4, 32, 8>}, {pipeline_mode = #tpu.pipeline_mode<synchronous>, transform_indices = @transform_4, window_bounds = array<i64: 4, 1, 8>}, {pipeline_mode = #tpu.pipeline_mode<synchronous>, transform_indices = @transform_5, window_bounds = array<i64: 4, 1, 8>}, {pipeline_mode = #tpu.pipeline_mode<synchronous>, transform_indices = @transform_6, window_bounds = array<i64: 4, 1, 8>}, {pipeline_mode = #tpu.pipeline_mode<synchronous>, transform_indices = @transform_7, window_bounds = array<i64: 32, 32>}, {pipeline_mode = #tpu.pipeline_mode<synchronous>, transform_indices = @transform_8, window_bounds = array<i64: 1, 32>}, {pipeline_mode = #tpu.pipeline_mode<synchronous>, transform_indices = @transform_9, window_bounds = array<i64: 32, 64>}, {pipeline_mode = #tpu.pipeline_mode<synchronous>, transform_indices = @transform_10, window_bounds = array<i64: 1, 64>}, {pipeline_mode = #tpu.pipeline_mode<synchronous>, transform_indices = @transform_11, window_bounds = array<i64: 64, 32>}, {pipeline_mode = #tpu.pipeline_mode<synchronous>, transform_indices = @transform_12, window_bounds = array<i64: 1, 32>}, {pipeline_mode = #tpu.pipeline_mode<synchronous>, transform_indices = @transform_13, window_bounds = array<i64: 1, 32>}, {pipeline_mode = #tpu.pipeline_mode<synchronous>, transform_indices = @transform_14, window_bounds = array<i64: 1, 32>}, {pipeline_mode = #tpu.pipeline_mode<synchronous>, transform_indices = @transform_15, window_bounds = array<i64: 1, 32>}, {pipeline_mode = #tpu.pipeline_mode<synchronous>, transform_indices = @transform_16, window_bounds = array<i64: 1, 32>}, {transform_indices = @transform_17, window_bounds = array<i64: 8, 8, 32>}, {transform_indices = @transform_18, window_bounds = array<i64: 8, 8, 32>}]} {
    %c0 = arith.constant 0 : index
    %c0_0 = arith.constant 0 : index
    %c0_1 = arith.constant 0 : index
    %0 = vector.load %arg1[%c0, %c0_0, %c0_1] : memref<8x8x32xf32, #tpu.memory_space<vmem>>, vector<8x8x32xf32>
    %1 = vector.shape_cast %0 : vector<8x8x32xf32> to vector<64x32xf32>
    %c0_2 = arith.constant 0 : index
    %c0_3 = arith.constant 0 : index
    %c0_4 = arith.constant 0 : index
    %2 = vector.load %arg2[%c0_2, %c0_3, %c0_4] : memref<4x32x8xf32, #tpu.memory_space<vmem>>, vector<1x32x8xf32>
    %3 = vector.shape_cast %2 : vector<1x32x8xf32> to vector<32x8xf32>
    %cst = arith.constant dense<0.000000e+00> : vector<64x8xf32>
    %4 = tpu.matmul %1, %3, %cst {dimension_numbers = #tpu.dot_dimension_numbers<[1], [0], [0], [1], [0, 0, 1, 1], [], []>} : vector<64x32xf32>, vector<32x8xf32>, vector<64x8xf32> -> vector<64x8xf32>
    %c0_5 = arith.constant 0 : index
    %c0_6 = arith.constant 0 : index
    %c0_7 = arith.constant 0 : index
    %5 = vector.load %arg5[%c0_5, %c0_6, %c0_7] : memref<4x1x8xf32, #tpu.memory_space<vmem>>, vector<1x1x8xf32>
    %6 = vector.shape_cast %5 : vector<1x1x8xf32> to vector<1x8xf32>
    %7 = vector.broadcast %6 : vector<1x8xf32> to vector<64x8xf32>
    %8 = arith.addf %4, %7 : vector<64x8xf32>
    %c0_8 = arith.constant 0 : index
    %c0_9 = arith.constant 0 : index
    %c0_10 = arith.constant 0 : index
    %9 = vector.load %arg3[%c0_8, %c0_9, %c0_10] : memref<4x32x8xf32, #tpu.memory_space<vmem>>, vector<1x32x8xf32>
    %10 = vector.shape_cast %9 : vector<1x32x8xf32> to vector<32x8xf32>
    %cst_11 = arith.constant dense<0.000000e+00> : vector<64x8xf32>
    %11 = tpu.matmul %1, %10, %cst_11 {dimension_numbers = #tpu.dot_dimension_numbers<[1], [0], [0], [1], [0, 0, 1, 1], [], []>} : vector<64x32xf32>, vector<32x8xf32>, vector<64x8xf32> -> vector<64x8xf32>
    %c0_12 = arith.constant 0 : index
    %c0_13 = arith.constant 0 : index
    %c0_14 = arith.constant 0 : index
    %12 = vector.load %arg6[%c0_12, %c0_13, %c0_14] : memref<4x1x8xf32, #tpu.memory_space<vmem>>, vector<1x1x8xf32>
    %13 = vector.shape_cast %12 : vector<1x1x8xf32> to vector<1x8xf32>
    %14 = vector.broadcast %13 : vector<1x8xf32> to vector<64x8xf32>
    %15 = arith.addf %11, %14 : vector<64x8xf32>
    %c0_15 = arith.constant 0 : index
    %c0_16 = arith.constant 0 : index
    %c0_17 = arith.constant 0 : index
    %16 = vector.load %arg4[%c0_15, %c0_16, %c0_17] : memref<4x32x8xf32, #tpu.memory_space<vmem>>, vector<1x32x8xf32>
    %17 = vector.shape_cast %16 : vector<1x32x8xf32> to vector<32x8xf32>
    %cst_18 = arith.constant dense<0.000000e+00> : vector<64x8xf32>
    %18 = tpu.matmul %1, %17, %cst_18 {dimension_numbers = #tpu.dot_dimension_numbers<[1], [0], [0], [1], [0, 0, 1, 1], [], []>} : vector<64x32xf32>, vector<32x8xf32>, vector<64x8xf32> -> vector<64x8xf32>
    %c0_19 = arith.constant 0 : index
    %c0_20 = arith.constant 0 : index
    %c0_21 = arith.constant 0 : index
    %19 = vector.load %arg7[%c0_19, %c0_20, %c0_21] : memref<4x1x8xf32, #tpu.memory_space<vmem>>, vector<1x1x8xf32>
    %20 = vector.shape_cast %19 : vector<1x1x8xf32> to vector<1x8xf32>
    %21 = vector.broadcast %20 : vector<1x8xf32> to vector<64x8xf32>
    %22 = arith.addf %18, %21 : vector<64x8xf32>
    %23 = vector.shape_cast %8 : vector<64x8xf32> to vector<8x8x8xf32>
    %24 = vector.shape_cast %15 : vector<64x8xf32> to vector<8x8x8xf32>
    %25 = vector.shape_cast %22 : vector<64x8xf32> to vector<8x8x8xf32>
    "tpu.trace_start"() <{level = 10 : i32, message = "bqc,bkc->bqk"}> : () -> ()
    %cst_22 = arith.constant dense<0.000000e+00> : vector<8x8x8xf32>
    %26 = tpu.matmul %23, %24, %cst_22 {dimension_numbers = #tpu.dot_dimension_numbers<[2], [2], [1], [1], [0, 0, 0, 1, 1, 1], [0], [0]>} : vector<8x8x8xf32>, vector<8x8x8xf32>, vector<8x8x8xf32> -> vector<8x8x8xf32>
    "tpu.trace_stop"() : () -> ()
    %cst_23 = arith.constant 0.353553385 : f32
    %27 = vector.broadcast %cst_23 : f32 to vector<8x8x8xf32>
    %28 = arith.mulf %26, %27 : vector<8x8x8xf32>
    %cst_24 = arith.constant dense<0xFF800000> : vector<8x8xf32>
    %29 = vector.multi_reduction <maximumf>, %28, %cst_24 [2] : vector<8x8x8xf32> to vector<8x8xf32>
    %30 = vector.shape_cast %29 : vector<8x8xf32> to vector<8x8x1xf32>
    %31 = vector.broadcast %30 : vector<8x8x1xf32> to vector<8x8x8xf32>
    %32 = arith.subf %28, %31 : vector<8x8x8xf32>
    %33 = math.exp %32 : vector<8x8x8xf32>
    %cst_25 = arith.constant dense<0.000000e+00> : vector<8x8xf32>
    %34 = vector.multi_reduction <add>, %33, %cst_25 [2] : vector<8x8x8xf32> to vector<8x8xf32>
    %35 = vector.shape_cast %34 : vector<8x8xf32> to vector<8x8x1xf32>
    %36 = tpu.reciprocal %35 {approx = true} : vector<8x8x1xf32> -> vector<8x8x1xf32>
    %37 = vector.broadcast %36 : vector<8x8x1xf32> to vector<8x8x8xf32>
    %38 = arith.mulf %33, %37 : vector<8x8x8xf32>
    "tpu.trace_start"() <{level = 10 : i32, message = "bqk,bkc->bqc"}> : () -> ()
    %cst_26 = arith.constant dense<0.000000e+00> : vector<8x8x8xf32>
    %39 = tpu.matmul %38, %25, %cst_26 {dimension_numbers = #tpu.dot_dimension_numbers<[2], [1], [1], [2], [0, 0, 0, 1, 1, 2], [0], [0]>} : vector<8x8x8xf32>, vector<8x8x8xf32>, vector<8x8x8xf32> -> vector<8x8x8xf32>
    "tpu.trace_stop"() : () -> ()
    %40 = vector.shape_cast %39 : vector<8x8x8xf32> to vector<64x8xf32>
    %c1 = arith.constant 1 : index
    %c0_27 = arith.constant 0 : index
    %c0_28 = arith.constant 0 : index
    %41 = vector.load %arg2[%c1, %c0_27, %c0_28] : memref<4x32x8xf32, #tpu.memory_space<vmem>>, vector<1x32x8xf32>
    %42 = vector.shape_cast %41 : vector<1x32x8xf32> to vector<32x8xf32>
    %cst_29 = arith.constant dense<0.000000e+00> : vector<64x8xf32>
    %43 = tpu.matmul %1, %42, %cst_29 {dimension_numbers = #tpu.dot_dimension_numbers<[1], [0], [0], [1], [0, 0, 1, 1], [], []>} : vector<64x32xf32>, vector<32x8xf32>, vector<64x8xf32> -> vector<64x8xf32>
    %c1_30 = arith.constant 1 : index
    %c0_31 = arith.constant 0 : index
    %c0_32 = arith.constant 0 : index
    %44 = vector.load %arg5[%c1_30, %c0_31, %c0_32] : memref<4x1x8xf32, #tpu.memory_space<vmem>>, vector<1x1x8xf32>
    %45 = vector.shape_cast %44 : vector<1x1x8xf32> to vector<1x8xf32>
    %46 = vector.broadcast %45 : vector<1x8xf32> to vector<64x8xf32>
    %47 = arith.addf %43, %46 : vector<64x8xf32>
    %c1_33 = arith.constant 1 : index
    %c0_34 = arith.constant 0 : index
    %c0_35 = arith.constant 0 : index
    %48 = vector.load %arg3[%c1_33, %c0_34, %c0_35] : memref<4x32x8xf32, #tpu.memory_space<vmem>>, vector<1x32x8xf32>
    %49 = vector.shape_cast %48 : vector<1x32x8xf32> to vector<32x8xf32>
    %cst_36 = arith.constant dense<0.000000e+00> : vector<64x8xf32>
    %50 = tpu.matmul %1, %49, %cst_36 {dimension_numbers = #tpu.dot_dimension_numbers<[1], [0], [0], [1], [0, 0, 1, 1], [], []>} : vector<64x32xf32>, vector<32x8xf32>, vector<64x8xf32> -> vector<64x8xf32>
    %c1_37 = arith.constant 1 : index
    %c0_38 = arith.constant 0 : index
    %c0_39 = arith.constant 0 : index
    %51 = vector.load %arg6[%c1_37, %c0_38, %c0_39] : memref<4x1x8xf32, #tpu.memory_space<vmem>>, vector<1x1x8xf32>
    %52 = vector.shape_cast %51 : vector<1x1x8xf32> to vector<1x8xf32>
    %53 = vector.broadcast %52 : vector<1x8xf32> to vector<64x8xf32>
    %54 = arith.addf %50, %53 : vector<64x8xf32>
    %c1_40 = arith.constant 1 : index
    %c0_41 = arith.constant 0 : index
    %c0_42 = arith.constant 0 : index
    %55 = vector.load %arg4[%c1_40, %c0_41, %c0_42] : memref<4x32x8xf32, #tpu.memory_space<vmem>>, vector<1x32x8xf32>
    %56 = vector.shape_cast %55 : vector<1x32x8xf32> to vector<32x8xf32>
    %cst_43 = arith.constant dense<0.000000e+00> : vector<64x8xf32>
    %57 = tpu.matmul %1, %56, %cst_43 {dimension_numbers = #tpu.dot_dimension_numbers<[1], [0], [0], [1], [0, 0, 1, 1], [], []>} : vector<64x32xf32>, vector<32x8xf32>, vector<64x8xf32> -> vector<64x8xf32>
    %c1_44 = arith.constant 1 : index
    %c0_45 = arith.constant 0 : index
    %c0_46 = arith.constant 0 : index
    %58 = vector.load %arg7[%c1_44, %c0_45, %c0_46] : memref<4x1x8xf32, #tpu.memory_space<vmem>>, vector<1x1x8xf32>
    %59 = vector.shape_cast %58 : vector<1x1x8xf32> to vector<1x8xf32>
    %60 = vector.broadcast %59 : vector<1x8xf32> to vector<64x8xf32>
    %61 = arith.addf %57, %60 : vector<64x8xf32>
    %62 = vector.shape_cast %47 : vector<64x8xf32> to vector<8x8x8xf32>
    %63 = vector.shape_cast %54 : vector<64x8xf32> to vector<8x8x8xf32>
    %64 = vector.shape_cast %61 : vector<64x8xf32> to vector<8x8x8xf32>
    "tpu.trace_start"() <{level = 10 : i32, message = "bqc,bkc->bqk"}> : () -> ()
    %cst_47 = arith.constant dense<0.000000e+00> : vector<8x8x8xf32>
    %65 = tpu.matmul %62, %63, %cst_47 {dimension_numbers = #tpu.dot_dimension_numbers<[2], [2], [1], [1], [0, 0, 0, 1, 1, 1], [0], [0]>} : vector<8x8x8xf32>, vector<8x8x8xf32>, vector<8x8x8xf32> -> vector<8x8x8xf32>
    "tpu.trace_stop"() : () -> ()
    %cst_48 = arith.constant 0.353553385 : f32
    %66 = vector.broadcast %cst_48 : f32 to vector<8x8x8xf32>
    %67 = arith.mulf %65, %66 : vector<8x8x8xf32>
    %cst_49 = arith.constant dense<0xFF800000> : vector<8x8xf32>
    %68 = vector.multi_reduction <maximumf>, %67, %cst_49 [2] : vector<8x8x8xf32> to vector<8x8xf32>
    %69 = vector.shape_cast %68 : vector<8x8xf32> to vector<8x8x1xf32>
    %70 = vector.broadcast %69 : vector<8x8x1xf32> to vector<8x8x8xf32>
    %71 = arith.subf %67, %70 : vector<8x8x8xf32>
    %72 = math.exp %71 : vector<8x8x8xf32>
    %cst_50 = arith.constant dense<0.000000e+00> : vector<8x8xf32>
    %73 = vector.multi_reduction <add>, %72, %cst_50 [2] : vector<8x8x8xf32> to vector<8x8xf32>
    %74 = vector.shape_cast %73 : vector<8x8xf32> to vector<8x8x1xf32>
    %75 = tpu.reciprocal %74 {approx = true} : vector<8x8x1xf32> -> vector<8x8x1xf32>
    %76 = vector.broadcast %75 : vector<8x8x1xf32> to vector<8x8x8xf32>
    %77 = arith.mulf %72, %76 : vector<8x8x8xf32>
    "tpu.trace_start"() <{level = 10 : i32, message = "bqk,bkc->bqc"}> : () -> ()
    %cst_51 = arith.constant dense<0.000000e+00> : vector<8x8x8xf32>
    %78 = tpu.matmul %77, %64, %cst_51 {dimension_numbers = #tpu.dot_dimension_numbers<[2], [1], [1], [2], [0, 0, 0, 1, 1, 2], [0], [0]>} : vector<8x8x8xf32>, vector<8x8x8xf32>, vector<8x8x8xf32> -> vector<8x8x8xf32>
    "tpu.trace_stop"() : () -> ()
    %79 = vector.shape_cast %78 : vector<8x8x8xf32> to vector<64x8xf32>
    %c2 = arith.constant 2 : index
    %c0_52 = arith.constant 0 : index
    %c0_53 = arith.constant 0 : index
    %80 = vector.load %arg2[%c2, %c0_52, %c0_53] : memref<4x32x8xf32, #tpu.memory_space<vmem>>, vector<1x32x8xf32>
    %81 = vector.shape_cast %80 : vector<1x32x8xf32> to vector<32x8xf32>
    %cst_54 = arith.constant dense<0.000000e+00> : vector<64x8xf32>
    %82 = tpu.matmul %1, %81, %cst_54 {dimension_numbers = #tpu.dot_dimension_numbers<[1], [0], [0], [1], [0, 0, 1, 1], [], []>} : vector<64x32xf32>, vector<32x8xf32>, vector<64x8xf32> -> vector<64x8xf32>
    %c2_55 = arith.constant 2 : index
    %c0_56 = arith.constant 0 : index
    %c0_57 = arith.constant 0 : index
    %83 = vector.load %arg5[%c2_55, %c0_56, %c0_57] : memref<4x1x8xf32, #tpu.memory_space<vmem>>, vector<1x1x8xf32>
    %84 = vector.shape_cast %83 : vector<1x1x8xf32> to vector<1x8xf32>
    %85 = vector.broadcast %84 : vector<1x8xf32> to vector<64x8xf32>
    %86 = arith.addf %82, %85 : vector<64x8xf32>
    %c2_58 = arith.constant 2 : index
    %c0_59 = arith.constant 0 : index
    %c0_60 = arith.constant 0 : index
    %87 = vector.load %arg3[%c2_58, %c0_59, %c0_60] : memref<4x32x8xf32, #tpu.memory_space<vmem>>, vector<1x32x8xf32>
    %88 = vector.shape_cast %87 : vector<1x32x8xf32> to vector<32x8xf32>
    %cst_61 = arith.constant dense<0.000000e+00> : vector<64x8xf32>
    %89 = tpu.matmul %1, %88, %cst_61 {dimension_numbers = #tpu.dot_dimension_numbers<[1], [0], [0], [1], [0, 0, 1, 1], [], []>} : vector<64x32xf32>, vector<32x8xf32>, vector<64x8xf32> -> vector<64x8xf32>
    %c2_62 = arith.constant 2 : index
    %c0_63 = arith.constant 0 : index
    %c0_64 = arith.constant 0 : index
    %90 = vector.load %arg6[%c2_62, %c0_63, %c0_64] : memref<4x1x8xf32, #tpu.memory_space<vmem>>, vector<1x1x8xf32>
    %91 = vector.shape_cast %90 : vector<1x1x8xf32> to vector<1x8xf32>
    %92 = vector.broadcast %91 : vector<1x8xf32> to vector<64x8xf32>
    %93 = arith.addf %89, %92 : vector<64x8xf32>
    %c2_65 = arith.constant 2 : index
    %c0_66 = arith.constant 0 : index
    %c0_67 = arith.constant 0 : index
    %94 = vector.load %arg4[%c2_65, %c0_66, %c0_67] : memref<4x32x8xf32, #tpu.memory_space<vmem>>, vector<1x32x8xf32>
    %95 = vector.shape_cast %94 : vector<1x32x8xf32> to vector<32x8xf32>
    %cst_68 = arith.constant dense<0.000000e+00> : vector<64x8xf32>
    %96 = tpu.matmul %1, %95, %cst_68 {dimension_numbers = #tpu.dot_dimension_numbers<[1], [0], [0], [1], [0, 0, 1, 1], [], []>} : vector<64x32xf32>, vector<32x8xf32>, vector<64x8xf32> -> vector<64x8xf32>
    %c2_69 = arith.constant 2 : index
    %c0_70 = arith.constant 0 : index
    %c0_71 = arith.constant 0 : index
    %97 = vector.load %arg7[%c2_69, %c0_70, %c0_71] : memref<4x1x8xf32, #tpu.memory_space<vmem>>, vector<1x1x8xf32>
    %98 = vector.shape_cast %97 : vector<1x1x8xf32> to vector<1x8xf32>
    %99 = vector.broadcast %98 : vector<1x8xf32> to vector<64x8xf32>
    %100 = arith.addf %96, %99 : vector<64x8xf32>
    %101 = vector.shape_cast %86 : vector<64x8xf32> to vector<8x8x8xf32>
    %102 = vector.shape_cast %93 : vector<64x8xf32> to vector<8x8x8xf32>
    %103 = vector.shape_cast %100 : vector<64x8xf32> to vector<8x8x8xf32>
    "tpu.trace_start"() <{level = 10 : i32, message = "bqc,bkc->bqk"}> : () -> ()
    %cst_72 = arith.constant dense<0.000000e+00> : vector<8x8x8xf32>
    %104 = tpu.matmul %101, %102, %cst_72 {dimension_numbers = #tpu.dot_dimension_numbers<[2], [2], [1], [1], [0, 0, 0, 1, 1, 1], [0], [0]>} : vector<8x8x8xf32>, vector<8x8x8xf32>, vector<8x8x8xf32> -> vector<8x8x8xf32>
    "tpu.trace_stop"() : () -> ()
    %cst_73 = arith.constant 0.353553385 : f32
    %105 = vector.broadcast %cst_73 : f32 to vector<8x8x8xf32>
    %106 = arith.mulf %104, %105 : vector<8x8x8xf32>
    %cst_74 = arith.constant dense<0xFF800000> : vector<8x8xf32>
    %107 = vector.multi_reduction <maximumf>, %106, %cst_74 [2] : vector<8x8x8xf32> to vector<8x8xf32>
    %108 = vector.shape_cast %107 : vector<8x8xf32> to vector<8x8x1xf32>
    %109 = vector.broadcast %108 : vector<8x8x1xf32> to vector<8x8x8xf32>
    %110 = arith.subf %106, %109 : vector<8x8x8xf32>
    %111 = math.exp %110 : vector<8x8x8xf32>
    %cst_75 = arith.constant dense<0.000000e+00> : vector<8x8xf32>
    %112 = vector.multi_reduction <add>, %111, %cst_75 [2] : vector<8x8x8xf32> to vector<8x8xf32>
    %113 = vector.shape_cast %112 : vector<8x8xf32> to vector<8x8x1xf32>
    %114 = tpu.reciprocal %113 {approx = true} : vector<8x8x1xf32> -> vector<8x8x1xf32>
    %115 = vector.broadcast %114 : vector<8x8x1xf32> to vector<8x8x8xf32>
    %116 = arith.mulf %111, %115 : vector<8x8x8xf32>
    "tpu.trace_start"() <{level = 10 : i32, message = "bqk,bkc->bqc"}> : () -> ()
    %cst_76 = arith.constant dense<0.000000e+00> : vector<8x8x8xf32>
    %117 = tpu.matmul %116, %103, %cst_76 {dimension_numbers = #tpu.dot_dimension_numbers<[2], [1], [1], [2], [0, 0, 0, 1, 1, 2], [0], [0]>} : vector<8x8x8xf32>, vector<8x8x8xf32>, vector<8x8x8xf32> -> vector<8x8x8xf32>
    "tpu.trace_stop"() : () -> ()
    %118 = vector.shape_cast %117 : vector<8x8x8xf32> to vector<64x8xf32>
    %c3 = arith.constant 3 : index
    %c0_77 = arith.constant 0 : index
    %c0_78 = arith.constant 0 : index
    %119 = vector.load %arg2[%c3, %c0_77, %c0_78] : memref<4x32x8xf32, #tpu.memory_space<vmem>>, vector<1x32x8xf32>
    %120 = vector.shape_cast %119 : vector<1x32x8xf32> to vector<32x8xf32>
    %cst_79 = arith.constant dense<0.000000e+00> : vector<64x8xf32>
    %121 = tpu.matmul %1, %120, %cst_79 {dimension_numbers = #tpu.dot_dimension_numbers<[1], [0], [0], [1], [0, 0, 1, 1], [], []>} : vector<64x32xf32>, vector<32x8xf32>, vector<64x8xf32> -> vector<64x8xf32>
    %c3_80 = arith.constant 3 : index
    %c0_81 = arith.constant 0 : index
    %c0_82 = arith.constant 0 : index
    %122 = vector.load %arg5[%c3_80, %c0_81, %c0_82] : memref<4x1x8xf32, #tpu.memory_space<vmem>>, vector<1x1x8xf32>
    %123 = vector.shape_cast %122 : vector<1x1x8xf32> to vector<1x8xf32>
    %124 = vector.broadcast %123 : vector<1x8xf32> to vector<64x8xf32>
    %125 = arith.addf %121, %124 : vector<64x8xf32>
    %c3_83 = arith.constant 3 : index
    %c0_84 = arith.constant 0 : index
    %c0_85 = arith.constant 0 : index
    %126 = vector.load %arg3[%c3_83, %c0_84, %c0_85] : memref<4x32x8xf32, #tpu.memory_space<vmem>>, vector<1x32x8xf32>
    %127 = vector.shape_cast %126 : vector<1x32x8xf32> to vector<32x8xf32>
    %cst_86 = arith.constant dense<0.000000e+00> : vector<64x8xf32>
    %128 = tpu.matmul %1, %127, %cst_86 {dimension_numbers = #tpu.dot_dimension_numbers<[1], [0], [0], [1], [0, 0, 1, 1], [], []>} : vector<64x32xf32>, vector<32x8xf32>, vector<64x8xf32> -> vector<64x8xf32>
    %c3_87 = arith.constant 3 : index
    %c0_88 = arith.constant 0 : index
    %c0_89 = arith.constant 0 : index
    %129 = vector.load %arg6[%c3_87, %c0_88, %c0_89] : memref<4x1x8xf32, #tpu.memory_space<vmem>>, vector<1x1x8xf32>
    %130 = vector.shape_cast %129 : vector<1x1x8xf32> to vector<1x8xf32>
    %131 = vector.broadcast %130 : vector<1x8xf32> to vector<64x8xf32>
    %132 = arith.addf %128, %131 : vector<64x8xf32>
    %c3_90 = arith.constant 3 : index
    %c0_91 = arith.constant 0 : index
    %c0_92 = arith.constant 0 : index
    %133 = vector.load %arg4[%c3_90, %c0_91, %c0_92] : memref<4x32x8xf32, #tpu.memory_space<vmem>>, vector<1x32x8xf32>
    %134 = vector.shape_cast %133 : vector<1x32x8xf32> to vector<32x8xf32>
    %cst_93 = arith.constant dense<0.000000e+00> : vector<64x8xf32>
    %135 = tpu.matmul %1, %134, %cst_93 {dimension_numbers = #tpu.dot_dimension_numbers<[1], [0], [0], [1], [0, 0, 1, 1], [], []>} : vector<64x32xf32>, vector<32x8xf32>, vector<64x8xf32> -> vector<64x8xf32>
    %c3_94 = arith.constant 3 : index
    %c0_95 = arith.constant 0 : index
    %c0_96 = arith.constant 0 : index
    %136 = vector.load %arg7[%c3_94, %c0_95, %c0_96] : memref<4x1x8xf32, #tpu.memory_space<vmem>>, vector<1x1x8xf32>
    %137 = vector.shape_cast %136 : vector<1x1x8xf32> to vector<1x8xf32>
    %138 = vector.broadcast %137 : vector<1x8xf32> to vector<64x8xf32>
    %139 = arith.addf %135, %138 : vector<64x8xf32>
    %140 = vector.shape_cast %125 : vector<64x8xf32> to vector<8x8x8xf32>
    %141 = vector.shape_cast %132 : vector<64x8xf32> to vector<8x8x8xf32>
    %142 = vector.shape_cast %139 : vector<64x8xf32> to vector<8x8x8xf32>
    "tpu.trace_start"() <{level = 10 : i32, message = "bqc,bkc->bqk"}> : () -> ()
    %cst_97 = arith.constant dense<0.000000e+00> : vector<8x8x8xf32>
    %143 = tpu.matmul %140, %141, %cst_97 {dimension_numbers = #tpu.dot_dimension_numbers<[2], [2], [1], [1], [0, 0, 0, 1, 1, 1], [0], [0]>} : vector<8x8x8xf32>, vector<8x8x8xf32>, vector<8x8x8xf32> -> vector<8x8x8xf32>
    "tpu.trace_stop"() : () -> ()
    %cst_98 = arith.constant 0.353553385 : f32
    %144 = vector.broadcast %cst_98 : f32 to vector<8x8x8xf32>
    %145 = arith.mulf %143, %144 : vector<8x8x8xf32>
    %cst_99 = arith.constant dense<0xFF800000> : vector<8x8xf32>
    %146 = vector.multi_reduction <maximumf>, %145, %cst_99 [2] : vector<8x8x8xf32> to vector<8x8xf32>
    %147 = vector.shape_cast %146 : vector<8x8xf32> to vector<8x8x1xf32>
    %148 = vector.broadcast %147 : vector<8x8x1xf32> to vector<8x8x8xf32>
    %149 = arith.subf %145, %148 : vector<8x8x8xf32>
    %150 = math.exp %149 : vector<8x8x8xf32>
    %cst_100 = arith.constant dense<0.000000e+00> : vector<8x8xf32>
    %151 = vector.multi_reduction <add>, %150, %cst_100 [2] : vector<8x8x8xf32> to vector<8x8xf32>
    %152 = vector.shape_cast %151 : vector<8x8xf32> to vector<8x8x1xf32>
    %153 = tpu.reciprocal %152 {approx = true} : vector<8x8x1xf32> -> vector<8x8x1xf32>
    %154 = vector.broadcast %153 : vector<8x8x1xf32> to vector<8x8x8xf32>
    %155 = arith.mulf %150, %154 : vector<8x8x8xf32>
    "tpu.trace_start"() <{level = 10 : i32, message = "bqk,bkc->bqc"}> : () -> ()
    %cst_101 = arith.constant dense<0.000000e+00> : vector<8x8x8xf32>
    %156 = tpu.matmul %155, %142, %cst_101 {dimension_numbers = #tpu.dot_dimension_numbers<[2], [1], [1], [2], [0, 0, 0, 1, 1, 2], [0], [0]>} : vector<8x8x8xf32>, vector<8x8x8xf32>, vector<8x8x8xf32> -> vector<8x8x8xf32>
    "tpu.trace_stop"() : () -> ()
    %157 = vector.shape_cast %156 : vector<8x8x8xf32> to vector<64x8xf32>
    %158 = tpu.concatenate %38, %77, %116, %155 in 2 : vector<8x8x8xf32>, vector<8x8x8xf32>, vector<8x8x8xf32>, vector<8x8x8xf32> -> vector<8x8x32xf32>
    %c0_102 = arith.constant 0 : index
    %c0_103 = arith.constant 0 : index
    %c0_104 = arith.constant 0 : index
    %159 = vector.load %arg19[%c0_102, %c0_103, %c0_104] : memref<8x8x32xf32, #tpu.memory_space<vmem>>, vector<8x8x32xf32>
    tpu.vector_store %arg19[%c0_102, %c0_103, %c0_104], %158 {strides = array<i32>} : memref<8x8x32xf32, #tpu.memory_space<vmem>>, vector<8x8x32xf32>,
    %160 = tpu.concatenate %40, %79, %118, %157 in 1 : vector<64x8xf32>, vector<64x8xf32>, vector<64x8xf32>, vector<64x8xf32> -> vector<64x32xf32>
    %c0_105 = arith.constant 0 : index
    %c0_106 = arith.constant 0 : index
    %161 = vector.load %arg8[%c0_105, %c0_106] : memref<32x32xf32, #tpu.memory_space<vmem>>, vector<32x32xf32>
    %cst_107 = arith.constant dense<0.000000e+00> : vector<64x32xf32>
    %162 = tpu.matmul %160, %161, %cst_107 {dimension_numbers = #tpu.dot_dimension_numbers<[1], [0], [0], [1], [0, 0, 1, 1], [], []>} : vector<64x32xf32>, vector<32x32xf32>, vector<64x32xf32> -> vector<64x32xf32>
    %c0_108 = arith.constant 0 : index
    %c0_109 = arith.constant 0 : index
    %163 = vector.load %arg9[%c0_108, %c0_109] : memref<1x32xf32, #tpu.memory_space<vmem>>, vector<1x32xf32>
    %164 = vector.broadcast %163 : vector<1x32xf32> to vector<64x32xf32>
    %165 = arith.addf %162, %164 : vector<64x32xf32>
    %166 = arith.addf %1, %165 : vector<64x32xf32>
    %c0_110 = arith.constant 0 : index
    %c0_111 = arith.constant 0 : index
    %167 = vector.load %arg14[%c0_110, %c0_111] : memref<1x32xf32, #tpu.memory_space<vmem>>, vector<1x32xf32>
    %c0_112 = arith.constant 0 : index
    %c0_113 = arith.constant 0 : index
    %168 = vector.load %arg15[%c0_112, %c0_113] : memref<1x32xf32, #tpu.memory_space<vmem>>, vector<1x32xf32>
    %cst_114 = arith.constant dense<0.000000e+00> : vector<64xf32>
    %169 = vector.multi_reduction <add>, %166, %cst_114 [1] : vector<64x32xf32> to vector<64xf32>
    %170 = vector.shape_cast %169 : vector<64xf32> to vector<64x1xf32>
    %cst_115 = arith.constant 3.200000e+01 : f32
    %171 = vector.broadcast %cst_115 : f32 to vector<64x1xf32>
    %172 = arith.divf %170, %171 : vector<64x1xf32>
    %173 = vector.broadcast %172 : vector<64x1xf32> to vector<64x32xf32>
    %174 = arith.subf %166, %173 : vector<64x32xf32>
    %175 = arith.mulf %174, %174 : vector<64x32xf32>
    %cst_116 = arith.constant dense<0.000000e+00> : vector<64xf32>
    %176 = vector.multi_reduction <add>, %175, %cst_116 [1] : vector<64x32xf32> to vector<64xf32>
    %177 = vector.shape_cast %176 : vector<64xf32> to vector<64x1xf32>
    %cst_117 = arith.constant 3.200000e+01 : f32
    %178 = vector.broadcast %cst_117 : f32 to vector<64x1xf32>
    %179 = arith.divf %177, %178 : vector<64x1xf32>
    %180 = vector.broadcast %172 : vector<64x1xf32> to vector<64x32xf32>
    %181 = arith.subf %166, %180 : vector<64x32xf32>
    %cst_118 = arith.constant 9.99999974E-6 : f32
    %182 = vector.broadcast %cst_118 : f32 to vector<64x1xf32>
    %183 = arith.addf %179, %182 : vector<64x1xf32>
    %184 = math.rsqrt %183 : vector<64x1xf32>
    %185 = vector.broadcast %184 : vector<64x1xf32> to vector<64x32xf32>
    %186 = arith.mulf %181, %185 : vector<64x32xf32>
    %187 = vector.broadcast %167 : vector<1x32xf32> to vector<64x32xf32>
    %188 = arith.mulf %186, %187 : vector<64x32xf32>
    %189 = vector.broadcast %168 : vector<1x32xf32> to vector<64x32xf32>
    %190 = arith.addf %188, %189 : vector<64x32xf32>
    %c0_119 = arith.constant 0 : index
    %c0_120 = arith.constant 0 : index
    %191 = vector.load %arg10[%c0_119, %c0_120] : memref<32x64xf32, #tpu.memory_space<vmem>>, vector<32x64xf32>
    %cst_121 = arith.constant dense<0.000000e+00> : vector<64x64xf32>
    %192 = tpu.matmul %190, %191, %cst_121 {dimension_numbers = #tpu.dot_dimension_numbers<[1], [0], [0], [1], [0, 0, 1, 1], [], []>} : vector<64x32xf32>, vector<32x64xf32>, vector<64x64xf32> -> vector<64x64xf32>
    %c0_122 = arith.constant 0 : index
    %c0_123 = arith.constant 0 : index
    %193 = vector.load %arg11[%c0_122, %c0_123] : memref<1x64xf32, #tpu.memory_space<vmem>>, vector<1x64xf32>
    %194 = vector.broadcast %193 : vector<1x64xf32> to vector<64x64xf32>
    %195 = arith.addf %192, %194 : vector<64x64xf32>
    %cst_124 = arith.constant 0.000000e+00 : f32
    %196 = vector.broadcast %cst_124 : f32 to vector<64x64xf32>
    %197 = arith.maximumf %195, %196 : vector<64x64xf32>
    %c0_125 = arith.constant 0 : index
    %c0_126 = arith.constant 0 : index
    %198 = vector.load %arg12[%c0_125, %c0_126] : memref<64x32xf32, #tpu.memory_space<vmem>>, vector<64x32xf32>
    %cst_127 = arith.constant dense<0.000000e+00> : vector<64x32xf32>
    %199 = tpu.matmul %197, %198, %cst_127 {dimension_numbers = #tpu.dot_dimension_numbers<[1], [0], [0], [1], [0, 0, 1, 1], [], []>} : vector<64x64xf32>, vector<64x32xf32>, vector<64x32xf32> -> vector<64x32xf32>
    %c0_128 = arith.constant 0 : index
    %c0_129 = arith.constant 0 : index
    %200 = vector.load %arg13[%c0_128, %c0_129] : memref<1x32xf32, #tpu.memory_space<vmem>>, vector<1x32xf32>
    %201 = vector.broadcast %200 : vector<1x32xf32> to vector<64x32xf32>
    %202 = arith.addf %199, %201 : vector<64x32xf32>
    %203 = arith.addf %190, %202 : vector<64x32xf32>
    %c0_130 = arith.constant 0 : index
    %c0_131 = arith.constant 0 : index
    %204 = vector.load %arg16[%c0_130, %c0_131] : memref<1x32xf32, #tpu.memory_space<vmem>>, vector<1x32xf32>
    %c0_132 = arith.constant 0 : index
    %c0_133 = arith.constant 0 : index
    %205 = vector.load %arg17[%c0_132, %c0_133] : memref<1x32xf32, #tpu.memory_space<vmem>>, vector<1x32xf32>
    %cst_134 = arith.constant dense<0.000000e+00> : vector<64xf32>
    %206 = vector.multi_reduction <add>, %203, %cst_134 [1] : vector<64x32xf32> to vector<64xf32>
    %207 = vector.shape_cast %206 : vector<64xf32> to vector<64x1xf32>
    %cst_135 = arith.constant 3.200000e+01 : f32
    %208 = vector.broadcast %cst_135 : f32 to vector<64x1xf32>
    %209 = arith.divf %207, %208 : vector<64x1xf32>
    %210 = vector.broadcast %209 : vector<64x1xf32> to vector<64x32xf32>
    %211 = arith.subf %203, %210 : vector<64x32xf32>
    %212 = arith.mulf %211, %211 : vector<64x32xf32>
    %cst_136 = arith.constant dense<0.000000e+00> : vector<64xf32>
    %213 = vector.multi_reduction <add>, %212, %cst_136 [1] : vector<64x32xf32> to vector<64xf32>
    %214 = vector.shape_cast %213 : vector<64xf32> to vector<64x1xf32>
    %cst_137 = arith.constant 3.200000e+01 : f32
    %215 = vector.broadcast %cst_137 : f32 to vector<64x1xf32>
    %216 = arith.divf %214, %215 : vector<64x1xf32>
    %217 = vector.broadcast %209 : vector<64x1xf32> to vector<64x32xf32>
    %218 = arith.subf %203, %217 : vector<64x32xf32>
    %cst_138 = arith.constant 9.99999974E-6 : f32
    %219 = vector.broadcast %cst_138 : f32 to vector<64x1xf32>
    %220 = arith.addf %216, %219 : vector<64x1xf32>
    %221 = math.rsqrt %220 : vector<64x1xf32>
    %222 = vector.broadcast %221 : vector<64x1xf32> to vector<64x32xf32>
    %223 = arith.mulf %218, %222 : vector<64x32xf32>
    %224 = vector.broadcast %204 : vector<1x32xf32> to vector<64x32xf32>
    %225 = arith.mulf %223, %224 : vector<64x32xf32>
    %226 = vector.broadcast %205 : vector<1x32xf32> to vector<64x32xf32>
    %227 = arith.addf %225, %226 : vector<64x32xf32>
    %228 = vector.shape_cast %227 : vector<64x32xf32> to vector<8x8x32xf32>
    %c0_139 = arith.constant 0 : index
    %c0_140 = arith.constant 0 : index
    %c0_141 = arith.constant 0 : index
    %229 = vector.load %arg18[%c0_139, %c0_140, %c0_141] : memref<8x8x32xf32, #tpu.memory_space<vmem>>, vector<8x8x32xf32>
    tpu.vector_store %arg18[%c0_139, %c0_140, %c0_141], %228 {strides = array<i32>} : memref<8x8x32xf32, #tpu.memory_space<vmem>>, vector<8x8x32xf32>,
    return
  }
  func.func @transform_0(%arg0: i32) -> (i32, i32, i32) {
    %c0_i32 = arith.constant 0 : i32
    %c0_i32_0 = arith.constant 0 : i32
    %c0_i32_1 = arith.constant 0 : i32
    return %arg0, %c0_i32, %c0_i32_0 : i32, i32, i32
  }
  func.func @transform_1(%arg0: i32) -> (i32, i32, i32) {
    %c0_i32 = arith.constant 0 : i32
    %c0_i32_0 = arith.constant 0 : i32
    %c0_i32_1 = arith.constant 0 : i32
    %c0_i32_2 = arith.constant 0 : i32
    return %c0_i32, %c0_i32_0, %c0_i32_1 : i32, i32, i32
  }
  func.func @transform_2(%arg0: i32) -> (i32, i32, i32) {
    %c0_i32 = arith.constant 0 : i32
    %c0_i32_0 = arith.constant 0 : i32
    %c0_i32_1 = arith.constant 0 : i32
    %c0_i32_2 = arith.constant 0 : i32
    return %c0_i32, %c0_i32_0, %c0_i32_1 : i32, i32, i32
  }
  func.func @transform_3(%arg0: i32) -> (i32, i32, i32) {
    %c0_i32 = arith.constant 0 : i32
    %c0_i32_0 = arith.constant 0 : i32
    %c0_i32_1 = arith.constant 0 : i32
    %c0_i32_2 = arith.constant 0 : i32
    return %c0_i32, %c0_i32_0, %c0_i32_1 : i32, i32, i32
  }
  func.func @transform_4(%arg0: i32) -> (i32, i32, i32) {
    %c0_i32 = arith.constant 0 : i32
    %c0_i32_0 = arith.constant 0 : i32
    %c0_i32_1 = arith.constant 0 : i32
    %c0_i32_2 = arith.constant 0 : i32
    return %c0_i32, %c0_i32_0, %c0_i32_1 : i32, i32, i32
  }
  func.func @transform_5(%arg0: i32) -> (i32, i32, i32) {
    %c0_i32 = arith.constant 0 : i32
    %c0_i32_0 = arith.constant 0 : i32
    %c0_i32_1 = arith.constant 0 : i32
    %c0_i32_2 = arith.constant 0 : i32
    return %c0_i32, %c0_i32_0, %c0_i32_1 : i32, i32, i32
  }
  func.func @transform_6(%arg0: i32) -> (i32, i32, i32) {
    %c0_i32 = arith.constant 0 : i32
    %c0_i32_0 = arith.constant 0 : i32
    %c0_i32_1 = arith.constant 0 : i32
    %c0_i32_2 = arith.constant 0 : i32
    return %c0_i32, %c0_i32_0, %c0_i32_1 : i32, i32, i32
  }
  func.func @transform_7(%arg0: i32) -> (i32, i32) {
    %c0_i32 = arith.constant 0 : i32
    %c0_i32_0 = arith.constant 0 : i32
    %c0_i32_1 = arith.constant 0 : i32
    return %c0_i32, %c0_i32_0 : i32, i32
  }
  func.func @transform_8(%arg0: i32) -> (i32, i32) {
    %c0_i32 = arith.constant 0 : i32
    %c0_i32_0 = arith.constant 0 : i32
    %c0_i32_1 = arith.constant 0 : i32
    return %c0_i32, %c0_i32_0 : i32, i32
  }
  func.func @transform_9(%arg0: i32) -> (i32, i32) {
    %c0_i32 = arith.constant 0 : i32
    %c0_i32_0 = arith.constant 0 : i32
    %c0_i32_1 = arith.constant 0 : i32
    return %c0_i32, %c0_i32_0 : i32, i32
  }
  func.func @transform_10(%arg0: i32) -> (i32, i32) {
    %c0_i32 = arith.constant 0 : i32
    %c0_i32_0 = arith.constant 0 : i32
    %c0_i32_1 = arith.constant 0 : i32
    return %c0_i32, %c0_i32_0 : i32, i32
  }
  func.func @transform_11(%arg0: i32) -> (i32, i32) {
    %c0_i32 = arith.constant 0 : i32
    %c0_i32_0 = arith.constant 0 : i32
    %c0_i32_1 = arith.constant 0 : i32
    return %c0_i32, %c0_i32_0 : i32, i32
  }
  func.func @transform_12(%arg0: i32) -> (i32, i32) {
    %c0_i32 = arith.constant 0 : i32
    %c0_i32_0 = arith.constant 0 : i32
    %c0_i32_1 = arith.constant 0 : i32
    return %c0_i32, %c0_i32_0 : i32, i32
  }
  func.func @transform_13(%arg0: i32) -> (i32, i32) {
    %c0_i32 = arith.constant 0 : i32
    %c0_i32_0 = arith.constant 0 : i32
    %c0_i32_1 = arith.constant 0 : i32
    return %c0_i32, %c0_i32_0 : i32, i32
  }
  func.func @transform_14(%arg0: i32) -> (i32, i32) {
    %c0_i32 = arith.constant 0 : i32
    %c0_i32_0 = arith.constant 0 : i32
    %c0_i32_1 = arith.constant 0 : i32
    return %c0_i32, %c0_i32_0 : i32, i32
  }
  func.func @transform_15(%arg0: i32) -> (i32, i32) {
    %c0_i32 = arith.constant 0 : i32
    %c0_i32_0 = arith.constant 0 : i32
    %c0_i32_1 = arith.constant 0 : i32
    return %c0_i32, %c0_i32_0 : i32, i32
  }
  func.func @transform_16(%arg0: i32) -> (i32, i32) {
    %c0_i32 = arith.constant 0 : i32
    %c0_i32_0 = arith.constant 0 : i32
    %c0_i32_1 = arith.constant 0 : i32
    return %c0_i32, %c0_i32_0 : i32, i32
  }
  func.func @transform_17(%arg0: i32) -> (i32, i32, i32) {
    %c0_i32 = arith.constant 0 : i32
    %c0_i32_0 = arith.constant 0 : i32
    %c0_i32_1 = arith.constant 0 : i32
    return %arg0, %c0_i32, %c0_i32_0 : i32, i32, i32
  }
  func.func @transform_18(%arg0: i32) -> (i32, i32, i32) {
    %c0_i32 = arith.constant 0 : i32
    %c0_i32_0 = arith.constant 0 : i32
    %c0_i32_1 = arith.constant 0 : i32
    return %arg0, %c0_i32, %c0_i32_0 : i32, i32, i32
  }
}

</mosaic_0001>

<bundles_post_ra>
// kernel: tpu_custom_call.1
= control target key start
LH: loop header
LB: loop body
LE: loop exit
PB: predicated region body
PF: predicated region fallthrough
CT: control target
= control target key end

     0   :  { %s11647_s0 = inlined_call_operand.vmem [shape: f32[16,8,32], index: 0, kind: input, shape index: {}]   ;;  %s11648_s1 = inlined_call_operand.vmem [shape: f32[4,32,8], index: 1, kind: input, shape index: {}]   ;;  %s11649_s2 = inlined_call_operand.vmem [shape: f32[4,32,8], index: 2, kind: input, shape index: {}]   ;;  %s11650_s3 = inlined_call_operand.vmem [shape: f32[4,32,8], index: 3, kind: input, shape index: {}]   ;;  %s11651_s4 = inlined_call_operand.vmem [shape: f32[4,1,8], index: 4, kind: input, shape index: {}]   ;;  %s11652_s5 = inlined_call_operand.vmem [shape: f32[4,1,8], index: 5, kind: input, shape index: {}]   ;;  %s11653_s6 = inlined_call_operand.vmem [shape: f32[4,1,8], index: 6, kind: input, shape index: {}]   ;;  %s11654_s7 = inlined_call_operand.vmem [shape: f32[32,32], index: 7, kind: input, shape index: {}]   ;;  %s11655_s8 = inlined_call_operand.vmem [shape: f32[1,32], index: 8, kind: input, shape index: {}]   ;;  %s11656_s9 = inlined_call_operand.vmem [shape: f32[32,64], index: 9, kind: input, shape index: {}]   ;;  %s11657_s10 = inlined_call_operand.vmem [shape: f32[1,64], index: 10, kind: input, shape index: {}]   ;;  %s11658_s11 = inlined_call_operand.vmem [shape: f32[64,32], index: 11, kind: input, shape index: {}]   ;;  %s11659_s12 = inlined_call_operand.vmem [shape: f32[1,32], index: 12, kind: input, shape index: {}]   ;;  %s11660_s13 = inlined_call_operand.vmem [shape: f32[1,32], index: 13, kind: input, shape index: {}]   ;;  %s11661_s14 = inlined_call_operand.vmem [shape: f32[1,32], index: 14, kind: input, shape index: {}]   ;;  %s11662_s15 = inlined_call_operand.vmem [shape: f32[1,32], index: 15, kind: input, shape index: {}]   ;;  %s11663_s16 = inlined_call_operand.vmem [shape: f32[1,32], index: 16, kind: input, shape index: {}]   ;;  %s11664_s17 = inlined_call_operand.hbm [shape: f32[16,8,32], index: 17, kind: output, shape index: {0}]   ;;  %s11665_s18 = inlined_call_operand.hbm [shape: f32[16,8,32], index: 18, kind: output, shape index: {1}]  }
   0x1   :  { %11698 = sst [smem:[#allocation31_spill]] %s11647_s0 }
   0x2   :  { %11699 = sst [smem:[#allocation32_spill]] %s11648_s1 }
   0x3   :  { %11700 = sst [smem:[#allocation33_spill]] %s11649_s2 }
   0x4   :  { %11701 = sst [smem:[#allocation34_spill]] %s11650_s3 }
   0x5   :  { %11702 = sst [smem:[#allocation35_spill]] %s11651_s4 }
   0x6   :  { %11703 = sst [smem:[#allocation36_spill]] %s11664_s17 }
   0x7   :  { %24 = vsyncpa [#allocation3], 0 }
   0x8   :  { %26 = vsyncpa [#allocation3 + $0x1], 0 }
   0x9   :  { %27 = vsyncpa [#allocation5], 0 }
   0xa   :  { %29 = vsyncpa [#allocation5 + $0x1], 0  ;;  %s9933_s27 = smov 0   ;;  %s9935_s28 = smov 0  }
   0xb   :  { %s9937_s29 = smov 0   ;;  %s9939_s30 = smov 0  }
   0xc LB: > { %11704 = sst [smem:[#allocation8_spill]] %s9816_s27  ;;  %s9954_s0 = sadd.s32 4294967295, %s9828_s30   ;;  %s9828_s30 = sphi %s9939_s30, %s11761_s30   ;;  %s9824_s29 = sphi %s9937_s29, %s11763_s29   ;;  %s9820_s28 = sphi %s9935_s28, %s11765_s28   ;;  %s9816_s27 = sphi %s9933_s27, %s11764_s27  }
   0xd   : > { %11705 = sst [smem:[#allocation9_spill]] %s9824_s29  ;;  %s8266_s19 = sadd.s32 4294967294, %s9828_s30  }
   0xe   : > { %11706 = sst [smem:[#allocation10_spill]] %s9828_s30  ;;  %s9958_s1 = sadd.s32 1, %s9828_s30  }
   0xf   : > { %11707 = sst [smem:[#allocation11_spill]] %s9958_s1  ;;  %s404_s20 = sadd.s32 1, %s9824_s29 }
  0x10   : > { %s401_s21 = ssub.s32 %s9828_s30, %s9958_s1  ;;  %p414_p0 = scmp.ne.s32.totalorder %s9824_s29, %s9820_s28 }
  0x11   : > { %p402_p1 = scmp.eq.s32.totalorder %s401_s21, 0  ;;  %p415_p2 = scmp.eq.s32.totalorder %s9954_s0, 1 }
  0x12   : > { %p420_p3 = scmp.ne.s32.totalorder %s9820_s28, %s9816_s27  ;;  %p421_p4 = scmp.eq.s32.totalorder %s8266_s19, 1 }
  0x13   : > { %s9969_s22 = scalar_select %p402_p1, %s9824_s29, %s404_s20  }
  0x14   : > { %p9971_p5 = por %p415_p2, %p414_p0  ;;  %p9975_p6 = por %p421_p4, %p420_p3 }
  0x15   : > { %11708 = sst [smem:[#allocation12_spill]] %s9969_s22  ;;  %p8269_p7 = scmp.ge.s32.totalorder %s9828_s30, 1 }
  0x16   : > { %s11710_s23 = scalar_select %p9975_p6, 1, 0 }
  0x17   : > { %p522_p8 = scmp.lt.s32.totalorder %s9828_s30, 3 }
  0x18   : > { %11711 = sst [smem:[#allocation13_spill]] %s11710_s23 }
  0x19   : > { %p523_p9 = pnand %p8269_p7, %p522_p8 }
  0x1b   : > { %526 = sbr.rel (%p523_p9) target bundleno = 4543 (0x11bf), region = 88 }
  0x20   : > { %s11712_s26 = sld [smem:[#allocation32_spill]]  ;;  %s8272_s21 = sshll.u32 %s9954_s0, 3  ;;  %vm608_vm0 = vcmask 261120   ;;  %v11675_v20 = vmov 0.0   ;;  %vm9831_vm1 = vmmov 0   ;;  %vm970_vm2 = vcmask 64512  }
  0x21   : > { %p582_p10 = scmp.lt.s32.totalorder %s8272_s21, 15  ;;  %s11713_s23 = sld [smem:[#allocation31_spill]]  ;;  %v8283_v27 = vld [vmem:[%s11652_s5] ss:$0 sm:$0xff]  ;;  %vm7265_vm3 = vcmask 130048   ;;  %vm7274_vm4 = vcmask 195584  }
  0x22   : > { %s11714_s30 = sld [smem:[#allocation33_spill]]  ;;  %v10150_v55 = vld [vmem:[%s11653_s6] ss:$0 sm:$0xff]  ;;  %s11695_s27 = smov 8   ;;  %vm7857_vm5 = vcmask 523264  }
  0x23   : > { %s11767_s21 = smov (!%p582_p10, %s8272_s21), 15  ;;  %s11716_s3 = sld [smem:[#allocation34_spill]] }
  0x24   : > { %s8273_s19 = sshll.u32 %s11767_s21, 3  ;;  %s11717_s4 = sld [smem:[#allocation35_spill]] }
  0x25   : > { %s9833_s1 = smov 16  }
  0x26   : > { %v600_v0 = vld [vmem:[%s11712_s26 + $0x18] sm:$0xff]  ;;  %v599_v1 = vld [vmem:[%s11712_s26 + $0x10] sm:$0xff]  ;;  %v598_v2 = vld [vmem:[%s11712_s26 + $0x8] sm:$0xff] }
  0x27   : > { %9504 = vmatprep.subr.mxu1 %v600_v0  ;;  %8876 = vmatprep.subr.mxu0 %v600_v0  ;;  %v597_v3 = vld [vmem:[%s11712_s26] sm:$0xff]  ;;  %s9997_s29 = scalar_lea.vmem %s11713_s23, %s8273_s19  ;;  %s11694_s23 = sshll.u32 %s9954_s0, 10 }
  0x28   : > { %9508 = vmatpush3.msra.mxu1 %v600_v0  ;;  %8877 = vmatpush3.msra.mxu0 %v600_v0  ;;  %s11715_s17 = smov %s11714_s30  ;;  %v741_v4 = vld [vmem:[%s11714_s30 + $0x18] sm:$0xff]  ;;  %v10003_v5 = vld [vmem:[%s9997_s29 + $0x20] sm:$0xff]  ;;  %v10006_v6 = vld [vmem:[%s9997_s29 + $0x28] sm:$0xff]  ;;  %s9834_s30 = smov 24  }
  0x29   : > { %9505 = vmatprep.subr.mxu1 %v599_v1  ;;  %8878 = vmatprep.subr.mxu0 %v599_v1  ;;  %v10009_v7 = vld [vmem:[%s9997_s29 + $0x30] sm:$0xff]  ;;  %v10019_v9 = vld [vmem:[%s9997_s29] sm:$0xff]  ;;  %v10024_v10 = vld [vmem:[%s9997_s29 + $0x38] sm:$0xff]  ;;  %s11532_s25 = scalar_lea.hbm %s11665_s18, %s11694_s23 }
  0x2a   : > { %9509 = vmatpush3.msra.mxu1 %v599_v1  ;;  %8879 = vmatpush3.msra.mxu0 %v599_v1  ;;  %v740_v8 = vld [vmem:[%s11715_s17 + $0x10] sm:$0xff]  ;;  %v739_v11 = vld [vmem:[%s11715_s17 + $0x8] sm:$0xff]  ;;  %v738_v12 = vld [vmem:[%s11715_s17] sm:$0xff] }
  0x2b   : > { %9506 = vmatprep.subr.mxu1 %v598_v2  ;;  %8880 = vmatprep.subr.mxu0 %v598_v2  ;;  %v10035_v13 = vld [vmem:[%s9997_s29 + $0x8] sm:$0xff]  ;;  %v10044_v14 = vld [vmem:[%s9997_s29 + $0x10] sm:$0xff]  ;;  %v10053_v15 = vld [vmem:[%s9997_s29 + $0x18] sm:$0xff] }
  0x2c   : > { %9510 = vmatpush3.msra.mxu1 %v598_v2  ;;  %8881 = vmatpush3.msra.mxu0 %v598_v2  ;;  %v857_v16 = vld [vmem:[%s11716_s3 + $0x18] sm:$0xff]  ;;  %v856_v17 = vld [vmem:[%s11716_s3 + $0x10] sm:$0xff]  ;;  %v855_v18 = vld [vmem:[%s11716_s3 + $0x8] sm:$0xff] }
  0x2d   : > { %9507 = vmatprep.subr.mxu1 %v597_v3  ;;  %8882 = vmatprep.subr.mxu0 %v597_v3  ;;  %v854_v19 = vld [vmem:[%s11716_s3] sm:$0xff] }
  0x2e   : > { %9511 = vmatpush3.msra.mxu1 %v597_v3  ;;  %8890 = vmatprep.mubr.msk.f32.mxu1 %vm608_vm0, %v10003_v5  ;;  %v8274_v32 = vld [vmem:[%s11717_s4] ss:$0 sm:$0xff] }
  0x2f   : > { %8891 = vmatmul.mubr.msk.f32.vlgmr.msra.gmra.mxu1 %vm608_vm0, %v10006_v6  ;;  %8896 = vmatprep.subr.mxu1 %v741_v4 }
  0x30   : > { %8897 = vmatpush3.msra.mxu1 %v741_v4  ;;  %8893 = vmatprep.mubr.msk.f32.mxu1 %vm608_vm0, %v10009_v7 }
  0x31   : > { %8898 = vmatprep.subr.mxu1 %v740_v8  ;;  %8883 = vmatpush3.msra.mxu0 %v597_v3 }
  0x32   : > { %8899 = vmatpush3.msra.mxu1 %v740_v8  ;;  %8884 = vmatprep.mubr.msk.f32.mxu0 %vm608_vm0, %v10019_v9 }
  0x33   : > { %8894 = vmatmul.mubr.msk.f32.gmra.mxu1 %vm608_vm0, %v10024_v10  ;;  %8900 = vmatprep.subr.mxu1 %v739_v11 }
  0x34   : > { %8901 = vmatpush3.msra.mxu1 %v739_v11  ;;  %8904 = vmatprep.mubr.msk.f32.mxu1 %vm608_vm0, %v10019_v9 }
  0x35   : > { %8902 = vmatprep.subr.mxu1 %v738_v12  ;;  %8885 = vmatmul.mubr.msk.f32.vlgmr.msra.gmra.mxu0 %vm608_vm0, %v10035_v13 }
  0x36   : > { %8903 = vmatpush3.msra.mxu1 %v738_v12  ;;  %8887 = vmatprep.mubr.msk.f32.mxu0 %vm608_vm0, %v10044_v14 }
  0x37   : > { %8905 = vmatmul.mubr.msk.f32.vlgmr.msra.gmra.mxu1 %vm608_vm0, %v10035_v13  ;;  %8916 = vmatprep.subr.mxu0 %v857_v16 }
  0x38   : > { %8907 = vmatprep.mubr.msk.f32.mxu1 %vm608_vm0, %v10044_v14  ;;  %8917 = vmatpush3.msra.mxu0 %v857_v16 }
  0x39   : > { %8888 = vmatmul.mubr.msk.f32.gmra.mxu0 %vm608_vm0, %v10053_v15  ;;  %8918 = vmatprep.subr.mxu0 %v856_v17 }
  0x3a   : > { %8924 = vmatprep.mubr.msk.f32.mxu0 %vm608_vm0, %v10019_v9  ;;  %8919 = vmatpush3.msra.mxu0 %v856_v17 }
  0x3b   : > { %8908 = vmatmul.mubr.msk.f32.gmra.mxu1 %vm608_vm0, %v10053_v15  ;;  %8920 = vmatprep.subr.mxu0 %v855_v18 }
  0x3c   : > { %8910 = vmatprep.mubr.msk.f32.mxu1 %vm608_vm0, %v10003_v5  ;;  %8921 = vmatpush3.msra.mxu0 %v855_v18 }
  0x3d   : > { %8922 = vmatprep.subr.mxu0 %v854_v19  ;;  %8936 = vmatprep.subr.mxu1 %v11675_v20 }
  0x3e   : > { %8923 = vmatpush3.msra.mxu0 %v854_v19 }
  0x3f   : > { %8911 = vmatmul.mubr.msk.f32.gmra.mxu1 %vm608_vm0, %v10006_v6  ;;  %8925 = vmatmul.mubr.msk.f32.vlgmr.msra.gmra.mxu0 %vm608_vm0, %v10035_v13 }
  0x40   : > { %8913 = vmatprep.mubr.msk.f32.mxu1 %vm608_vm0, %v10009_v7  ;;  %8927 = vmatprep.mubr.msk.f32.mxu0 %vm608_vm0, %v10044_v14 }
  0x41   : > { %8956 = vmatprep.subr.mxu0 %v11675_v20 }
  0x43   : > { %8914 = vmatmul.mubr.msk.f32.gmra.mxu1 %vm608_vm0, %v10024_v10  ;;  %8928 = vmatmul.mubr.msk.f32.gmra.mxu0 %vm608_vm0, %v10053_v15 }
  0x44   : > { %8930 = vmatprep.mubr.msk.f32.mxu0 %vm608_vm0, %v10003_v5  ;;  %8938 = vmatprep.mubr.msk.f32.mxu1 %vm9831_vm1, %v11675_v20 }
  0x47   : > { %8931 = vmatmul.mubr.msk.f32.gmra.mxu0 %vm608_vm0, %v10006_v6 }
  0x48   : > { %8933 = vmatprep.mubr.msk.f32.mxu0 %vm608_vm0, %v10009_v7 }
  0x4b   : > { %8934 = vmatmul.mubr.msk.f32.gmra.mxu0 %vm608_vm0, %v10024_v10 }
  0x4c   : > { %8958 = vmatprep.mubr.msk.f32.mxu0 %vm9831_vm1, %v11675_v20 }
  0xef   : > { %v8892_v21 = vpop.f32.mrf.mxu1 }
  0xf0   : > { %v725_v53 = vadd.f32 %v8892_v21, %v8274_v32 }
  0xf1   : > { %v719_v22 = vpop.f32.mrf.mxu1 }
  0xf2   : > { %v720_v44 = vadd.f32 %v8274_v32, %v719_v22 }
  0xf3   : > { %v8895_v23 = vpop.f32.mrf.mxu1 }
  0xf4   : > { %v735_v54 = vadd.f32 %v8895_v23, %v8274_v32 }
  0xf5   : > { %v729_v24 = vpop.f32.mrf.mxu1  ;;  %v8886_v25 = vpop.f32.mrf.mxu0 }
  0xf6   : > { %v705_v38 = vadd.f32 %v8886_v25, %v8274_v32  ;;  %v730_v50 = vadd.f32 %v8274_v32, %v729_v24 }
  0xf7   : > { %v8906_v26 = vpop.f32.mrf.mxu1  ;;  %v699_v30 = vpop.f32.mrf.mxu0 }
  0xf8   : > { %v700_v33 = vadd.f32 %v8274_v32, %v699_v30  ;;  %v821_v35 = vadd.f32 %v8906_v26, %v8283_v27 }
  0xf9   : > { %v815_v28 = vpop.f32.mrf.mxu1  ;;  %v8889_v36 = vpop.f32.mrf.mxu0 }
  0xfa   : > { %v816_v29 = vadd.f32 %v8283_v27, %v815_v28  ;;  %v715_v51 = vadd.f32 %v8889_v36, %v8274_v32 }
  0xfb   : > { %v8909_v31 = vpop.f32.mrf.mxu1  ;;  %v709_v42 = vpop.f32.mrf.mxu0 }
  0xfc   : > { %8937 = vmatpush3.xpose.msk.msra.mxu1 %vm970_vm2, %v816_v29  ;;  %v710_v45 = vadd.f32 %v8274_v32, %v709_v42  ;;  %v831_v47 = vadd.f32 %v8909_v31, %v8283_v27 }
  0xfd   : > { %v825_v34 = vpop.f32.mrf.mxu1  ;;  %8941 = vmatprep.subr.mxu1 %v11675_v20 }
  0xfe   : > { %v826_v40 = vadd.f32 %v8283_v27, %v825_v34 }
  0xff   : > { %v8912_v37 = vpop.f32.mrf.mxu1  ;;  %8939 = vmatmul.mubr.msk.f32.vlgmr.msra.gmra.mxu1 %vm970_vm2, %v700_v33  ;;  %v8926_v56 = vpop.f32.mrf.mxu0 }
 0x100   : > { %8942 = vmatpush3.xpose.msk.msra.mxu1 %vm970_vm2, %v821_v35  ;;  %8943 = vmatprep.mubr.msk.f32.mxu1 %vm9831_vm1, %v11675_v20  ;;  %v841_v49 = vadd.f32 %v8912_v37, %v8283_v27  ;;  %v937_v57 = vadd.f32 %v8926_v56, %v10150_v55 }
 0x101   : > { %v835_v39 = vpop.f32.mrf.mxu1  ;;  %8946 = vmatprep.subr.mxu1 %v11675_v20  ;;  %v931_v58 = vpop.f32.mrf.mxu0 }
 0x102   : > { %v836_v41 = vadd.f32 %v8283_v27, %v835_v39  ;;  %v932_v59 = vadd.f32 %v10150_v55, %v931_v58 }
 0x103   : > { %v8915_v43 = vpop.f32.mrf.mxu1  ;;  %8944 = vmatmul.mubr.msk.f32.vlgmr.msra.gmra.mxu1 %vm970_vm2, %v705_v38  ;;  %v8929_v60 = vpop.f32.mrf.mxu0 }
 0x104   : > { %8947 = vmatpush3.xpose.msk.msra.mxu1 %vm970_vm2, %v826_v40  ;;  %8957 = vmatpush3.xpose.msk.msra.mxu0 %vm970_vm2, %v836_v41  ;;  %v851_v52 = vadd.f32 %v8915_v43, %v8283_v27  ;;  %v10156_v61 = vadd.f32 %v8929_v60, %v10150_v55 }
 0x105   : > { %v845_v46 = vpop.f32.mrf.mxu1  ;;  %8948 = vmatprep.mubr.msk.f32.mxu1 %vm9831_vm1, %v11675_v20  ;;  %8951 = vmatprep.subr.mxu1 %v11675_v20  ;;  %v10158_v62 = vpop.f32.mrf.mxu0 }
 0x106   : > { %v846_v48 = vadd.f32 %v8283_v27, %v845_v46  ;;  %8966 = vmatprep.subr.mxu0 %v11675_v20 }
 0x107   : > { %8949 = vmatmul.mubr.msk.f32.vlgmr.msra.gmra.mxu1 %vm970_vm2, %v710_v45  ;;  %8959 = vmatmul.mubr.msk.f32.vlgmr.msra.gmra.mxu0 %vm970_vm2, %v720_v44  ;;  %v8932_v63 = vpop.f32.mrf.mxu0 }
 0x108   : > { %8952 = vmatpush3.xpose.msk.msra.mxu1 %vm970_vm2, %v831_v47  ;;  %8967 = vmatpush3.xpose.msk.msra.mxu0 %vm970_vm2, %v846_v48  ;;  %v10162_v0 = vadd.f32 %v8932_v63, %v10150_v55 }
 0x109   : > { %8953 = vmatprep.mubr.msk.f32.mxu1 %vm9831_vm1, %v11675_v20  ;;  %8968 = vmatprep.mubr.msk.f32.mxu0 %vm9831_vm1, %v11675_v20  ;;  %v10164_v1 = vpop.f32.mrf.mxu0 }
 0x10a   : > { %8961 = vmatprep.subr.mxu1 %v11675_v20  ;;  %8976 = vmatprep.subr.mxu0 %v11675_v20 }
 0x10b   : > { %8954 = vmatmul.mubr.msk.f32.vlgmr.msra.gmra.mxu1 %vm970_vm2, %v715_v51  ;;  %8969 = vmatmul.mubr.msk.f32.vlgmr.msra.gmra.mxu0 %vm970_vm2, %v730_v50  ;;  %v8935_v2 = vpop.f32.mrf.mxu0 }
 0x10c   : > { %8962 = vmatpush3.xpose.msk.msra.mxu1 %vm970_vm2, %v841_v49  ;;  %8963 = vmatprep.mubr.msk.f32.mxu1 %vm9831_vm1, %v11675_v20  ;;  %v10167_v3 = vadd.f32 %v8935_v2, %v10150_v55 }
 0x10d   : > { %8971 = vmatprep.subr.mxu1 %v11675_v20  ;;  %8978 = vmatprep.mubr.msk.f32.mxu0 %vm9831_vm1, %v11675_v20  ;;  %v10169_v12 = vpop.f32.mrf.mxu0 }
 0x10e   : > { %8977 = vmatpush3.msra.mxu0 %v932_v59 }
 0x10f   : > { %8964 = vmatmul.mubr.msk.f32.vlgmr.msra.gmra.mxu1 %vm970_vm2, %v725_v53  ;;  %8986 = vmatprep.subr.mxu0 %v11675_v20 }
 0x110   : > { %8972 = vmatpush3.xpose.msk.msra.mxu1 %vm970_vm2, %v851_v52  ;;  %8973 = vmatprep.mubr.msk.f32.mxu1 %vm9831_vm1, %v11675_v20 }
 0x111   : > { %8981 = vmatprep.subr.mxu1 %v11675_v20 }
 0x113   : > { %8974 = vmatmul.mubr.msk.f32.vlgmr.msra.gmra.mxu1 %vm970_vm2, %v735_v54 }
 0x114   : > { %8983 = vmatprep.mubr.msk.f32.mxu1 %vm9831_vm1, %v11675_v20  ;;  %8982 = vmatpush3.msra.mxu1 %v937_v57 }
 0x115   : > { %8991 = vmatprep.subr.mxu1 %v11675_v20 }
 0x1bf   : > { %v1043_v4 = vpop.f32.mrf.mxu1 }
 0x1c0   : > { %v1579_v18 = vmul.f32 0.35355338, %v1043_v4 }
 0x1c1   : > { %v8940_v8 = vpop.f32.mrf.mxu1 }
 0x1c2   : > { %v1587_v25 = vsel %vm970_vm2, %v1579_v18, -inf }
 0x1c3   : > { %v1119_v11 = vpop.f32.mrf.mxu1 }
 0x1c4   : > { %v1580_v16 = vmul.f32 0.35355338, %v1119_v11 }
 0x1c5   : > { %v8945_v17 = vpop.f32.mrf.mxu1 }
 0x1c6   : > { %v1590_v19 = vsel %vm970_vm2, %v1580_v16, -inf }
 0x1c7   : > { %v1347_v21 = vpop.f32.mrf.mxu0  ;;  %1591 = vmax.xlane.f32.xlu0 %v1590_v19  ;;  %v1195_v22 = vpop.f32.mrf.mxu1 }
 0x1c8   : > { %v1581_v31 = vmul.f32 0.35355338, %v1195_v22  ;;  %v1583_v36 = vmul.f32 0.35355338, %v1347_v21 }
 0x1c9   : > { %v8950_v23 = vpop.f32.mrf.mxu1  ;;  %v8960_v24 = vpop.f32.mrf.mxu0 }
 0x1ca   : > { %v1593_v37 = vsel %vm970_vm2, %v1581_v31, -inf  ;;  %v1599_v43 = vsel %vm970_vm2, %v1583_v36, -inf }
 0x1cb   : > { %v1499_v26 = vpop.f32.mrf.mxu0  ;;  %1588 = vmax.xlane.f32.xlu0 %v1587_v25  ;;  %v1271_v27 = vpop.f32.mrf.mxu1 }
 0x1cc   : > { %v1582_v28 = vmul.f32 0.35355338, %v1271_v27  ;;  %v1585_v42 = vmul.f32 0.35355338, %v1499_v26 }
 0x1cd   : > { %v8955_v29 = vpop.f32.mrf.mxu1  ;;  %v8970_v30 = vpop.f32.mrf.mxu0 }
 0x1ce   : > { %v1596_v32 = vsel %vm970_vm2, %v1582_v28, -inf  ;;  %v1605_v45 = vsel %vm970_vm2, %v1585_v42, -inf }
 0x1cf   : > { %1597 = vmax.xlane.f32.xlu1 %v1596_v32  ;;  %v1423_v33 = vpop.f32.mrf.mxu1 }
 0x1d0   : > { %v1584_v34 = vmul.f32 0.35355338, %v1423_v33 }
 0x1d1   : > { %v8965_v35 = vpop.f32.mrf.mxu1 }
 0x1d2   : > { %v1602_v38 = vsel %vm970_vm2, %v1584_v34, -inf }
 0x1d3   : > { %1594 = vmax.xlane.f32.xlu1 %v1593_v37  ;;  %1603 = vmax.xlane.f32.xlu0 %v1602_v38  ;;  %v1575_v39 = vpop.f32.mrf.mxu1 }
 0x1d4   : > { %v1586_v40 = vmul.f32 0.35355338, %v1575_v39 }
 0x1d5   : > { %v8975_v41 = vpop.f32.mrf.mxu1 }
 0x1d6   : > { %v1608_v44 = vsel %vm970_vm2, %v1586_v40, -inf }
 0x1d7   : > { %1600 = vmax.xlane.f32.xlu1 %v1599_v43  ;;  %1609 = vmax.xlane.f32.xlu0 %v1608_v44 }
 0x1db   : > { %1606 = vmax.xlane.f32.xlu1 %v1605_v45 }
 0x250   : > { %v1592_v46 = vpop.xlane.xlu0 %1591 }
 0x251   : > { %v1612_v47 = vsub.f32 %v1580_v16, %v1592_v46 }
 0x253   : > { %v1621_v48 = vmul.f32 1.442695, %v1612_v47 }
 0x254   : > { %v1589_v49 = vpop.xlane.xlu0 %1588 }
 0x255   : > { %9562 = vpow2.f32 %v1621_v48  ;;  %v1611_v50 = vsub.f32 %v1579_v18, %v1589_v49  ;;  %v942_v49 = vadd.f32 %v10150_v55, %v10158_v62 }
 0x257   : > { %v1619_v51 = vmul.f32 1.442695, %v1611_v50 }
 0x258   : > { %v1598_v52 = vpop.xlane.xlu1 %1597 }
 0x259   : > { %9564 = vpow2.f32 %v1619_v51  ;;  %v1614_v53 = vsub.f32 %v1582_v28, %v1598_v52 }
 0x25b   : > { %v1625_v54 = vmul.f32 1.442695, %v1614_v53 }
 0x25c   : > { %v1595_v56 = vpop.xlane.xlu1 %1594  ;;  %v1604_v57 = vpop.xlane.xlu0 %1603 }
 0x25d   : > { %9566 = vpow2.f32 %v1625_v54  ;;  %v1613_v58 = vsub.f32 %v1581_v31, %v1595_v56  ;;  %v1616_v59 = vsub.f32 %v1584_v34, %v1604_v57  ;;  %v952_v54 = vadd.f32 %v10150_v55, %v10164_v1 }
 0x25f   : > { %v1623_v60 = vmul.f32 1.442695, %v1613_v58  ;;  %v1629_v63 = vmul.f32 1.442695, %v1616_v59  ;;  %v962_v59 = vadd.f32 %v10150_v55, %v10169_v12  ;;  %v8340_v12 = vld [vmem:[%s11715_s17 + $0x28] sm:$0xff] }
 0x260   : > { %v1601_v2 = vpop.xlane.xlu1 %1600  ;;  %v1610_v4 = vpop.xlane.xlu0 %1609 }
 0x261   : > { %9568 = vpow2.f32 %v1623_v60  ;;  %v1615_v8 = vsub.f32 %v1583_v36, %v1601_v2  ;;  %v1618_v11 = vsub.f32 %v1586_v40, %v1610_v4  ;;  %v8327_v4 = vld [vmem:[%s11712_s26 + $0x30] sm:$0xff] }
 0x262   : > { %v9563_v16 = vpop.eup %9562  ;;  %9570 = vpow2.f32 %v1629_v63  ;;  %v8328_v63 = vld [vmem:[%s11712_s26 + $0x38] sm:$0xff] }
 0x263   : > { %v1627_v17 = vmul.f32 1.442695, %v1615_v8  ;;  %v1633_v18 = vmul.f32 1.442695, %v1618_v11  ;;  %v1638_v19 = vsel %vm970_vm2, %v9563_v16, 0.0  ;;  %v8339_v8 = vld [vmem:[%s11715_s17 + $0x20] sm:$0xff] }
 0x264   : > { %v1607_v21 = vpop.xlane.xlu1 %1606  ;;  %1639 = vadd.xlane.f32.xlu0 %v1638_v19  ;;  %v8326_v11 = vld [vmem:[%s11712_s26 + $0x28] sm:$0xff] }
 0x265   : > { %9572 = vpow2.f32 %v1627_v17  ;;  %v1617_v22 = vsub.f32 %v1585_v42, %v1607_v21  ;;  %v8356_v17 = vld [vmem:[%s11716_s3 + $0x38] sm:$0xff]  ;;  %v8354_v19 = vld [vmem:[%s11716_s3 + $0x28] sm:$0xff] }
 0x266   : > { %v9565_v23 = vpop.eup %9564  ;;  %9574 = vpow2.f32 %v1633_v18  ;;  %v8355_v18 = vld [vmem:[%s11716_s3 + $0x30] sm:$0xff] }
 0x267   : > { %v1631_v24 = vmul.f32 1.442695, %v1617_v22  ;;  %v1635_v25 = vsel %vm970_vm2, %v9565_v23, 0.0 }
 0x268   : > { %1636 = vadd.xlane.f32.xlu1 %v1635_v25 }
 0x269   : > { %9576 = vpow2.f32 %v1631_v24 }
 0x26a   : > { %v9567_v26 = vpop.eup %9566 }
 0x26b   : > { %v1644_v27 = vsel %vm970_vm2, %v9567_v26, 0.0 }
 0x26c   : > { %1645 = vadd.xlane.f32.xlu0 %v1644_v27 }
 0x26e   : > { %v9569_v28 = vpop.eup %9568 }
 0x26f   : > { %v9571_v29 = vpop.eup %9570  ;;  %v1641_v30 = vsel %vm970_vm2, %v9569_v28, 0.0 }
 0x270   : > { %1642 = vadd.xlane.f32.xlu1 %v1641_v30  ;;  %v1650_v31 = vsel %vm970_vm2, %v9571_v29, 0.0 }
 0x271   : > { %1651 = vadd.xlane.f32.xlu0 %v1650_v31  ;;  %v8344_v31 = vld [vmem:[%s11652_s5 + $0x1] ss:$0 sm:$0xff] }
 0x272   : > { %v9573_v32 = vpop.eup %9572 }
 0x273   : > { %v9575_v33 = vpop.eup %9574  ;;  %v1647_v34 = vsel %vm970_vm2, %v9573_v32, 0.0 }
 0x274   : > { %1648 = vadd.xlane.f32.xlu1 %v1647_v34  ;;  %v1656_v35 = vsel %vm970_vm2, %v9575_v33, 0.0 }
 0x275   : > { %1657 = vadd.xlane.f32.xlu0 %v1656_v35 }
 0x276   : > { %v10186_v36 = vpop.eup %9576 }
 0x277   : > { %v1653_v37 = vsel %vm970_vm2, %v10186_v36, 0.0 }
 0x278   : > { %1654 = vadd.xlane.f32.xlu1 %v1653_v37 }
 0x2ed   : > { %v1640_v38 = vpop.xlane.xlu0 %1639 }
 0x2ee   : > { %9578 = vrcp.f32 %v1640_v38 }
 0x2f1   : > { %v1637_v39 = vpop.xlane.xlu1 %1636 }
 0x2f2   : > { %9580 = vrcp.f32 %v1637_v39 }
 0x2f5   : > { %v1646_v40 = vpop.xlane.xlu0 %1645 }
 0x2f6   : > { %9582 = vrcp.f32 %v1646_v40 }
 0x2f9   : > { %v1643_v41 = vpop.xlane.xlu1 %1642 }
 0x2fa   : > { %9584 = vrcp.f32 %v1643_v41  ;;  %v1652_v42 = vpop.xlane.xlu0 %1651 }
 0x2fb   : > { %v9579_v43 = vpop.eup %9578  ;;  %9586 = vrcp.f32 %v1652_v42 }
 0x2fc   : > { %v10190_v44 = vmul.f32 %v9579_v43, %v9563_v16  ;;  %v8325_v16 = vld [vmem:[%s11712_s26 + $0x20] sm:$0xff] }
 0x2fd   : > { %v1649_v45 = vpop.xlane.xlu1 %1648 }
 0x2fe   : > { %11718 = vst [vmem:[#allocation14_spill] sm:$0xff] %v10190_v44  ;;  %9588 = vrcp.f32 %v1649_v45  ;;  %v1658_v46 = vpop.xlane.xlu0 %1657  ;;  %8984 = vmatmul.mubr.msk.f32.vlgmr.msra.gmra.mxu1 %vm970_vm2, %v10190_v44 }
 0x2ff   : > { %v9581_v47 = vpop.eup %9580  ;;  %9590 = vrcp.f32 %v1658_v46  ;;  %8992 = vmatpush3.msra.mxu1 %v10156_v61  ;;  %8993 = vmatprep.mubr.msk.f32.mxu1 %vm9831_vm1, %v11675_v20 }
 0x300   : > { %v10197_v48 = vmul.f32 %v9581_v47, %v9565_v23  ;;  %9001 = vmatprep.subr.mxu1 %v11675_v20 }
 0x301   : > { %v1655_v50 = vpop.xlane.xlu1 %1654 }
 0x302   : > { %11719 = vst [vmem:[#allocation15_spill] sm:$0xff] %v10197_v48  ;;  %9592 = vrcp.f32 %v1655_v50  ;;  %8979 = vmatmul.mubr.msk.f32.vlgmr.msra.gmra.mxu0 %vm970_vm2, %v10197_v48 }
 0x303   : > { %v9583_v51 = vpop.eup %9582  ;;  %8987 = vmatpush3.msra.mxu0 %v942_v49  ;;  %8988 = vmatprep.mubr.msk.f32.mxu0 %vm9831_vm1, %v11675_v20 }
 0x304   : > { %v10206_v61 = vmul.f32 %v9583_v51, %v9567_v26  ;;  %8996 = vmatprep.subr.mxu0 %v11675_v20 }
 0x306   : > { %11720 = vst [vmem:[#allocation16_spill] sm:$0xff] %v10206_v61  ;;  %8994 = vmatmul.mubr.msk.f32.vlgmr.msra.gmra.mxu1 %vm970_vm2, %v10206_v61 }
 0x307   : > { %v9585_v52 = vpop.eup %9584  ;;  %9002 = vmatpush3.msra.mxu1 %v10162_v0  ;;  %9003 = vmatprep.mubr.msk.f32.mxu1 %vm9831_vm1, %v11675_v20  ;;  %v8342_v0 = vld [vmem:[%s11715_s17 + $0x38] sm:$0xff] }
 0x308   : > { %v9587_v62 = vpop.eup %9586  ;;  %9011 = vmatprep.subr.mxu1 %v11675_v20  ;;  %v10215_v53 = vmul.f32 %v9585_v52, %v9569_v28 }
 0x309   : > { %v10219_v56 = vmul.f32 %v9587_v62, %v9571_v29 }
 0x30a   : > { %11721 = vst [vmem:[#allocation17_spill] sm:$0xff] %v10215_v53  ;;  %8989 = vmatmul.mubr.msk.f32.vlgmr.msra.gmra.mxu0 %vm970_vm2, %v10215_v53 }
 0x30b   : > { %11722 = vst [vmem:[#allocation18_spill] sm:$0xff] %v10219_v56  ;;  %v9589_v57 = vpop.eup %9588  ;;  %8997 = vmatpush3.msra.mxu0 %v952_v54  ;;  %9004 = vmatmul.mubr.msk.f32.vlgmr.msra.gmra.mxu1 %vm970_vm2, %v10219_v56 }
 0x30c   : > { %v9591_v58 = vpop.eup %9590  ;;  %9012 = vmatpush3.msra.mxu1 %v10167_v3  ;;  %8998 = vmatprep.mubr.msk.f32.mxu0 %vm9831_vm1, %v11675_v20  ;;  %v10231_v1 = vmul.f32 %v9589_v57, %v9573_v32  ;;  %v8341_v3 = vld [vmem:[%s11715_s17 + $0x30] sm:$0xff] }
 0x30d   : > { %9006 = vmatprep.subr.mxu0 %v11675_v20  ;;  %9013 = vmatprep.mubr.msk.f32.mxu1 %vm9831_vm1, %v11675_v20  ;;  %v10238_v60 = vmul.f32 %v9591_v58, %v9575_v33 }
 0x30e   : > { %11723 = vst [vmem:[#allocation19_spill] sm:$0xff] %v10231_v1  ;;  %9036 = vmatprep.subr.mxu1 %v8342_v0  ;;  %8999 = vmatmul.mubr.msk.f32.vlgmr.msra.gmra.mxu0 %vm970_vm2, %v10231_v1 }
 0x30f   : > { %11724 = vst [vmem:[#allocation20_spill] sm:$0xff] %v10238_v60  ;;  %v9593_v55 = vpop.eup %9592  ;;  %9007 = vmatpush3.msra.mxu0 %v962_v59  ;;  %9014 = vmatmul.mubr.msk.f32.vlgmr.msra.gmra.mxu1 %vm970_vm2, %v10238_v60 }
 0x310   : > { %9037 = vmatpush3.msra.mxu1 %v8342_v0  ;;  %9008 = vmatprep.mubr.msk.f32.mxu0 %vm9831_vm1, %v11675_v20  ;;  %v10256_v2 = vmul.f32 %v9593_v55, %v10186_v36  ;;  %v8330_v36 = vld [vmem:[%s11717_s4 + $0x1] ss:$0 sm:$0xff] }
 0x311   : > { %9038 = vmatprep.subr.mxu1 %v8341_v3  ;;  %9016 = vmatprep.subr.mxu0 %v8328_v63 }
 0x312   : > { %11725 = vst [vmem:[#allocation21_spill] sm:$0xff] %v10256_v2  ;;  %9039 = vmatpush3.msra.mxu1 %v8341_v3  ;;  %9009 = vmatmul.mubr.msk.f32.vlgmr.msra.gmra.mxu0 %vm970_vm2, %v10256_v2 }
 0x313   : > { %9040 = vmatprep.subr.mxu1 %v8340_v12  ;;  %9017 = vmatpush3.msra.mxu0 %v8328_v63 }
 0x314   : > { %9041 = vmatpush3.msra.mxu1 %v8340_v12  ;;  %9018 = vmatprep.subr.mxu0 %v8327_v4 }
 0x315   : > { %9042 = vmatprep.subr.mxu1 %v8339_v8  ;;  %9019 = vmatpush3.msra.mxu0 %v8327_v4 }
 0x316   : > { %9043 = vmatpush3.msra.mxu1 %v8339_v8  ;;  %9044 = vmatprep.mubr.msk.f32.mxu1 %vm608_vm0, %v10019_v9 }
 0x317   : > { %9020 = vmatprep.subr.mxu0 %v8326_v11  ;;  %9045 = vmatmul.mubr.msk.f32.vlgmr.msra.gmra.mxu1 %vm608_vm0, %v10035_v13 }
 0x318   : > { %9021 = vmatpush3.msra.mxu0 %v8326_v11  ;;  %9024 = vmatprep.mubr.msk.f32.mxu0 %vm608_vm0, %v10019_v9 }
 0x319   : > { %9022 = vmatprep.subr.mxu0 %v8325_v16  ;;  %9047 = vmatprep.mubr.msk.f32.mxu1 %vm608_vm0, %v10044_v14 }
 0x31a   : > { %9023 = vmatpush3.msra.mxu0 %v8325_v16  ;;  %9076 = vmatprep.subr.mxu1 %v11675_v20  ;;  %v10403_v16 = vld [vmem:[%s11653_s6 + $0x1] ss:$0 sm:$0xff] }
 0x31b   : > { %9025 = vmatmul.mubr.msk.f32.vlgmr.msra.gmra.mxu0 %vm608_vm0, %v10035_v13  ;;  %9048 = vmatmul.mubr.msk.f32.gmra.mxu1 %vm608_vm0, %v10053_v15 }
 0x31c   : > { %9027 = vmatprep.mubr.msk.f32.mxu0 %vm608_vm0, %v10044_v14  ;;  %9050 = vmatprep.mubr.msk.f32.mxu1 %vm608_vm0, %v10003_v5 }
 0x31d   : > { %9056 = vmatprep.subr.mxu0 %v8356_v17 }
 0x31e   : > { %9057 = vmatpush3.msra.mxu0 %v8356_v17 }
 0x31f   : > { %9028 = vmatmul.mubr.msk.f32.gmra.mxu0 %vm608_vm0, %v10053_v15  ;;  %9051 = vmatmul.mubr.msk.f32.gmra.mxu1 %vm608_vm0, %v10006_v6 }
 0x320   : > { %9030 = vmatprep.mubr.msk.f32.mxu0 %vm608_vm0, %v10003_v5  ;;  %9053 = vmatprep.mubr.msk.f32.mxu1 %vm608_vm0, %v10009_v7 }
 0x321   : > { %9058 = vmatprep.subr.mxu0 %v8355_v18 }
 0x322   : > { %9059 = vmatpush3.msra.mxu0 %v8355_v18 }
 0x323   : > { %9031 = vmatmul.mubr.msk.f32.gmra.mxu0 %vm608_vm0, %v10006_v6  ;;  %9054 = vmatmul.mubr.msk.f32.gmra.mxu1 %vm608_vm0, %v10024_v10 }
 0x324   : > { %9033 = vmatprep.mubr.msk.f32.mxu0 %vm608_vm0, %v10009_v7  ;;  %9078 = vmatprep.mubr.msk.f32.mxu1 %vm9831_vm1, %v11675_v20 }
 0x325   : > { %9060 = vmatprep.subr.mxu0 %v8354_v19 }
 0x326   : > { %9061 = vmatpush3.msra.mxu0 %v8354_v19 }
 0x327   : > { %9034 = vmatmul.mubr.msk.f32.gmra.mxu0 %vm608_vm0, %v10024_v10 }
 0x328   : > { %9064 = vmatprep.mubr.msk.f32.mxu0 %vm608_vm0, %v10019_v9  ;;  %v8353_v9 = vld [vmem:[%s11716_s3 + $0x20] sm:$0xff] }
 0x329   : > { %9062 = vmatprep.subr.mxu0 %v8353_v9 }
 0x32a   : > { %9063 = vmatpush3.msra.mxu0 %v8353_v9 }
 0x32b   : > { %9065 = vmatmul.mubr.msk.f32.vlgmr.msra.gmra.mxu0 %vm608_vm0, %v10035_v13  ;;  %9096 = vmatprep.subr.mxu0 %v11675_v20 }
 0x32c   : > { %9067 = vmatprep.mubr.msk.f32.mxu0 %vm608_vm0, %v10044_v14 }
 0x32f   : > { %9068 = vmatmul.mubr.msk.f32.gmra.mxu0 %vm608_vm0, %v10053_v15 }
 0x330   : > { %9070 = vmatprep.mubr.msk.f32.mxu0 %vm608_vm0, %v10003_v5 }
 0x333   : > { %9071 = vmatmul.mubr.msk.f32.gmra.mxu0 %vm608_vm0, %v10006_v6 }
 0x334   : > { %9073 = vmatprep.mubr.msk.f32.mxu0 %vm608_vm0, %v10009_v7 }
 0x337   : > { %9074 = vmatmul.mubr.msk.f32.gmra.mxu0 %vm608_vm0, %v10024_v10 }
 0x338   : > { %9098 = vmatprep.mubr.msk.f32.mxu0 %vm9831_vm1, %v11675_v20 }
 0x3be   : > { %v10338_v13 = vpop.f32.mrf.mxu1 }
 0x3c0   : > { %v8985_v14 = vpop.f32.mrf.mxu1 }
 0x3c2   : > { %v10340_v21 = vpop.f32.mrf.mxu0 }
 0x3c4   : > { %v8980_v15 = vpop.f32.mrf.mxu0 }
 0x3c6   : > { %v10342_v22 = vpop.f32.mrf.mxu1 }
 0x3c8   : > { %v8995_v5 = vpop.f32.mrf.mxu1 }
 0x3ca   : > { %v10344_v23 = vpop.f32.mrf.mxu0 }
 0x3cb   : > { %v10346_v6 = vpop.f32.mrf.mxu1 }
 0x3cc   : > { %v8990_v7 = vpop.f32.mrf.mxu0 }
 0x3cd   : > { %v9005_v24 = vpop.f32.mrf.mxu1 }
 0x3ce   : > { %v10348_v25 = vpop.f32.mrf.mxu0 }
 0x3cf   : > { %v10350_v10 = vpop.f32.mrf.mxu1 }
 0x3d0   : > { %v9000_v26 = vpop.f32.mrf.mxu0 }
 0x3d1   : > { %v9015_v27 = vpop.f32.mrf.mxu1 }
 0x3d2   : > { %v10352_v28 = vpop.f32.mrf.mxu0 }
 0x3d4   : > { %v9010_v29 = vpop.f32.mrf.mxu0 }
 0x3d7   : > { %v9046_v30 = vpop.f32.mrf.mxu1 }
 0x3d8   : > { %v2462_v40 = vadd.f32 %v9046_v30, %v8344_v31 }
 0x3d9   : > { %v2456_v32 = vpop.f32.mrf.mxu1 }
 0x3da   : > { %v2457_v33 = vadd.f32 %v8344_v31, %v2456_v32 }
 0x3db   : > { %v9026_v34 = vpop.f32.mrf.mxu0  ;;  %v9049_v35 = vpop.f32.mrf.mxu1 }
 0x3dc   : > { %9077 = vmatpush3.xpose.msk.msra.mxu1 %vm970_vm2, %v2457_v33  ;;  %v2344_v47 = vadd.f32 %v9026_v34, %v8330_v36  ;;  %v2472_v58 = vadd.f32 %v9049_v35, %v8344_v31 }
 0x3dd   : > { %v2338_v37 = vpop.f32.mrf.mxu0  ;;  %9081 = vmatprep.subr.mxu1 %v11675_v20  ;;  %v2466_v38 = vpop.f32.mrf.mxu1 }
 0x3de   : > { %v2339_v39 = vadd.f32 %v8330_v36, %v2338_v37  ;;  %v2467_v43 = vadd.f32 %v8344_v31, %v2466_v38 }
 0x3df   : > { %v9029_v41 = vpop.f32.mrf.mxu0  ;;  %v9052_v42 = vpop.f32.mrf.mxu1 }
 0x3e0   : > { %9079 = vmatmul.mubr.msk.f32.vlgmr.msra.gmra.mxu1 %vm970_vm2, %v2339_v39  ;;  %v2482_v3 = vadd.f32 %v9052_v42, %v8344_v31  ;;  %v2354_v55 = vadd.f32 %v9029_v41, %v8330_v36 }
 0x3e1   : > { %9082 = vmatpush3.xpose.msk.msra.mxu1 %vm970_vm2, %v2462_v40  ;;  %v2348_v45 = vpop.f32.mrf.mxu0  ;;  %9083 = vmatprep.mubr.msk.f32.mxu1 %vm9831_vm1, %v11675_v20  ;;  %v2476_v46 = vpop.f32.mrf.mxu1 }
 0x3e2   : > { %9086 = vmatprep.subr.mxu1 %v11675_v20  ;;  %v2477_v49 = vadd.f32 %v8344_v31, %v2476_v46  ;;  %v2349_v54 = vadd.f32 %v8330_v36, %v2348_v45 }
 0x3e3   : > { %v9032_v50 = vpop.f32.mrf.mxu0  ;;  %v9055_v51 = vpop.f32.mrf.mxu1 }
 0x3e4   : > { %9084 = vmatmul.mubr.msk.f32.vlgmr.msra.gmra.mxu1 %vm970_vm2, %v2344_v47  ;;  %9097 = vmatpush3.xpose.msk.msra.mxu0 %vm970_vm2, %v2477_v49  ;;  %v2364_v4 = vadd.f32 %v9032_v50, %v8330_v36  ;;  %v2492_v8 = vadd.f32 %v9055_v51, %v8344_v31 }
 0x3e5   : > { %9087 = vmatpush3.xpose.msk.msra.mxu1 %vm970_vm2, %v2467_v43  ;;  %9088 = vmatprep.mubr.msk.f32.mxu1 %vm9831_vm1, %v11675_v20  ;;  %v2358_v52 = vpop.f32.mrf.mxu0  ;;  %v2486_v62 = vpop.f32.mrf.mxu1 }
 0x3e6   : > { %9091 = vmatprep.subr.mxu1 %v11675_v20  ;;  %v2359_v57 = vadd.f32 %v8330_v36, %v2358_v52  ;;  %v2487_v0 = vadd.f32 %v8344_v31, %v2486_v62  ;;  %9106 = vmatprep.subr.mxu0 %v11675_v20 }
 0x3e7   : > { %v9035_v59 = vpop.f32.mrf.mxu0 }
 0x3e8   : > { %9089 = vmatmul.mubr.msk.f32.vlgmr.msra.gmra.mxu1 %vm970_vm2, %v2349_v54  ;;  %9099 = vmatmul.mubr.msk.f32.vlgmr.msra.gmra.mxu0 %vm970_vm2, %v2359_v57  ;;  %v2374_v11 = vadd.f32 %v9035_v59, %v8330_v36 }
 0x3e9   : > { %9092 = vmatpush3.xpose.msk.msra.mxu1 %vm970_vm2, %v2472_v58  ;;  %9093 = vmatprep.mubr.msk.f32.mxu1 %vm9831_vm1, %v11675_v20  ;;  %v2368_v63 = vpop.f32.mrf.mxu0 }
 0x3ea   : > { %9101 = vmatprep.subr.mxu1 %v11675_v20  ;;  %v2369_v12 = vadd.f32 %v8330_v36, %v2368_v63  ;;  %9107 = vmatpush3.xpose.msk.msra.mxu0 %vm970_vm2, %v2487_v0 }
 0x3eb   : > { %9108 = vmatprep.mubr.msk.f32.mxu0 %vm9831_vm1, %v11675_v20  ;;  %9116 = vmatprep.subr.mxu0 %v11675_v20  ;;  %v9066_v17 = vpop.f32.mrf.mxu0 }
 0x3ec   : > { %9094 = vmatmul.mubr.msk.f32.vlgmr.msra.gmra.mxu1 %vm970_vm2, %v2354_v55  ;;  %v2580_v18 = vadd.f32 %v9066_v17, %v10403_v16 }
 0x3ed   : > { %9102 = vmatpush3.xpose.msk.msra.mxu1 %vm970_vm2, %v2482_v3  ;;  %9103 = vmatprep.mubr.msk.f32.mxu1 %vm9831_vm1, %v11675_v20  ;;  %v2574_v19 = vpop.f32.mrf.mxu0 }
 0x3ee   : > { %9109 = vmatmul.mubr.msk.f32.vlgmr.msra.gmra.mxu0 %vm970_vm2, %v2369_v12  ;;  %9111 = vmatprep.subr.mxu1 %v11675_v20  ;;  %v2575_v9 = vadd.f32 %v10403_v16, %v2574_v19 }
 0x3ef   : > { %9118 = vmatprep.mubr.msk.f32.mxu0 %vm9831_vm1, %v11675_v20  ;;  %v9069_v14 = vpop.f32.mrf.mxu0 }
 0x3f0   : > { %9104 = vmatmul.mubr.msk.f32.vlgmr.msra.gmra.mxu1 %vm970_vm2, %v2364_v4  ;;  %v10409_v15 = vadd.f32 %v9069_v14, %v10403_v16  ;;  %9117 = vmatpush3.msra.mxu0 %v2575_v9 }
 0x3f1   : > { %9112 = vmatpush3.xpose.msk.msra.mxu1 %vm970_vm2, %v2492_v8  ;;  %9113 = vmatprep.mubr.msk.f32.mxu1 %vm9831_vm1, %v11675_v20  ;;  %v2584_v5 = vpop.f32.mrf.mxu0 }
 0x3f2   : > { %9121 = vmatprep.subr.mxu1 %v11675_v20  ;;  %9126 = vmatprep.subr.mxu0 %v11675_v20  ;;  %v10413_v7 = vadd.f32 %v10403_v16, %v2584_v5 }
 0x3f3   : > { %v9072_v24 = vpop.f32.mrf.mxu0 }
 0x3f4   : > { %9114 = vmatmul.mubr.msk.f32.vlgmr.msra.gmra.mxu1 %vm970_vm2, %v2374_v11  ;;  %v10416_v26 = vadd.f32 %v9072_v24, %v10403_v16 }
 0x3f5   : > { %9123 = vmatprep.mubr.msk.f32.mxu1 %vm9831_vm1, %v11675_v20  ;;  %9122 = vmatpush3.msra.mxu1 %v2580_v18  ;;  %v2594_v27 = vpop.f32.mrf.mxu0 }
 0x3f6   : > { %9131 = vmatprep.subr.mxu1 %v11675_v20  ;;  %v10419_v29 = vadd.f32 %v10403_v16, %v2594_v27 }
 0x3f7   : > { %v9075_v30 = vpop.f32.mrf.mxu0 }
 0x3f8   : > { %v10422_v31 = vadd.f32 %v9075_v30, %v10403_v16 }
 0x3f9   : > { %v10425_v37 = vpop.f32.mrf.mxu0 }
 0x4a0   : > { %v2685_v32 = vpop.f32.mrf.mxu1 }
 0x4a1   : > { %v3221_v33 = vmul.f32 0.35355338, %v2685_v32 }
 0x4a2   : > { %v9080_v34 = vpop.f32.mrf.mxu1 }
 0x4a3   : > { %v3229_v35 = vsel %vm970_vm2, %v3221_v33, -inf }
 0x4a4   : > { %3230 = vmax.xlane.f32.xlu1 %v3229_v35  ;;  %v2761_v36 = vpop.f32.mrf.mxu1 }
 0x4a5   : > { %v3222_v38 = vmul.f32 0.35355338, %v2761_v36 }
 0x4a6   : > { %v9085_v39 = vpop.f32.mrf.mxu1 }
 0x4a7   : > { %v3232_v40 = vsel %vm970_vm2, %v3222_v38, -inf }
 0x4a8   : > { %3233 = vmax.xlane.f32.xlu0 %v3232_v40  ;;  %v2837_v41 = vpop.f32.mrf.mxu1  ;;  %v2989_v42 = vpop.f32.mrf.mxu0 }
 0x4a9   : > { %v3223_v43 = vmul.f32 0.35355338, %v2837_v41  ;;  %v3225_v45 = vmul.f32 0.35355338, %v2989_v42 }
 0x4aa   : > { %v9090_v46 = vpop.f32.mrf.mxu1  ;;  %v9100_v47 = vpop.f32.mrf.mxu0 }
 0x4ab   : > { %v3235_v49 = vsel %vm970_vm2, %v3223_v43, -inf  ;;  %v3241_v52 = vsel %vm970_vm2, %v3225_v45, -inf }
 0x4ac   : > { %3236 = vmax.xlane.f32.xlu1 %v3235_v49  ;;  %v2913_v50 = vpop.f32.mrf.mxu1 }
 0x4ad   : > { %v3224_v51 = vmul.f32 0.35355338, %v2913_v50 }
 0x4ae   : > { %v9095_v62 = vpop.f32.mrf.mxu1  ;;  %v3141_v54 = vpop.f32.mrf.mxu0 }
 0x4af   : > { %v3227_v57 = vmul.f32 0.35355338, %v3141_v54  ;;  %v3238_v0 = vsel %vm970_vm2, %v3224_v51, -inf }
 0x4b0   : > { %3242 = vmax.xlane.f32.xlu1 %v3241_v52  ;;  %3239 = vmax.xlane.f32.xlu0 %v3238_v0  ;;  %v3065_v58 = vpop.f32.mrf.mxu1  ;;  %v9110_v59 = vpop.f32.mrf.mxu0 }
 0x4b1   : > { %v3226_v3 = vmul.f32 0.35355338, %v3065_v58  ;;  %v3247_v63 = vsel %vm970_vm2, %v3227_v57, -inf }
 0x4b2   : > { %v9105_v55 = vpop.f32.mrf.mxu1 }
 0x4b3   : > { %v3244_v12 = vsel %vm970_vm2, %v3226_v3, -inf }
 0x4b4   : > { %3248 = vmax.xlane.f32.xlu1 %v3247_v63  ;;  %3245 = vmax.xlane.f32.xlu0 %v3244_v12  ;;  %v3217_v4 = vpop.f32.mrf.mxu1 }
 0x4b5   : > { %v3228_v8 = vmul.f32 0.35355338, %v3217_v4 }
 0x4b6   : > { %v9115_v11 = vpop.f32.mrf.mxu1 }
 0x4b7   : > { %v3250_v17 = vsel %vm970_vm2, %v3228_v8, -inf }
 0x4b8   : > { %3251 = vmax.xlane.f32.xlu0 %v3250_v17 }
 0x52d   : > { %v3231_v18 = vpop.xlane.xlu1 %3230 }
 0x52e   : > { %v3253_v19 = vsub.f32 %v3221_v33, %v3231_v18 }
 0x530   : > { %v3261_v9 = vmul.f32 1.442695, %v3253_v19 }
 0x531   : > { %v3234_v14 = vpop.xlane.xlu0 %3233 }
 0x532   : > { %9594 = vpow2.f32 %v3261_v9  ;;  %v3254_v5 = vsub.f32 %v3222_v38, %v3234_v14 }
 0x534   : > { %v3263_v24 = vmul.f32 1.442695, %v3254_v5 }
 0x535   : > { %v3237_v27 = vpop.xlane.xlu1 %3236 }
 0x536   : > { %9596 = vpow2.f32 %v3263_v24  ;;  %v3255_v30 = vsub.f32 %v3223_v43, %v3237_v27 }
 0x538   : > { %v3265_v32 = vmul.f32 1.442695, %v3255_v30 }
 0x539   : > { %v3243_v34 = vpop.xlane.xlu1 %3242  ;;  %v3240_v35 = vpop.xlane.xlu0 %3239 }
 0x53a   : > { %9598 = vpow2.f32 %v3265_v32  ;;  %v3257_v36 = vsub.f32 %v3225_v45, %v3243_v34  ;;  %v3256_v39 = vsub.f32 %v3224_v51, %v3240_v35 }
 0x53c   : > { %v3269_v40 = vmul.f32 1.442695, %v3257_v36  ;;  %v3267_v41 = vmul.f32 1.442695, %v3256_v39 }
 0x53d   : > { %v3249_v42 = vpop.xlane.xlu1 %3248  ;;  %v3246_v46 = vpop.xlane.xlu0 %3245 }
 0x53e   : > { %9600 = vpow2.f32 %v3269_v40  ;;  %v3259_v33 = vsub.f32 %v3227_v57, %v3249_v42  ;;  %v3258_v47 = vsub.f32 %v3226_v3, %v3246_v46  ;;  %v2605_v42 = vadd.f32 %v10403_v16, %v10425_v37 }
 0x53f   : > { %v9595_v49 = vpop.eup %9594  ;;  %9602 = vpow2.f32 %v3267_v41 }
 0x540   : > { %v3273_v38 = vmul.f32 1.442695, %v3259_v33  ;;  %v3271_v50 = vmul.f32 1.442695, %v3258_v47  ;;  %v3277_v52 = vsel %vm970_vm2, %v9595_v49, 0.0 }
 0x541   : > { %3278 = vadd.xlane.f32.xlu1 %v3277_v52  ;;  %v3252_v43 = vpop.xlane.xlu0 %3251 }
 0x542   : > { %9604 = vpow2.f32 %v3273_v38  ;;  %v3260_v62 = vsub.f32 %v3228_v8, %v3252_v43  ;;  %v8407_v43 = vld [vmem:[%s11715_s17 + $0x50] sm:$0xff] }
 0x543   : > { %v9597_v54 = vpop.eup %9596  ;;  %9606 = vpow2.f32 %v3271_v50  ;;  %v8392_v50 = vld [vmem:[%s11712_s26 + $0x48] sm:$0xff] }
 0x544   : > { %v3275_v45 = vmul.f32 1.442695, %v3260_v62  ;;  %v3280_v51 = vsel %vm970_vm2, %v9597_v54, 0.0  ;;  %v10518_v62 = vld [vmem:[%s9997_s29] sm:$0xff] }
 0x545   : > { %3281 = vadd.xlane.f32.xlu0 %v3280_v51  ;;  %v10533_v51 = vld [vmem:[%s9997_s29 + $0x8] sm:$0xff] }
 0x546   : > { %9608 = vpow2.f32 %v3275_v45  ;;  %v8405_v45 = vld [vmem:[%s11715_s17 + $0x40] sm:$0xff] }
 0x547   : > { %v9599_v0 = vpop.eup %9598 }
 0x548   : > { %v3283_v57 = vsel %vm970_vm2, %v9599_v0, 0.0 }
 0x549   : > { %3284 = vadd.xlane.f32.xlu1 %v3283_v57  ;;  %v10548_v57 = vld [vmem:[%s9997_s29 + $0x18] sm:$0xff] }
 0x54b   : > { %v9601_v58 = vpop.eup %9600 }
 0x54c   : > { %v9603_v59 = vpop.eup %9602  ;;  %v3289_v3 = vsel %vm970_vm2, %v9601_v58, 0.0 }
 0x54d   : > { %3290 = vadd.xlane.f32.xlu1 %v3289_v3  ;;  %v3286_v63 = vsel %vm970_vm2, %v9603_v59, 0.0  ;;  %v10567_v3 = vld [vmem:[%s9997_s29 + $0x30] sm:$0xff] }
 0x54e   : > { %3287 = vadd.xlane.f32.xlu0 %v3286_v63  ;;  %v10576_v63 = vld [vmem:[%s9997_s29 + $0x38] sm:$0xff] }
 0x54f   : > { %v9605_v55 = vpop.eup %9604 }
 0x550   : > { %v9607_v12 = vpop.eup %9606  ;;  %v3295_v4 = vsel %vm970_vm2, %v9605_v55, 0.0 }
 0x551   : > { %3296 = vadd.xlane.f32.xlu1 %v3295_v4  ;;  %v3292_v8 = vsel %vm970_vm2, %v9607_v12, 0.0  ;;  %v8420_v4 = vld [vmem:[%s11716_s3 + $0x48] sm:$0xff] }
 0x552   : > { %3293 = vadd.xlane.f32.xlu0 %v3292_v8  ;;  %v8419_v8 = vld [vmem:[%s11716_s3 + $0x40] sm:$0xff] }
 0x553   : > { %v10441_v11 = vpop.eup %9608 }
 0x554   : > { %v3298_v17 = vsel %vm970_vm2, %v10441_v11, 0.0 }
 0x556   : > { %3299 = vadd.xlane.f32.xlu0 %v3298_v17 }
 0x5ca   : > { %v3279_v18 = vpop.xlane.xlu1 %3278 }
 0x5cb   : > { %9610 = vrcp.f32 %v3279_v18 }
 0x5ce   : > { %v3282_v19 = vpop.xlane.xlu0 %3281 }
 0x5cf   : > { %9612 = vrcp.f32 %v3282_v19 }
 0x5d2   : > { %v3285_v9 = vpop.xlane.xlu1 %3284 }
 0x5d3   : > { %9614 = vrcp.f32 %v3285_v9 }
 0x5d6   : > { %v3291_v14 = vpop.xlane.xlu1 %3290 }
 0x5d7   : > { %9616 = vrcp.f32 %v3291_v14  ;;  %v3288_v5 = vpop.xlane.xlu0 %3287 }
 0x5d8   : > { %v9611_v24 = vpop.eup %9610  ;;  %9618 = vrcp.f32 %v3288_v5 }
 0x5d9   : > { %v10445_v27 = vmul.f32 %v9611_v24, %v9595_v49  ;;  %v8393_v49 = vld [vmem:[%s11712_s26 + $0x50] sm:$0xff] }
 0x5da   : > { %v3297_v30 = vpop.xlane.xlu1 %3296 }
 0x5db   : > { %9620 = vrcp.f32 %v3297_v30  ;;  %v3294_v32 = vpop.xlane.xlu0 %3293  ;;  %9119 = vmatmul.mubr.msk.f32.vlgmr.msra.gmra.mxu0 %vm970_vm2, %v10445_v27 }
 0x5dc   : > { %v9613_v34 = vpop.eup %9612  ;;  %9622 = vrcp.f32 %v3294_v32  ;;  %9127 = vmatpush3.msra.mxu0 %v10413_v7  ;;  %9128 = vmatprep.mubr.msk.f32.mxu0 %vm9831_vm1, %v11675_v20 }
 0x5dd   : > { %v10452_v35 = vmul.f32 %v9613_v34, %v9597_v54  ;;  %9136 = vmatprep.subr.mxu0 %v11675_v20  ;;  %v8406_v54 = vld [vmem:[%s11715_s17 + $0x48] sm:$0xff] }
 0x5df   : > { %v3300_v36 = vpop.xlane.xlu0 %3299  ;;  %9124 = vmatmul.mubr.msk.f32.vlgmr.msra.gmra.mxu1 %vm970_vm2, %v10452_v35 }
 0x5e0   : > { %v9615_v39 = vpop.eup %9614  ;;  %9624 = vrcp.f32 %v3300_v36  ;;  %9132 = vmatpush3.msra.mxu1 %v10409_v15  ;;  %9133 = vmatprep.mubr.msk.f32.mxu1 %vm9831_vm1, %v11675_v20 }
 0x5e1   : > { %v10460_v40 = vmul.f32 %v9615_v39, %v9599_v0  ;;  %9141 = vmatprep.subr.mxu1 %v11675_v20  ;;  %v10538_v0 = vld [vmem:[%s9997_s29 + $0x10] sm:$0xff] }
 0x5e3   : > { %9129 = vmatmul.mubr.msk.f32.vlgmr.msra.gmra.mxu0 %vm970_vm2, %v10460_v40 }
 0x5e4   : > { %v9617_v7 = vpop.eup %9616  ;;  %9137 = vmatpush3.msra.mxu0 %v10419_v29  ;;  %9138 = vmatprep.mubr.msk.f32.mxu0 %vm9831_vm1, %v11675_v20  ;;  %v8394_v29 = vld [vmem:[%s11712_s26 + $0x58] sm:$0xff] }
 0x5e5   : > { %v9619_v41 = vpop.eup %9618  ;;  %9146 = vmatprep.subr.mxu0 %v11675_v20  ;;  %v10469_v15 = vmul.f32 %v9617_v7, %v9601_v58  ;;  %v10553_v58 = vld [vmem:[%s9997_s29 + $0x20] sm:$0xff] }
 0x5e6   : > { %v10473_v46 = vmul.f32 %v9619_v41, %v9603_v59  ;;  %v10562_v59 = vld [vmem:[%s9997_s29 + $0x28] sm:$0xff] }
 0x5e7   : > { %9139 = vmatmul.mubr.msk.f32.vlgmr.msra.gmra.mxu0 %vm970_vm2, %v10469_v15 }
 0x5e8   : > { %v9621_v33 = vpop.eup %9620  ;;  %9134 = vmatmul.mubr.msk.f32.vlgmr.msra.gmra.mxu1 %vm970_vm2, %v10473_v46  ;;  %9147 = vmatpush3.msra.mxu0 %v2605_v42 }
 0x5e9   : > { %v9623_v47 = vpop.eup %9622  ;;  %9142 = vmatpush3.msra.mxu1 %v10416_v26  ;;  %9143 = vmatprep.mubr.msk.f32.mxu1 %vm9831_vm1, %v11675_v20  ;;  %v10485_v16 = vmul.f32 %v9621_v33, %v9605_v55  ;;  %v8408_v26 = vld [vmem:[%s11715_s17 + $0x58] sm:$0xff] }
 0x5ea   : > { %9148 = vmatprep.mubr.msk.f32.mxu0 %vm9831_vm1, %v11675_v20  ;;  %9151 = vmatprep.subr.mxu1 %v11675_v20  ;;  %v10490_v37 = vmul.f32 %v9623_v47, %v9607_v12  ;;  %v8422_v55 = vld [vmem:[%s11716_s3 + $0x58] sm:$0xff]  ;;  %v8421_v12 = vld [vmem:[%s11716_s3 + $0x50] sm:$0xff] }
 0x5eb   : > { %11726 = vst [vmem:[#allocation22_spill] sm:$0xff] %v10485_v16  ;;  %9149 = vmatmul.mubr.msk.f32.vlgmr.msra.gmra.mxu0 %vm970_vm2, %v10485_v16  ;;  %9156 = vmatprep.subr.mxu0 %v8394_v29 }
 0x5ec   : > { %9144 = vmatmul.mubr.msk.f32.vlgmr.msra.gmra.mxu1 %vm970_vm2, %v10490_v37  ;;  %9157 = vmatpush3.msra.mxu0 %v8394_v29 }
 0x5ed   : > { %v9625_v38 = vpop.eup %9624  ;;  %9152 = vmatpush3.msra.mxu1 %v10422_v31  ;;  %9153 = vmatprep.mubr.msk.f32.mxu1 %vm9831_vm1, %v11675_v20  ;;  %v8391_v31 = vld [vmem:[%s11712_s26 + $0x40] sm:$0xff] }
 0x5ee   : > { %9176 = vmatprep.subr.mxu1 %v8408_v26  ;;  %v10509_v52 = vmul.f32 %v9625_v38, %v10441_v11  ;;  %9158 = vmatprep.subr.mxu0 %v8393_v49 }
 0x5ef   : > { %9159 = vmatpush3.msra.mxu0 %v8393_v49  ;;  %9164 = vmatprep.mubr.msk.f32.mxu0 %vm608_vm0, %v10518_v62  ;;  %v8410_v49 = vld [vmem:[%s11652_s5 + $0x2] ss:$0 sm:$0xff] }
 0x5f0   : > { %9154 = vmatmul.mubr.msk.f32.vlgmr.msra.gmra.mxu1 %vm970_vm2, %v10509_v52  ;;  %9160 = vmatprep.subr.mxu0 %v8392_v50 }
 0x5f1   : > { %9177 = vmatpush3.msra.mxu1 %v8408_v26  ;;  %9161 = vmatpush3.msra.mxu0 %v8392_v50  ;;  %v8396_v50 = vld [vmem:[%s11717_s4 + $0x2] ss:$0 sm:$0xff] }
 0x5f2   : > { %9178 = vmatprep.subr.mxu1 %v8407_v43  ;;  %9162 = vmatprep.subr.mxu0 %v8391_v31 }
 0x5f3   : > { %9179 = vmatpush3.msra.mxu1 %v8407_v43  ;;  %9184 = vmatprep.mubr.msk.f32.mxu1 %vm608_vm0, %v10518_v62 }
 0x5f4   : > { %9180 = vmatprep.subr.mxu1 %v8406_v54  ;;  %9163 = vmatpush3.msra.mxu0 %v8391_v31 }
 0x5f5   : > { %9181 = vmatpush3.msra.mxu1 %v8406_v54  ;;  %9165 = vmatmul.mubr.msk.f32.vlgmr.msra.gmra.mxu0 %vm608_vm0, %v10533_v51 }
 0x5f6   : > { %9182 = vmatprep.subr.mxu1 %v8405_v45  ;;  %9167 = vmatprep.mubr.msk.f32.mxu0 %vm608_vm0, %v10538_v0 }
 0x5f7   : > { %9183 = vmatpush3.msra.mxu1 %v8405_v45  ;;  %9196 = vmatprep.subr.mxu0 %v8422_v55 }
 0x5f8   : > { %9185 = vmatmul.mubr.msk.f32.vlgmr.msra.gmra.mxu1 %vm608_vm0, %v10533_v51  ;;  %9216 = vmatprep.subr.mxu1 %v11675_v20 }
 0x5f9   : > { %9187 = vmatprep.mubr.msk.f32.mxu1 %vm608_vm0, %v10538_v0  ;;  %9168 = vmatmul.mubr.msk.f32.gmra.mxu0 %vm608_vm0, %v10548_v57 }
 0x5fa   : > { %9170 = vmatprep.mubr.msk.f32.mxu0 %vm608_vm0, %v10553_v58  ;;  %9197 = vmatpush3.msra.mxu0 %v8422_v55 }
 0x5fb   : > { %9198 = vmatprep.subr.mxu0 %v8421_v12 }
 0x5fc   : > { %9188 = vmatmul.mubr.msk.f32.gmra.mxu1 %vm608_vm0, %v10548_v57  ;;  %9199 = vmatpush3.msra.mxu0 %v8421_v12 }
 0x5fd   : > { %9190 = vmatprep.mubr.msk.f32.mxu1 %vm608_vm0, %v10553_v58  ;;  %9171 = vmatmul.mubr.msk.f32.gmra.mxu0 %vm608_vm0, %v10562_v59 }
 0x5fe   : > { %9173 = vmatprep.mubr.msk.f32.mxu0 %vm608_vm0, %v10567_v3  ;;  %9200 = vmatprep.subr.mxu0 %v8420_v4 }
 0x5ff   : > { %9201 = vmatpush3.msra.mxu0 %v8420_v4 }
 0x600   : > { %9191 = vmatmul.mubr.msk.f32.gmra.mxu1 %vm608_vm0, %v10562_v59  ;;  %9202 = vmatprep.subr.mxu0 %v8419_v8 }
 0x601   : > { %9193 = vmatprep.mubr.msk.f32.mxu1 %vm608_vm0, %v10567_v3  ;;  %9174 = vmatmul.mubr.msk.f32.gmra.mxu0 %vm608_vm0, %v10576_v63 }
 0x602   : > { %9204 = vmatprep.mubr.msk.f32.mxu0 %vm608_vm0, %v10518_v62  ;;  %9203 = vmatpush3.msra.mxu0 %v8419_v8 }
 0x603   : > { %9236 = vmatprep.subr.mxu0 %v11675_v20 }
 0x604   : > { %9194 = vmatmul.mubr.msk.f32.gmra.mxu1 %vm608_vm0, %v10576_v63 }
 0x605   : > { %9218 = vmatprep.mubr.msk.f32.mxu1 %vm9831_vm1, %v11675_v20  ;;  %9205 = vmatmul.mubr.msk.f32.vlgmr.msra.gmra.mxu0 %vm608_vm0, %v10533_v51 }
 0x606   : > { %9207 = vmatprep.mubr.msk.f32.mxu0 %vm608_vm0, %v10538_v0 }
 0x609   : > { %9208 = vmatmul.mubr.msk.f32.gmra.mxu0 %vm608_vm0, %v10548_v57 }
 0x60a   : > { %9210 = vmatprep.mubr.msk.f32.mxu0 %vm608_vm0, %v10553_v58 }
 0x60d   : > { %9211 = vmatmul.mubr.msk.f32.gmra.mxu0 %vm608_vm0, %v10562_v59 }
 0x60e   : > { %9213 = vmatprep.mubr.msk.f32.mxu0 %vm608_vm0, %v10567_v3 }
 0x611   : > { %9214 = vmatmul.mubr.msk.f32.gmra.mxu0 %vm608_vm0, %v10576_v63 }
 0x612   : > { %9238 = vmatprep.mubr.msk.f32.mxu0 %vm9831_vm1, %v11675_v20 }
 0x69b   : > { %v10615_v11 = vpop.f32.mrf.mxu0 }
 0x69d   : > { %v9120_v17 = vpop.f32.mrf.mxu0 }
 0x69f   : > { %v10617_v18 = vpop.f32.mrf.mxu1 }
 0x6a1   : > { %v9125_v19 = vpop.f32.mrf.mxu1 }
 0x6a3   : > { %v10619_v9 = vpop.f32.mrf.mxu0 }
 0x6a5   : > { %v9130_v14 = vpop.f32.mrf.mxu0 }
 0x6a7   : > { %v10621_v5 = vpop.f32.mrf.mxu0 }
 0x6a8   : > { %v10623_v24 = vpop.f32.mrf.mxu1 }
 0x6a9   : > { %v9140_v30 = vpop.f32.mrf.mxu0 }
 0x6aa   : > { %v9135_v32 = vpop.f32.mrf.mxu1 }
 0x6ab   : > { %v10625_v34 = vpop.f32.mrf.mxu0 }
 0x6ac   : > { %v10627_v36 = vpop.f32.mrf.mxu1 }
 0x6ad   : > { %v9150_v39 = vpop.f32.mrf.mxu0 }
 0x6ae   : > { %v9145_v7 = vpop.f32.mrf.mxu1 }
 0x6b0   : > { %v10629_v41 = vpop.f32.mrf.mxu1 }
 0x6b2   : > { %v9155_v42 = vpop.f32.mrf.mxu1 }
 0x6b5   : > { %v9166_v33 = vpop.f32.mrf.mxu0 }
 0x6b6   : > { %v3986_v19 = vadd.f32 %v9166_v33, %v8396_v50 }
 0x6b7   : > { %v3980_v29 = vpop.f32.mrf.mxu0 }
 0x6b8   : > { %v9186_v47 = vpop.f32.mrf.mxu1  ;;  %v3981_v55 = vadd.f32 %v8396_v50, %v3980_v29 }
 0x6b9   : > { %v9169_v26 = vpop.f32.mrf.mxu0  ;;  %v4104_v4 = vadd.f32 %v9186_v47, %v8410_v49 }
 0x6ba   : > { %v4098_v38 = vpop.f32.mrf.mxu1 }
 0x6bb   : > { %v4099_v43 = vadd.f32 %v8410_v49, %v4098_v38  ;;  %v3990_v31 = vpop.f32.mrf.mxu0 }
 0x6bc   : > { %v9189_v54 = vpop.f32.mrf.mxu1  ;;  %v3991_v42 = vadd.f32 %v8396_v50, %v3990_v31  ;;  %v3996_v31 = vadd.f32 %v9169_v26, %v8396_v50 }
 0x6bd   : > { %9217 = vmatpush3.xpose.msk.msra.mxu1 %vm970_vm2, %v4099_v43  ;;  %v9172_v45 = vpop.f32.mrf.mxu0  ;;  %v4114_v47 = vadd.f32 %v9189_v54, %v8410_v49 }
 0x6be   : > { %v4108_v12 = vpop.f32.mrf.mxu1  ;;  %9221 = vmatprep.subr.mxu1 %v11675_v20  ;;  %v4006_v54 = vadd.f32 %v9172_v45, %v8396_v50 }
 0x6bf   : > { %v4000_v8 = vpop.f32.mrf.mxu0  ;;  %v4109_v30 = vadd.f32 %v8410_v49, %v4108_v12 }
 0x6c0   : > { %9219 = vmatmul.mubr.msk.f32.vlgmr.msra.gmra.mxu1 %vm970_vm2, %v3981_v55  ;;  %v9192_v17 = vpop.f32.mrf.mxu1  ;;  %v4001_v29 = vadd.f32 %v8396_v50, %v4000_v8 }
 0x6c1   : > { %9222 = vmatpush3.xpose.msk.msra.mxu1 %vm970_vm2, %v4104_v4  ;;  %9223 = vmatprep.mubr.msk.f32.mxu1 %vm9831_vm1, %v11675_v20  ;;  %v9175_v39 = vpop.f32.mrf.mxu0  ;;  %v4124_v55 = vadd.f32 %v9192_v17, %v8410_v49 }
 0x6c2   : > { %9226 = vmatprep.subr.mxu1 %v11675_v20  ;;  %v4118_v14 = vpop.f32.mrf.mxu1  ;;  %v4016_v26 = vadd.f32 %v9175_v39, %v8396_v50 }
 0x6c3   : > { %v4119_v32 = vadd.f32 %v8410_v49, %v4118_v14  ;;  %v4010_v43 = vpop.f32.mrf.mxu0 }
 0x6c4   : > { %9224 = vmatmul.mubr.msk.f32.vlgmr.msra.gmra.mxu1 %vm970_vm2, %v3986_v19  ;;  %v9195_v7 = vpop.f32.mrf.mxu1  ;;  %v4011_v12 = vadd.f32 %v8396_v50, %v4010_v43 }
 0x6c5   : > { %9227 = vmatpush3.xpose.msk.msra.mxu1 %vm970_vm2, %v4109_v30  ;;  %9228 = vmatprep.mubr.msk.f32.mxu1 %vm9831_vm1, %v11675_v20  ;;  %v4134_v4 = vadd.f32 %v9195_v7, %v8410_v49  ;;  %v9206_v50 = vpop.f32.mrf.mxu0 }
 0x6c6   : > { %9231 = vmatprep.subr.mxu1 %v11675_v20  ;;  %9237 = vmatpush3.xpose.msk.msra.mxu0 %vm970_vm2, %v4119_v32  ;;  %v4128_v33 = vpop.f32.mrf.mxu1 }
 0x6c7   : > { %v4129_v38 = vadd.f32 %v8410_v49, %v4128_v33  ;;  %9246 = vmatprep.subr.mxu0 %v11675_v20  ;;  %v10680_v49 = vld [vmem:[%s11653_s6 + $0x2] ss:$0 sm:$0xff]  ;;  %v4216_v8 = vpop.f32.mrf.mxu0 }
 0x6c8   : > { %9229 = vmatmul.mubr.msk.f32.vlgmr.msra.gmra.mxu1 %vm970_vm2, %v3991_v42  ;;  %v4222_v45 = vadd.f32 %v9206_v50, %v10680_v49  ;;  %v4217_v17 = vadd.f32 %v10680_v49, %v4216_v8 }
 0x6c9   : > { %9232 = vmatpush3.xpose.msk.msra.mxu1 %vm970_vm2, %v4114_v47  ;;  %9233 = vmatprep.mubr.msk.f32.mxu1 %vm9831_vm1, %v11675_v20  ;;  %v9209_v19 = vpop.f32.mrf.mxu0 }
 0x6ca   : > { %9239 = vmatmul.mubr.msk.f32.vlgmr.msra.gmra.mxu0 %vm970_vm2, %v4001_v29  ;;  %9241 = vmatprep.subr.mxu1 %v11675_v20  ;;  %v10686_v14 = vadd.f32 %v9209_v19, %v10680_v49 }
 0x6cb   : > { %9247 = vmatpush3.xpose.msk.msra.mxu0 %vm970_vm2, %v4129_v38  ;;  %9248 = vmatprep.mubr.msk.f32.mxu0 %vm9831_vm1, %v11675_v20  ;;  %v4226_v30 = vpop.f32.mrf.mxu0 }
 0x6cc   : > { %9234 = vmatmul.mubr.msk.f32.vlgmr.msra.gmra.mxu1 %vm970_vm2, %v3996_v31  ;;  %9256 = vmatprep.subr.mxu0 %v11675_v20  ;;  %v10690_v32 = vadd.f32 %v10680_v49, %v4226_v30 }
 0x6cd   : > { %9242 = vmatpush3.xpose.msk.msra.mxu1 %vm970_vm2, %v4124_v55  ;;  %9243 = vmatprep.mubr.msk.f32.mxu1 %vm9831_vm1, %v11675_v20  ;;  %v9212_v39 = vpop.f32.mrf.mxu0 }
 0x6ce   : > { %9249 = vmatmul.mubr.msk.f32.vlgmr.msra.gmra.mxu0 %vm970_vm2, %v4011_v12  ;;  %9251 = vmatprep.subr.mxu1 %v11675_v20  ;;  %v10693_v7 = vadd.f32 %v9212_v39, %v10680_v49 }
 0x6cf   : > { %9258 = vmatprep.mubr.msk.f32.mxu0 %vm9831_vm1, %v11675_v20  ;;  %9257 = vmatpush3.msra.mxu0 %v4217_v17  ;;  %v4236_v42 = vpop.f32.mrf.mxu0 }
 0x6d0   : > { %9244 = vmatmul.mubr.msk.f32.vlgmr.msra.gmra.mxu1 %vm970_vm2, %v4006_v54  ;;  %9266 = vmatprep.subr.mxu0 %v11675_v20  ;;  %v10696_v29 = vadd.f32 %v10680_v49, %v4236_v42 }
 0x6d1   : > { %9252 = vmatpush3.xpose.msk.msra.mxu1 %vm970_vm2, %v4134_v4  ;;  %9253 = vmatprep.mubr.msk.f32.mxu1 %vm9831_vm1, %v11675_v20  ;;  %v9215_v33 = vpop.f32.mrf.mxu0 }
 0x6d2   : > { %9261 = vmatprep.subr.mxu1 %v11675_v20  ;;  %v10699_v47 = vadd.f32 %v9215_v33, %v10680_v49 }
 0x6d4   : > { %9254 = vmatmul.mubr.msk.f32.vlgmr.msra.gmra.mxu1 %vm970_vm2, %v4016_v26  ;;  %v10702_v26 = vpop.f32.mrf.mxu0 }
 0x6d5   : > { %9263 = vmatprep.mubr.msk.f32.mxu1 %vm9831_vm1, %v11675_v20  ;;  %9262 = vmatpush3.msra.mxu1 %v4222_v45 }
 0x6d6   : > { %9271 = vmatprep.subr.mxu1 %v11675_v20 }
 0x780   : > { %v4327_v38 = vpop.f32.mrf.mxu1 }
 0x781   : > { %v4863_v43 = vmul.f32 0.35355338, %v4327_v38 }
 0x782   : > { %v9220_v55 = vpop.f32.mrf.mxu1 }
 0x783   : > { %v4871_v31 = vsel %vm970_vm2, %v4863_v43, -inf }
 0x784   : > { %4872 = vmax.xlane.f32.xlu1 %v4871_v31  ;;  %v4403_v12 = vpop.f32.mrf.mxu1 }
 0x785   : > { %v4864_v54 = vmul.f32 0.35355338, %v4403_v12 }
 0x786   : > { %v9225_v4 = vpop.f32.mrf.mxu1 }
 0x787   : > { %v4874_v50 = vsel %vm970_vm2, %v4864_v54, -inf }
 0x788   : > { %4875 = vmax.xlane.f32.xlu0 %v4874_v50  ;;  %v4479_v45 = vpop.f32.mrf.mxu1 }
 0x789   : > { %v4865_v8 = vmul.f32 0.35355338, %v4479_v45 }
 0x78a   : > { %v9230_v17 = vpop.f32.mrf.mxu1  ;;  %v4631_v19 = vpop.f32.mrf.mxu0 }
 0x78b   : > { %v4867_v30 = vmul.f32 0.35355338, %v4631_v19  ;;  %v4877_v39 = vsel %vm970_vm2, %v4865_v8, -inf }
 0x78c   : > { %4878 = vmax.xlane.f32.xlu1 %v4877_v39  ;;  %v4555_v42 = vpop.f32.mrf.mxu1  ;;  %v9240_v33 = vpop.f32.mrf.mxu0 }
 0x78d   : > { %v4866_v38 = vmul.f32 0.35355338, %v4555_v42  ;;  %v4883_v55 = vsel %vm970_vm2, %v4867_v30, -inf }
 0x78e   : > { %v9235_v31 = vpop.f32.mrf.mxu1  ;;  %v4783_v12 = vpop.f32.mrf.mxu0 }
 0x78f   : > { %v4869_v4 = vmul.f32 0.35355338, %v4783_v12  ;;  %v4880_v20 = vsel %vm970_vm2, %v4866_v38, -inf }
 0x790   : > { %4884 = vmax.xlane.f32.xlu1 %v4883_v55  ;;  %4881 = vmax.xlane.f32.xlu0 %v4880_v20  ;;  %v4707_v50 = vpop.f32.mrf.mxu1  ;;  %v9250_v45 = vpop.f32.mrf.mxu0 }
 0x791   : > { %v4868_v17 = vmul.f32 0.35355338, %v4707_v50  ;;  %v4889_v19 = vsel %vm970_vm2, %v4869_v4, -inf }
 0x792   : > { %v9245_v53 = vpop.f32.mrf.mxu1 }
 0x793   : > { %v4886_v39 = vsel %vm970_vm2, %v4868_v17, -inf }
 0x794   : > { %4890 = vmax.xlane.f32.xlu1 %v4889_v19  ;;  %4887 = vmax.xlane.f32.xlu0 %v4886_v39  ;;  %v4859_v42 = vpop.f32.mrf.mxu1 }
 0x795   : > { %v4870_v33 = vmul.f32 0.35355338, %v4859_v42 }
 0x796   : > { %v9255_v61 = vpop.f32.mrf.mxu1 }
 0x797   : > { %v4892_v31 = vsel %vm970_vm2, %v4870_v33, -inf }
 0x798   : > { %4893 = vmax.xlane.f32.xlu0 %v4892_v31 }
 0x80d   : > { %v4873_v12 = vpop.xlane.xlu1 %4872 }
 0x80e   : > { %v4895_v48 = vsub.f32 %v4863_v43, %v4873_v12 }
 0x810   : > { %v4903_v55 = vmul.f32 1.442695, %v4895_v48 }
 0x811   : > { %v4876_v20 = vpop.xlane.xlu0 %4875 }
 0x812   : > { %9626 = vpow2.f32 %v4903_v55  ;;  %v4896_v45 = vsub.f32 %v4864_v54, %v4876_v20 }
 0x814   : > { %v4905_v50 = vmul.f32 1.442695, %v4896_v45 }
 0x815   : > { %v4879_v44 = vpop.xlane.xlu1 %4878 }
 0x816   : > { %9628 = vpow2.f32 %v4905_v50  ;;  %v4897_v53 = vsub.f32 %v4865_v8, %v4879_v44 }
 0x818   : > { %v4907_v2 = vmul.f32 1.442695, %v4897_v53 }
 0x819   : > { %v4885_v60 = vpop.xlane.xlu1 %4884  ;;  %v4882_v19 = vpop.xlane.xlu0 %4881 }
 0x81a   : > { %9630 = vpow2.f32 %v4907_v2  ;;  %v4899_v39 = vsub.f32 %v4867_v30, %v4885_v60  ;;  %v4898_v42 = vsub.f32 %v4866_v38, %v4882_v19 }
 0x81c   : > { %v4911_v61 = vmul.f32 1.442695, %v4899_v39  ;;  %v4909_v1 = vmul.f32 1.442695, %v4898_v42 }
 0x81d   : > { %v4891_v56 = vpop.xlane.xlu1 %4890  ;;  %v4888_v31 = vpop.xlane.xlu0 %4887 }
 0x81e   : > { %9632 = vpow2.f32 %v4911_v61  ;;  %v4901_v43 = vsub.f32 %v4869_v4, %v4891_v56  ;;  %v4900_v48 = vsub.f32 %v4868_v17, %v4888_v31 }
 0x81f   : > { %v9627_v12 = vpop.eup %9626  ;;  %9634 = vpow2.f32 %v4909_v1 }
 0x820   : > { %v4915_v54 = vmul.f32 1.442695, %v4901_v43  ;;  %v4913_v55 = vmul.f32 1.442695, %v4900_v48  ;;  %v4919_v20 = vsel %vm970_vm2, %v9627_v12, 0.0 }
 0x821   : > { %4920 = vadd.xlane.f32.xlu1 %v4919_v20  ;;  %v4894_v44 = vpop.xlane.xlu0 %4893 }
 0x822   : > { %9636 = vpow2.f32 %v4915_v54  ;;  %v4902_v8 = vsub.f32 %v4870_v33, %v4894_v44 }
 0x823   : > { %v9629_v2 = vpop.eup %9628  ;;  %9638 = vpow2.f32 %v4913_v55 }
 0x824   : > { %v4917_v60 = vmul.f32 1.442695, %v4902_v8  ;;  %v4922_v30 = vsel %vm970_vm2, %v9629_v2, 0.0 }
 0x825   : > { %4923 = vadd.xlane.f32.xlu0 %v4922_v30  ;;  %v11728_v30 = vmov 0.0  }
 0x826   : > { %9640 = vpow2.f32 %v4917_v60 }
 0x827   : > { %v9631_v38 = vpop.eup %9630 }
 0x828   : > { %v4925_v56 = vsel %vm970_vm2, %v9631_v38, 0.0 }
 0x829   : > { %4926 = vadd.xlane.f32.xlu1 %v4925_v56 }
 0x82b   : > { %v9633_v1 = vpop.eup %9632 }
 0x82c   : > { %v9635_v4 = vpop.eup %9634  ;;  %v4931_v17 = vsel %vm970_vm2, %v9633_v1, 0.0 }
 0x82d   : > { %4932 = vadd.xlane.f32.xlu1 %v4931_v17  ;;  %v4928_v45 = vsel %vm970_vm2, %v9635_v4, 0.0 }
 0x82e   : > { %4929 = vadd.xlane.f32.xlu0 %v4928_v45 }
 0x82f   : > { %v9637_v33 = vpop.eup %9636 }
 0x830   : > { %v9639_v50 = vpop.eup %9638  ;;  %v4937_v53 = vsel %vm970_vm2, %v9637_v33, 0.0 }
 0x831   : > { %4938 = vadd.xlane.f32.xlu1 %v4937_v53  ;;  %v4934_v19 = vsel %vm970_vm2, %v9639_v50, 0.0 }
 0x832   : > { %4935 = vadd.xlane.f32.xlu0 %v4934_v19 }
 0x833   : > { %v10718_v39 = vpop.eup %9640 }
 0x834   : > { %v4940_v42 = vsel %vm970_vm2, %v10718_v39, 0.0 }
 0x836   : > { %4941 = vadd.xlane.f32.xlu0 %v4940_v42 }
 0x8aa   : > { %v4921_v61 = vpop.xlane.xlu1 %4920 }
 0x8ab   : > { %9642 = vrcp.f32 %v4921_v61  ;;  %v8473_v61 = vld [vmem:[%s11715_s17 + $0x70] sm:$0xff] }
 0x8ae   : > { %v4924_v31 = vpop.xlane.xlu0 %4923 }
 0x8af   : > { %9644 = vrcp.f32 %v4924_v31  ;;  %v8471_v31 = vld [vmem:[%s11715_s17 + $0x60] sm:$0xff] }
 0x8b2   : > { %v4927_v43 = vpop.xlane.xlu1 %4926 }
 0x8b3   : > { %9646 = vrcp.f32 %v4927_v43  ;;  %v8488_v43 = vld [vmem:[%s11716_s3 + $0x78] sm:$0xff] }
 0x8b6   : > { %v4933_v48 = vpop.xlane.xlu1 %4932 }
 0x8b7   : > { %9648 = vrcp.f32 %v4933_v48  ;;  %v4930_v54 = vpop.xlane.xlu0 %4929  ;;  %v8487_v48 = vld [vmem:[%s11716_s3 + $0x70] sm:$0xff] }
 0x8b8   : > { %v9643_v55 = vpop.eup %9642  ;;  %9650 = vrcp.f32 %v4930_v54  ;;  %v8485_v54 = vld [vmem:[%s11716_s3 + $0x60] sm:$0xff] }
 0x8b9   : > { %v10722_v20 = vmul.f32 %v9643_v55, %v9627_v12 }
 0x8ba   : > { %v4939_v44 = vpop.xlane.xlu1 %4938 }
 0x8bb   : > { %11727 = vst [vmem:[#allocation23_spill] sm:$0xff] %v10722_v20  ;;  %9652 = vrcp.f32 %v4939_v44  ;;  %v4936_v8 = vpop.xlane.xlu0 %4935  ;;  %9259 = vmatmul.mubr.msk.f32.vlgmr.msra.gmra.mxu0 %vm970_vm2, %v10722_v20 }
 0x8bc   : > { %v9645_v60 = vpop.eup %9644  ;;  %9654 = vrcp.f32 %v4936_v8  ;;  %9267 = vmatpush3.msra.mxu0 %v10690_v32  ;;  %9268 = vmatprep.mubr.msk.f32.mxu0 %vm9831_vm1, %v11728_v30 }
 0x8bd   : > { %v10729_v56 = vmul.f32 %v9645_v60, %v9629_v2  ;;  %9276 = vmatprep.subr.mxu0 %v11728_v30 }
 0x8bf   : > { %11729 = vst [vmem:[#allocation24_spill] sm:$0xff] %v10729_v56  ;;  %v4942_v17 = vpop.xlane.xlu0 %4941  ;;  %9264 = vmatmul.mubr.msk.f32.vlgmr.msra.gmra.mxu1 %vm970_vm2, %v10729_v56 }
 0x8c0   : > { %v9647_v12 = vpop.eup %9646  ;;  %9656 = vrcp.f32 %v4942_v17  ;;  %9272 = vmatpush3.msra.mxu1 %v10686_v14  ;;  %9273 = vmatprep.mubr.msk.f32.mxu1 %vm9831_vm1, %v11728_v30 }
 0x8c1   : > { %v10737_v45 = vmul.f32 %v9647_v12, %v9631_v38  ;;  %9281 = vmatprep.subr.mxu1 %v11728_v30  ;;  %v4247_v38 = vadd.f32 %v10680_v49, %v10702_v26 }
 0x8c3   : > { %11730 = vst [vmem:[#allocation25_spill] sm:$0xff] %v10737_v45  ;;  %9269 = vmatmul.mubr.msk.f32.vlgmr.msra.gmra.mxu0 %vm970_vm2, %v10737_v45 }
 0x8c4   : > { %v9649_v32 = vpop.eup %9648  ;;  %9277 = vmatpush3.msra.mxu0 %v10696_v29  ;;  %9278 = vmatprep.mubr.msk.f32.mxu0 %vm9831_vm1, %v11728_v30  ;;  %v8460_v29 = vld [vmem:[%s11712_s26 + $0x78] sm:$0xff] }
 0x8c5   : > { %v9651_v2 = vpop.eup %9650  ;;  %9286 = vmatprep.subr.mxu0 %v11728_v30  ;;  %v10746_v14 = vmul.f32 %v9649_v32, %v9633_v1  ;;  %v8474_v1 = vld [vmem:[%s11715_s17 + $0x78] sm:$0xff] }
 0x8c6   : > { %v10750_v53 = vmul.f32 %v9651_v2, %v9635_v4 }
 0x8c7   : > { %11731 = vst [vmem:[#allocation26_spill] sm:$0xff] %v10746_v14  ;;  %9279 = vmatmul.mubr.msk.f32.vlgmr.msra.gmra.mxu0 %vm970_vm2, %v10746_v14 }
 0x8c8   : > { %11732 = vst [vmem:[#allocation27_spill] sm:$0xff] %v10750_v53  ;;  %v9653_v19 = vpop.eup %9652  ;;  %9274 = vmatmul.mubr.msk.f32.vlgmr.msra.gmra.mxu1 %vm970_vm2, %v10750_v53  ;;  %9287 = vmatpush3.msra.mxu0 %v4247_v38 }
 0x8c9   : > { %v9655_v42 = vpop.eup %9654  ;;  %9282 = vmatpush3.msra.mxu1 %v10693_v7  ;;  %9283 = vmatprep.mubr.msk.f32.mxu1 %vm9831_vm1, %v11728_v30  ;;  %v10762_v49 = vmul.f32 %v9653_v19, %v9637_v33  ;;  %v8459_v7 = vld [vmem:[%s11712_s26 + $0x70] sm:$0xff]  ;;  %v8458_v33 = vld [vmem:[%s11712_s26 + $0x68] sm:$0xff] }
 0x8ca   : > { %9288 = vmatprep.mubr.msk.f32.mxu0 %vm9831_vm1, %v11728_v30  ;;  %9291 = vmatprep.subr.mxu1 %v11728_v30  ;;  %v10767_v26 = vmul.f32 %v9655_v42, %v9639_v50 }
 0x8cb   : > { %11733 = vst [vmem:[#allocation28_spill] sm:$0xff] %v10762_v49  ;;  %9289 = vmatmul.mubr.msk.f32.vlgmr.msra.gmra.mxu0 %vm970_vm2, %v10762_v49  ;;  %9296 = vmatprep.subr.mxu0 %v8460_v29 }
 0x8cc   : > { %11734 = vst [vmem:[#allocation29_spill] sm:$0xff] %v10767_v26  ;;  %9284 = vmatmul.mubr.msk.f32.vlgmr.msra.gmra.mxu1 %vm970_vm2, %v10767_v26  ;;  %9297 = vmatpush3.msra.mxu0 %v8460_v29 }
 0x8cd   : > { %v9657_v4 = vpop.eup %9656  ;;  %9292 = vmatpush3.msra.mxu1 %v10699_v47  ;;  %9293 = vmatprep.mubr.msk.f32.mxu1 %vm9831_vm1, %v11728_v30  ;;  %v8457_v47 = vld [vmem:[%s11712_s26 + $0x60] sm:$0xff] }
 0x8ce   : > { %9316 = vmatprep.subr.mxu1 %v8474_v1  ;;  %v10786_v50 = vmul.f32 %v9657_v4, %v10718_v39  ;;  %9298 = vmatprep.subr.mxu0 %v8459_v7  ;;  %v8472_v39 = vld [vmem:[%s11715_s17 + $0x68] sm:$0xff] }
 0x8cf   : > { %9299 = vmatpush3.msra.mxu0 %v8459_v7  ;;  %9304 = vmatprep.mubr.msk.f32.mxu0 %vm608_vm0, %v10518_v62  ;;  %v8476_v7 = vld [vmem:[%s11652_s5 + $0x3] ss:$0 sm:$0xff] }
 0x8d0   : > { %11735 = vst [vmem:[#allocation30_spill] sm:$0xff] %v10786_v50  ;;  %9294 = vmatmul.mubr.msk.f32.vlgmr.msra.gmra.mxu1 %vm970_vm2, %v10786_v50  ;;  %9300 = vmatprep.subr.mxu0 %v8458_v33 }
 0x8d1   : > { %9317 = vmatpush3.msra.mxu1 %v8474_v1  ;;  %9324 = vmatprep.mubr.msk.f32.mxu1 %vm608_vm0, %v10518_v62 }
 0x8d2   : > { %9318 = vmatprep.subr.mxu1 %v8473_v61  ;;  %9301 = vmatpush3.msra.mxu0 %v8458_v33 }
 0x8d3   : > { %9319 = vmatpush3.msra.mxu1 %v8473_v61  ;;  %9302 = vmatprep.subr.mxu0 %v8457_v47  ;;  %v8462_v61 = vld [vmem:[%s11717_s4 + $0x3] ss:$0 sm:$0xff] }
 0x8d4   : > { %9320 = vmatprep.subr.mxu1 %v8472_v39  ;;  %9303 = vmatpush3.msra.mxu0 %v8457_v47 }
 0x8d5   : > { %9321 = vmatpush3.msra.mxu1 %v8472_v39  ;;  %9305 = vmatmul.mubr.msk.f32.vlgmr.msra.gmra.mxu0 %vm608_vm0, %v10533_v51 }
 0x8d6   : > { %9322 = vmatprep.subr.mxu1 %v8471_v31  ;;  %9307 = vmatprep.mubr.msk.f32.mxu0 %vm608_vm0, %v10538_v0 }
 0x8d7   : > { %9323 = vmatpush3.msra.mxu1 %v8471_v31  ;;  %9336 = vmatprep.subr.mxu0 %v8488_v43 }
 0x8d8   : > { %9325 = vmatmul.mubr.msk.f32.vlgmr.msra.gmra.mxu1 %vm608_vm0, %v10533_v51  ;;  %9356 = vmatprep.subr.mxu1 %v11728_v30 }
 0x8d9   : > { %9327 = vmatprep.mubr.msk.f32.mxu1 %vm608_vm0, %v10538_v0  ;;  %9308 = vmatmul.mubr.msk.f32.gmra.mxu0 %vm608_vm0, %v10548_v57 }
 0x8da   : > { %9310 = vmatprep.mubr.msk.f32.mxu0 %vm608_vm0, %v10553_v58  ;;  %9337 = vmatpush3.msra.mxu0 %v8488_v43 }
 0x8db   : > { %9338 = vmatprep.subr.mxu0 %v8487_v48 }
 0x8dc   : > { %9328 = vmatmul.mubr.msk.f32.gmra.mxu1 %vm608_vm0, %v10548_v57  ;;  %9339 = vmatpush3.msra.mxu0 %v8487_v48 }
 0x8dd   : > { %9330 = vmatprep.mubr.msk.f32.mxu1 %vm608_vm0, %v10553_v58  ;;  %9311 = vmatmul.mubr.msk.f32.gmra.mxu0 %vm608_vm0, %v10562_v59 }
 0x8de   : > { %9313 = vmatprep.mubr.msk.f32.mxu0 %vm608_vm0, %v10567_v3 }
 0x8e0   : > { %9331 = vmatmul.mubr.msk.f32.gmra.mxu1 %vm608_vm0, %v10562_v59 }
 0x8e1   : > { %9333 = vmatprep.mubr.msk.f32.mxu1 %vm608_vm0, %v10567_v3  ;;  %9314 = vmatmul.mubr.msk.f32.gmra.mxu0 %vm608_vm0, %v10576_v63 }
 0x8e2   : > { %9344 = vmatprep.mubr.msk.f32.mxu0 %vm608_vm0, %v10518_v62  ;;  %v8486_v62 = vld [vmem:[%s11716_s3 + $0x68] sm:$0xff] }
 0x8e3   : > { %9340 = vmatprep.subr.mxu0 %v8486_v62 }
 0x8e4   : > { %9334 = vmatmul.mubr.msk.f32.gmra.mxu1 %vm608_vm0, %v10576_v63  ;;  %9341 = vmatpush3.msra.mxu0 %v8486_v62 }
 0x8e5   : > { %9358 = vmatprep.mubr.msk.f32.mxu1 %vm9831_vm1, %v11728_v30  ;;  %9342 = vmatprep.subr.mxu0 %v8485_v54 }
 0x8e6   : > { %9343 = vmatpush3.msra.mxu0 %v8485_v54 }
 0x8e7   : > { %9345 = vmatmul.mubr.msk.f32.vlgmr.msra.gmra.mxu0 %vm608_vm0, %v10533_v51  ;;  %9376 = vmatprep.subr.mxu0 %v11728_v30 }
 0x8e8   : > { %9347 = vmatprep.mubr.msk.f32.mxu0 %vm608_vm0, %v10538_v0 }
 0x8eb   : > { %9348 = vmatmul.mubr.msk.f32.gmra.mxu0 %vm608_vm0, %v10548_v57 }
 0x8ec   : > { %9350 = vmatprep.mubr.msk.f32.mxu0 %vm608_vm0, %v10553_v58 }
 0x8ef   : > { %9351 = vmatmul.mubr.msk.f32.gmra.mxu0 %vm608_vm0, %v10562_v59 }
 0x8f0   : > { %9353 = vmatprep.mubr.msk.f32.mxu0 %vm608_vm0, %v10567_v3 }
 0x8f3   : > { %9354 = vmatmul.mubr.msk.f32.gmra.mxu0 %vm608_vm0, %v10576_v63 }
 0x8f4   : > { %9378 = vmatprep.mubr.msk.f32.mxu0 %vm9831_vm1, %v11728_v30 }
 0x97b   : > { %v10868_v51 = vpop.f32.mrf.mxu0 }
 0x97d   : > { %v9260_v0 = vpop.f32.mrf.mxu0 }
 0x97f   : > { %v10870_v55 = vpop.f32.mrf.mxu1 }
 0x981   : > { %v9265_v57 = vpop.f32.mrf.mxu1 }
 0x983   : > { %v10872_v44 = vpop.f32.mrf.mxu0 }
 0x985   : > { %v9270_v58 = vpop.f32.mrf.mxu0 }
 0x987   : > { %v10874_v8 = vpop.f32.mrf.mxu0 }
 0x988   : > { %v10876_v59 = vpop.f32.mrf.mxu1 }
 0x989   : > { %v9280_v3 = vpop.f32.mrf.mxu0 }
 0x98a   : > { %v9275_v60 = vpop.f32.mrf.mxu1 }
 0x98b   : > { %v10878_v17 = vpop.f32.mrf.mxu0 }
 0x98c   : > { %v10880_v63 = vpop.f32.mrf.mxu1 }
 0x98d   : > { %v9290_v12 = vpop.f32.mrf.mxu0 }
 0x98e   : > { %v9285_v32 = vpop.f32.mrf.mxu1 }
 0x990   : > { %v10882_v2 = vpop.f32.mrf.mxu1 }
 0x992   : > { %v9295_v38 = vpop.f32.mrf.mxu1 }
 0x995   : > { %v9306_v19 = vpop.f32.mrf.mxu0 }
 0x996   : > { %v5628_v57 = vadd.f32 %v9306_v19, %v8462_v61 }
 0x997   : > { %v5622_v29 = vpop.f32.mrf.mxu0 }
 0x998   : > { %v9326_v42 = vpop.f32.mrf.mxu1  ;;  %v5623_v43 = vadd.f32 %v8462_v61, %v5622_v29 }
 0x999   : > { %v9309_v1 = vpop.f32.mrf.mxu0  ;;  %v5746_v62 = vadd.f32 %v9326_v42, %v8476_v7 }
 0x99a   : > { %v5740_v4 = vpop.f32.mrf.mxu1 }
 0x99b   : > { %v5741_v33 = vadd.f32 %v8476_v7, %v5740_v4  ;;  %v5632_v47 = vpop.f32.mrf.mxu0 }
 0x99c   : > { %v9329_v39 = vpop.f32.mrf.mxu1  ;;  %v5633_v38 = vadd.f32 %v8462_v61, %v5632_v47  ;;  %v5638_v47 = vadd.f32 %v9309_v1, %v8462_v61 }
 0x99d   : > { %9357 = vmatpush3.xpose.msk.msra.mxu1 %vm970_vm2, %v5741_v33  ;;  %v9312_v31 = vpop.f32.mrf.mxu0  ;;  %v5756_v42 = vadd.f32 %v9329_v39, %v8476_v7 }
 0x99e   : > { %9361 = vmatprep.subr.mxu1 %v11728_v30  ;;  %v5750_v48 = vpop.f32.mrf.mxu1  ;;  %v5648_v39 = vadd.f32 %v9312_v31, %v8462_v61 }
 0x99f   : > { %v5642_v54 = vpop.f32.mrf.mxu0  ;;  %v5751_v3 = vadd.f32 %v8476_v7, %v5750_v48 }
 0x9a0   : > { %9359 = vmatmul.mubr.msk.f32.vlgmr.msra.gmra.mxu1 %vm970_vm2, %v5623_v43  ;;  %v9332_v0 = vpop.f32.mrf.mxu1  ;;  %v5643_v29 = vadd.f32 %v8462_v61, %v5642_v54 }
 0x9a1   : > { %9362 = vmatpush3.xpose.msk.msra.mxu1 %vm970_vm2, %v5746_v62  ;;  %9363 = vmatprep.mubr.msk.f32.mxu1 %vm9831_vm1, %v11728_v30  ;;  %v9315_v12 = vpop.f32.mrf.mxu0  ;;  %v5766_v43 = vadd.f32 %v9332_v0, %v8476_v7 }
 0x9a2   : > { %9366 = vmatprep.subr.mxu1 %v11728_v30  ;;  %v5760_v58 = vpop.f32.mrf.mxu1  ;;  %v5658_v1 = vadd.f32 %v9315_v12, %v8462_v61 }
 0x9a3   : > { %v5761_v60 = vadd.f32 %v8476_v7, %v5760_v58  ;;  %v5652_v33 = vpop.f32.mrf.mxu0 }
 0x9a4   : > { %9364 = vmatmul.mubr.msk.f32.vlgmr.msra.gmra.mxu1 %vm970_vm2, %v5628_v57  ;;  %v9335_v32 = vpop.f32.mrf.mxu1  ;;  %v5653_v48 = vadd.f32 %v8462_v61, %v5652_v33 }
 0x9a5   : > { %9367 = vmatpush3.xpose.msk.msra.mxu1 %vm970_vm2, %v5751_v3  ;;  %9368 = vmatprep.mubr.msk.f32.mxu1 %vm9831_vm1, %v11728_v30  ;;  %v5776_v62 = vadd.f32 %v9335_v32, %v8476_v7 }
 0x9a6   : > { %9371 = vmatprep.subr.mxu1 %v11728_v30  ;;  %9377 = vmatpush3.xpose.msk.msra.mxu0 %vm970_vm2, %v5761_v60  ;;  %v5770_v19 = vpop.f32.mrf.mxu1 }
 0x9a7   : > { %v5771_v4 = vadd.f32 %v8476_v7, %v5770_v19  ;;  %9386 = vmatprep.subr.mxu0 %v11728_v30  ;;  %v10933_v7 = vld [vmem:[%s11653_s6 + $0x3] ss:$0 sm:$0xff]  ;;  %v9346_v61 = vpop.f32.mrf.mxu0 }
 0x9a8   : > { %9369 = vmatmul.mubr.msk.f32.vlgmr.msra.gmra.mxu1 %vm970_vm2, %v5633_v38  ;;  %v5864_v31 = vadd.f32 %v9346_v61, %v10933_v7 }
 0x9a9   : > { %9372 = vmatpush3.xpose.msk.msra.mxu1 %vm970_vm2, %v5756_v42  ;;  %9373 = vmatprep.mubr.msk.f32.mxu1 %vm9831_vm1, %v11728_v30  ;;  %v5858_v54 = vpop.f32.mrf.mxu0 }
 0x9aa   : > { %9379 = vmatmul.mubr.msk.f32.vlgmr.msra.gmra.mxu0 %vm970_vm2, %v5643_v29  ;;  %9381 = vmatprep.subr.mxu1 %v11728_v30  ;;  %v5859_v0 = vadd.f32 %v10933_v7, %v5858_v54 }
 0x9ab   : > { %9387 = vmatpush3.xpose.msk.msra.mxu0 %vm970_vm2, %v5771_v4  ;;  %9388 = vmatprep.mubr.msk.f32.mxu0 %vm9831_vm1, %v11728_v30  ;;  %v9349_v57 = vpop.f32.mrf.mxu0 }
 0x9ac   : > { %9374 = vmatmul.mubr.msk.f32.vlgmr.msra.gmra.mxu1 %vm970_vm2, %v5638_v47  ;;  %9396 = vmatprep.subr.mxu0 %v11728_v30  ;;  %v10939_v58 = vadd.f32 %v9349_v57, %v10933_v7 }
 0x9ad   : > { %9382 = vmatpush3.xpose.msk.msra.mxu1 %vm970_vm2, %v5766_v43  ;;  %9383 = vmatprep.mubr.msk.f32.mxu1 %vm9831_vm1, %v11728_v30  ;;  %v5868_v3 = vpop.f32.mrf.mxu0 }
 0x9ae   : > { %9389 = vmatmul.mubr.msk.f32.vlgmr.msra.gmra.mxu0 %vm970_vm2, %v5653_v48  ;;  %9391 = vmatprep.subr.mxu1 %v11728_v30  ;;  %v10943_v60 = vadd.f32 %v10933_v7, %v5868_v3 }
 0x9af   : > { %9398 = vmatprep.mubr.msk.f32.mxu0 %vm9831_vm1, %v11728_v30  ;;  %9397 = vmatpush3.msra.mxu0 %v5859_v0  ;;  %v9352_v12 = vpop.f32.mrf.mxu0 }
 0x9b0   : > { %9384 = vmatmul.mubr.msk.f32.vlgmr.msra.gmra.mxu1 %vm970_vm2, %v5648_v39  ;;  %9406 = vmatprep.subr.mxu0 %v11728_v30  ;;  %v10946_v32 = vadd.f32 %v9352_v12, %v10933_v7 }
 0x9b1   : > { %9392 = vmatpush3.xpose.msk.msra.mxu1 %vm970_vm2, %v5776_v62  ;;  %9393 = vmatprep.mubr.msk.f32.mxu1 %vm9831_vm1, %v11728_v30  ;;  %v5878_v38 = vpop.f32.mrf.mxu0 }
 0x9b2   : > { %9401 = vmatprep.subr.mxu1 %v11728_v30  ;;  %v10949_v29 = vadd.f32 %v10933_v7, %v5878_v38 }
 0x9b3   : > { %v9355_v19 = vpop.f32.mrf.mxu0 }
 0x9b4   : > { %9394 = vmatmul.mubr.msk.f32.vlgmr.msra.gmra.mxu1 %vm970_vm2, %v5658_v1  ;;  %v10952_v42 = vadd.f32 %v9355_v19, %v10933_v7 }
 0x9b5   : > { %9403 = vmatprep.mubr.msk.f32.mxu1 %vm9831_vm1, %v11728_v30  ;;  %9402 = vmatpush3.msra.mxu1 %v5864_v31  ;;  %v10955_v1 = vpop.f32.mrf.mxu0 }
 0x9b6   : > { %9411 = vmatprep.subr.mxu1 %v11728_v30 }
 0xa60   : > { %v5969_v4 = vpop.f32.mrf.mxu1 }
 0xa61   : > { %v6505_v33 = vmul.f32 0.35355338, %v5969_v4 }
 0xa62   : > { %v9360_v43 = vpop.f32.mrf.mxu1 }
 0xa63   : > { %v6513_v47 = vsel %vm970_vm2, %v6505_v33, -inf }
 0xa64   : > { %6514 = vmax.xlane.f32.xlu0 %v6513_v47  ;;  %v6045_v48 = vpop.f32.mrf.mxu1 }
 0xa65   : > { %v6506_v39 = vmul.f32 0.35355338, %v6045_v48 }
 0xa66   : > { %v9365_v62 = vpop.f32.mrf.mxu1 }
 0xa67   : > { %v6516_v61 = vsel %vm970_vm2, %v6506_v39, -inf }
 0xa68   : > { %6517 = vmax.xlane.f32.xlu1 %v6516_v61  ;;  %v6121_v31 = vpop.f32.mrf.mxu1 }
 0xa69   : > { %v6507_v54 = vmul.f32 0.35355338, %v6121_v31 }
 0xa6a   : > { %v9370_v0 = vpop.f32.mrf.mxu1  ;;  %v6273_v57 = vpop.f32.mrf.mxu0 }
 0xa6b   : > { %v6509_v3 = vmul.f32 0.35355338, %v6273_v57  ;;  %v6519_v12 = vsel %vm970_vm2, %v6507_v54, -inf }
 0xa6c   : > { %6520 = vmax.xlane.f32.xlu0 %v6519_v12  ;;  %v6197_v38 = vpop.f32.mrf.mxu1  ;;  %v9380_v19 = vpop.f32.mrf.mxu0 }
 0xa6d   : > { %v6508_v4 = vmul.f32 0.35355338, %v6197_v38  ;;  %v6525_v43 = vsel %vm970_vm2, %v6509_v3, -inf }
 0xa6e   : > { %v9375_v47 = vpop.f32.mrf.mxu1  ;;  %v6425_v48 = vpop.f32.mrf.mxu0 }
 0xa6f   : > { %v6511_v62 = vmul.f32 0.35355338, %v6425_v48  ;;  %v6522_v49 = vsel %vm970_vm2, %v6508_v4, -inf }
 0xa70   : > { %6526 = vmax.xlane.f32.xlu0 %v6525_v43  ;;  %6523 = vmax.xlane.f32.xlu1 %v6522_v49  ;;  %v6349_v61 = vpop.f32.mrf.mxu1  ;;  %v9390_v31 = vpop.f32.mrf.mxu0 }
 0xa71   : > { %v6510_v0 = vmul.f32 0.35355338, %v6349_v61  ;;  %v6531_v57 = vsel %vm970_vm2, %v6511_v62, -inf }
 0xa72   : > { %v9385_v14 = vpop.f32.mrf.mxu1 }
 0xa73   : > { %v6528_v12 = vsel %vm970_vm2, %v6510_v0, -inf }
 0xa74   : > { %6532 = vmax.xlane.f32.xlu0 %v6531_v57  ;;  %6529 = vmax.xlane.f32.xlu1 %v6528_v12  ;;  %v6501_v38 = vpop.f32.mrf.mxu1 }
 0xa75   : > { %v6512_v19 = vmul.f32 0.35355338, %v6501_v38 }
 0xa76   : > { %v9395_v50 = vpop.f32.mrf.mxu1 }
 0xa77   : > { %v6534_v47 = vsel %vm970_vm2, %v6512_v19, -inf }
 0xa78   : > { %6535 = vmax.xlane.f32.xlu1 %v6534_v47 }
 0xaed   : > { %v6515_v48 = vpop.xlane.xlu0 %6514 }
 0xaee   : > { %v6537_v26 = vsub.f32 %v6505_v33, %v6515_v48 }
 0xaf0   : > { %v6545_v43 = vmul.f32 1.442695, %v6537_v26 }
 0xaf1   : > { %v6518_v49 = vpop.xlane.xlu1 %6517 }
 0xaf2   : > { %9658 = vpow2.f32 %v6545_v43  ;;  %v6538_v31 = vsub.f32 %v6506_v39, %v6518_v49 }
 0xaf4   : > { %v6547_v61 = vmul.f32 1.442695, %v6538_v31 }
 0xaf5   : > { %v6521_v45 = vpop.xlane.xlu0 %6520 }
 0xaf6   : > { %9660 = vpow2.f32 %v6547_v61  ;;  %v6539_v14 = vsub.f32 %v6507_v54, %v6521_v45 }
 0xaf8   : > { %v6549_v53 = vmul.f32 1.442695, %v6539_v14 }
 0xaf9   : > { %v6527_v20 = vpop.xlane.xlu0 %6526  ;;  %v6524_v57 = vpop.xlane.xlu1 %6523 }
 0xafa   : > { %9662 = vpow2.f32 %v6549_v53  ;;  %v6541_v12 = vsub.f32 %v6509_v3, %v6527_v20  ;;  %v6540_v38 = vsub.f32 %v6508_v4, %v6524_v57 }
 0xafc   : > { %v6553_v50 = vmul.f32 1.442695, %v6541_v12  ;;  %v6551_v56 = vmul.f32 1.442695, %v6540_v38 }
 0xafd   : > { %v6533_v16 = vpop.xlane.xlu0 %6532  ;;  %v6530_v47 = vpop.xlane.xlu1 %6529 }
 0xafe   : > { %9664 = vpow2.f32 %v6553_v50  ;;  %v6543_v33 = vsub.f32 %v6511_v62, %v6533_v16  ;;  %v6542_v26 = vsub.f32 %v6510_v0, %v6530_v47 }
 0xaff   : > { %v9659_v48 = vpop.eup %9658  ;;  %9666 = vpow2.f32 %v6551_v56 }
 0xb00   : > { %v6557_v39 = vmul.f32 1.442695, %v6543_v33  ;;  %v6555_v43 = vmul.f32 1.442695, %v6542_v26  ;;  %v6561_v49 = vsel %vm970_vm2, %v9659_v48, 0.0  ;;  %v7414_v26 = vld [vmem:[%s11654_s7 + $0x18] sm:$0xff] }
 0xb01   : > { %6562 = vadd.xlane.f32.xlu0 %v6561_v49  ;;  %v6536_v45 = vpop.xlane.xlu1 %6535 }
 0xb02   : > { %9668 = vpow2.f32 %v6557_v39  ;;  %v6544_v54 = vsub.f32 %v6512_v19, %v6536_v45 }
 0xb03   : > { %v9661_v53 = vpop.eup %9660  ;;  %9670 = vpow2.f32 %v6555_v43 }
 0xb04   : > { %v6559_v20 = vmul.f32 1.442695, %v6544_v54  ;;  %v6564_v3 = vsel %vm970_vm2, %v9661_v53, 0.0 }
 0xb05   : > { %6565 = vadd.xlane.f32.xlu1 %v6564_v3 }
 0xb06   : > { %9672 = vpow2.f32 %v6559_v20 }
 0xb07   : > { %v10966_v4 = vpop.eup %9662 }
 0xb08   : > { %v6567_v16 = vsel %vm970_vm2, %v10966_v4, 0.0 }
 0xb09   : > { %6568 = vadd.xlane.f32.xlu0 %v6567_v16 }
 0xb0b   : > { %v10970_v56 = vpop.eup %9664 }
 0xb0c   : > { %v10972_v62 = vpop.eup %9666  ;;  %v6573_v0 = vsel %vm970_vm2, %v10970_v56, 0.0 }
 0xb0d   : > { %6574 = vadd.xlane.f32.xlu0 %v6573_v0  ;;  %v6570_v19 = vsel %vm970_vm2, %v10972_v62, 0.0 }
 0xb0e   : > { %6571 = vadd.xlane.f32.xlu1 %v6570_v19 }
 0xb0f   : > { %v10978_v31 = vpop.eup %9668 }
 0xb10   : > { %v10980_v61 = vpop.eup %9670  ;;  %v6579_v14 = vsel %vm970_vm2, %v10978_v31, 0.0 }
 0xb11   : > { %6580 = vadd.xlane.f32.xlu0 %v6579_v14  ;;  %v6576_v57 = vsel %vm970_vm2, %v10980_v61, 0.0 }
 0xb12   : > { %6577 = vadd.xlane.f32.xlu1 %v6576_v57 }
 0xb13   : > { %v10986_v12 = vpop.eup %9672 }
 0xb14   : > { %v6582_v38 = vsel %vm970_vm2, %v10986_v12, 0.0 }
 0xb16   : > { %6583 = vadd.xlane.f32.xlu1 %v6582_v38 }
 0xb27   : > { %7301 = vrot.lane.b32.xlu1 %v10617_v18, %s11695_s27  ;;  %7299 = vrot.lane.b32.xlu0 %v10615_v11, %s11695_s27 }
 0xb2b   : > { %7331 = vrot.lane.b32.xlu1 %v10868_v51, %s9833_s1  ;;  %7303 = vrot.lane.b32.xlu0 %v10619_v9, %s11695_s27 }
 0xb2f   : > { %7333 = vrot.lane.b32.xlu1 %v10870_v55, %s9833_s1  ;;  %7335 = vrot.lane.b32.xlu0 %v10872_v44, %s9833_s1 }
 0xb33   : > { %7305 = vrot.lane.b32.xlu1 %v10623_v24, %s11695_s27  ;;  %7307 = vrot.lane.b32.xlu0 %v10621_v5, %s11695_s27 }
 0xb37   : > { %7337 = vrot.lane.b32.xlu1 %v10876_v59, %s9833_s1  ;;  %7339 = vrot.lane.b32.xlu0 %v10874_v8, %s9833_s1 }
 0xb3b   : > { %7309 = vrot.lane.b32.xlu1 %v10627_v36, %s11695_s27  ;;  %7311 = vrot.lane.b32.xlu0 %v10625_v34, %s11695_s27 }
 0xb3f   : > { %7341 = vrot.lane.b32.xlu1 %v10880_v63, %s9833_s1  ;;  %7343 = vrot.lane.b32.xlu0 %v10878_v17, %s9833_s1 }
 0xb43   : > { %7313 = vrot.lane.b32.xlu1 %v10629_v41, %s11695_s27 }
 0xb47   : > { %7345 = vrot.lane.b32.xlu1 %v10882_v2, %s9833_s1 }
 0xb8a   : > { %v6563_v11 = vpop.xlane.xlu0 %6562 }
 0xb8b   : > { %9674 = vrcp.f32 %v6563_v11 }
 0xb8e   : > { %v6566_v18 = vpop.xlane.xlu1 %6565 }
 0xb8f   : > { %9676 = vrcp.f32 %v6566_v18 }
 0xb92   : > { %v6569_v9 = vpop.xlane.xlu0 %6568 }
 0xb93   : > { %9678 = vrcp.f32 %v6569_v9 }
 0xb96   : > { %v6575_v5 = vpop.xlane.xlu0 %6574 }
 0xb97   : > { %9680 = vrcp.f32 %v6575_v5  ;;  %v6572_v24 = vpop.xlane.xlu1 %6571 }
 0xb98   : > { %v9675_v34 = vpop.eup %9674  ;;  %9682 = vrcp.f32 %v6572_v24 }
 0xb99   : > { %v11022_v36 = vmul.f32 %v9675_v34, %v9659_v48  ;;  %v7413_v48 = vld [vmem:[%s11654_s7 + $0x10] sm:$0xff] }
 0xb9a   : > { %v6581_v51 = vpop.xlane.xlu0 %6580 }
 0xb9b   : > { %9684 = vrcp.f32 %v6581_v51  ;;  %v6578_v55 = vpop.xlane.xlu1 %6577  ;;  %9399 = vmatmul.mubr.msk.f32.vlgmr.msra.gmra.mxu0 %vm970_vm2, %v11022_v36 }
 0xb9c   : > { %v9677_v41 = vpop.eup %9676  ;;  %9686 = vrcp.f32 %v6578_v55  ;;  %9407 = vmatpush3.msra.mxu0 %v10943_v60  ;;  %9408 = vmatprep.mubr.msk.f32.mxu0 %vm9831_vm1, %v11728_v30  ;;  %v5889_v60 = vadd.f32 %v10933_v7, %v10955_v1 }
 0xb9d   : > { %v11029_v44 = vmul.f32 %v9677_v41, %v9661_v53  ;;  %9416 = vmatprep.subr.mxu0 %v11728_v30 }
 0xb9f   : > { %v6584_v8 = vpop.xlane.xlu1 %6583  ;;  %9404 = vmatmul.mubr.msk.f32.vlgmr.msra.gmra.mxu1 %vm970_vm2, %v11029_v44 }
 0xba0   : > { %v9679_v59 = vpop.eup %9678  ;;  %9688 = vrcp.f32 %v6584_v8  ;;  %9412 = vmatpush3.msra.mxu1 %v10939_v58  ;;  %9413 = vmatprep.mubr.msk.f32.mxu1 %vm9831_vm1, %v11728_v30 }
 0xba1   : > { %v11038_v17 = vmul.f32 %v9679_v59, %v10966_v4  ;;  %9421 = vmatprep.subr.mxu1 %v11728_v30 }
 0xba3   : > { %9409 = vmatmul.mubr.msk.f32.vlgmr.msra.gmra.mxu0 %vm970_vm2, %v11038_v17  ;;  %v7302_v14 = vpop.permute.xlu1 %7301 }
 0xba4   : > { %v9681_v63 = vpop.eup %9680  ;;  %9417 = vmatpush3.msra.mxu0 %v10949_v29  ;;  %9418 = vmatprep.mubr.msk.f32.mxu0 %vm9831_vm1, %v11728_v30 }
 0xba5   : > { %v9683_v2 = vpop.eup %9682  ;;  %9426 = vmatprep.subr.mxu0 %v11728_v30  ;;  %v11048_v58 = vmul.f32 %v9681_v63, %v10970_v56 }
 0xba6   : > { %v11053_v50 = vmul.f32 %v9683_v2, %v10972_v62 }
 0xba7   : > { %9419 = vmatmul.mubr.msk.f32.vlgmr.msra.gmra.mxu0 %vm970_vm2, %v11048_v58  ;;  %v7332_v57 = vpop.permute.xlu1 %7331 }
 0xba8   : > { %v9685_v47 = vpop.eup %9684  ;;  %9414 = vmatmul.mubr.msk.f32.vlgmr.msra.gmra.mxu1 %vm970_vm2, %v11053_v50  ;;  %9427 = vmatpush3.msra.mxu0 %v5889_v60 }
 0xba9   : > { %v9687_v29 = vpop.eup %9686  ;;  %9422 = vmatpush3.msra.mxu1 %v10946_v32  ;;  %9428 = vmatprep.mubr.msk.f32.mxu0 %vm9831_vm1, %v11728_v30  ;;  %v11063_v33 = vmul.f32 %v9685_v47, %v10978_v31 }
 0xbaa   : > { %v11066_v7 = vmul.f32 %v9687_v29, %v10980_v61  ;;  %9423 = vmatprep.mubr.msk.f32.mxu1 %vm9831_vm1, %v11728_v30  ;;  %9431 = vmatprep.subr.mxu1 %v11728_v30 }
 0xbab   : > { %9429 = vmatmul.mubr.msk.f32.vlgmr.msra.gmra.mxu0 %vm970_vm2, %v11063_v33  ;;  %9436 = vmatprep.subr.mxu0 %v7414_v26  ;;  %v7334_v38 = vpop.permute.xlu1 %7333 }
 0xbac   : > { %9424 = vmatmul.mubr.msk.f32.vlgmr.msra.gmra.mxu1 %vm970_vm2, %v11066_v7  ;;  %9437 = vmatpush3.msra.mxu0 %v7414_v26 }
 0xbad   : > { %v9689_v32 = vpop.eup %9688  ;;  %9432 = vmatpush3.msra.mxu1 %v10952_v42  ;;  %9433 = vmatprep.mubr.msk.f32.mxu1 %vm9831_vm1, %v11728_v30  ;;  %v7412_v30 = vld [vmem:[%s11654_s7 + $0x8] sm:$0xff]  ;;  %v7411_v42 = vld [vmem:[%s11654_s7] sm:$0xff] }
 0xbae   : > { %v11079_v1 = vmul.f32 %v9689_v32, %v10986_v12  ;;  %9438 = vmatprep.subr.mxu0 %v7413_v48  ;;  %v7300_v12 = vpop.permute.xlu0 %7299  ;;  %v7388_v32 = vsel %vm970_vm2, %v10338_v13, %v7302_v14  ;;  %v8523_v14 = vld [vmem:[%s11655_s8] ss:$0 sm:$0xff] }
 0xbaf   : > { %9439 = vmatpush3.msra.mxu0 %v7413_v48  ;;  %v7306_v18 = vpop.permute.xlu1 %7305  ;;  %v7387_v63 = vsel %vm970_vm2, %v10340_v21, %v7300_v12  ;;  %v7396_v26 = vsel %vm7265_vm3, %v7388_v32, %v7334_v38 }
 0xbb0   : > { %9434 = vmatmul.mubr.msk.f32.vlgmr.msra.gmra.mxu1 %vm970_vm2, %v11079_v1  ;;  %9440 = vmatprep.subr.mxu0 %v7412_v30  ;;  %v7395_v2 = vsel %vm7265_vm3, %v7387_v63, %v7332_v57 }
 0xbb1   : > { %9441 = vmatpush3.msra.mxu0 %v7412_v30 }
 0xbb2   : > { %9442 = vmatprep.subr.mxu0 %v7411_v42  ;;  %v7304_v11 = vpop.permute.xlu0 %7303 }
 0xbb3   : > { %9443 = vmatpush3.msra.mxu0 %v7411_v42  ;;  %v7338_v5 = vpop.permute.xlu1 %7337  ;;  %v7389_v21 = vsel %vm970_vm2, %v10344_v23, %v7304_v11 }
 0xbb6   : > { %v7336_v9 = vpop.permute.xlu0 %7335 }
 0xbb7   : > { %v7310_v34 = vpop.permute.xlu1 %7309  ;;  %v7397_v42 = vsel %vm7265_vm3, %v7389_v21, %v7336_v9 }
 0xbba   : > { %v7308_v24 = vpop.permute.xlu0 %7307 }
 0xbbb   : > { %v7342_v55 = vpop.permute.xlu1 %7341  ;;  %v7391_v13 = vsel %vm970_vm2, %v10348_v25, %v7308_v24 }
 0xbbe   : > { %v7340_v51 = vpop.permute.xlu0 %7339 }
 0xbbf   : > { %v7314_v8 = vpop.permute.xlu1 %7313 }
 0xbc2   : > { %v7312_v41 = vpop.permute.xlu0 %7311 }
 0xbc3   : > { %v7346_v60 = vpop.permute.xlu1 %7345 }
 0xbc6   : > { %v7344_v59 = vpop.permute.xlu0 %7343 }
 0xc5b   : > { %v6670_v39 = vpop.f32.mrf.mxu0 }
 0xc5c   : > { %7363 = vrot.lane.b32.xlu0 %v6670_v39, %s9834_s30 }
 0xc5d   : > { %v9400_v43 = vpop.f32.mrf.mxu0 }
 0xc5f   : > { %v6743_v49 = vpop.f32.mrf.mxu1 }
 0xc60   : > { %7365 = vrot.lane.b32.xlu1 %v6743_v49, %s9834_s30  ;;  %v7399_v49 = vsel %vm7265_vm3, %v7391_v13, %v7340_v51 }
 0xc61   : > { %v9405_v45 = vpop.f32.mrf.mxu1 }
 0xc62   : > { %v7390_v45 = vsel %vm970_vm2, %v10342_v22, %v7306_v18  ;;  %v9730_v18 = vld [vmem:[%s9997_s29 + $0x8] sm:$0xff] }
 0xc63   : > { %v6816_v54 = vpop.f32.mrf.mxu0 }
 0xc64   : > { %7367 = vrot.lane.b32.xlu0 %v6816_v54, %s9834_s30 }
 0xc65   : > { %v9410_v53 = vpop.f32.mrf.mxu0 }
 0xc66   : > { %v7398_v53 = vsel %vm7265_vm3, %v7390_v45, %v7338_v5  ;;  %v9731_v5 = vld [vmem:[%s9997_s29] sm:$0xff] }
 0xc67   : > { %v6962_v20 = vpop.f32.mrf.mxu0 }
 0xc68   : > { %v6889_v3 = vpop.f32.mrf.mxu1  ;;  %7371 = vrot.lane.b32.xlu0 %v6962_v20, %s9834_s30 }
 0xc69   : > { %7369 = vrot.lane.b32.xlu1 %v6889_v3, %s9834_s30  ;;  %v9420_v4 = vpop.f32.mrf.mxu0 }
 0xc6a   : > { %v9415_v16 = vpop.f32.mrf.mxu1  ;;  %v7393_v4 = vsel %vm970_vm2, %v10352_v28, %v7312_v41  ;;  %v7394_v28 = vsel %vm970_vm2, %v10350_v10, %v7314_v8 }
 0xc6b   : > { %v7108_v56 = vpop.f32.mrf.mxu0  ;;  %v7401_v25 = vsel %vm7265_vm3, %v7393_v4, %v7344_v59  ;;  %v7392_v16 = vsel %vm970_vm2, %v10346_v6, %v7310_v34  ;;  %v7402_v6 = vsel %vm7265_vm3, %v7394_v28, %v7346_v60  ;;  %v9732_v59 = vld [vmem:[%s9997_s29 + $0x18] sm:$0xff] }
 0xc6c   : > { %v7035_v62 = vpop.f32.mrf.mxu1  ;;  %7375 = vrot.lane.b32.xlu0 %v7108_v56, %s9834_s30  ;;  %v7400_v56 = vsel %vm7265_vm3, %v7392_v16, %v7342_v55 }
 0xc6d   : > { %7373 = vrot.lane.b32.xlu1 %v7035_v62, %s9834_s30  ;;  %v9430_v0 = vpop.f32.mrf.mxu0 }
 0xc6e   : > { %v9425_v19 = vpop.f32.mrf.mxu1 }
 0xc70   : > { %v7181_v31 = vpop.f32.mrf.mxu1 }
 0xc71   : > { %7377 = vrot.lane.b32.xlu1 %v7181_v31, %s9834_s30 }
 0xc72   : > { %v9435_v61 = vpop.f32.mrf.mxu1 }
 0xcce   : > { %v7364_v47 = vpop.permute.xlu0 %7363 }
 0xccf   : > { %v7403_v29 = vsel %vm7274_vm4, %v7395_v2, %v7364_v47 }
 0xcd0   : > { %9444 = vmatprep.mubr.msk.f32.mxu0 %vm608_vm0, %v7403_v29  ;;  %v9733_v29 = vld [vmem:[%s9997_s29 + $0x10] sm:$0xff] }
 0xcd2   : > { %v7366_v48 = vpop.permute.xlu1 %7365 }
 0xcd3   : > { %v7404_v30 = vsel %vm7274_vm4, %v7396_v26, %v7366_v48 }
 0xcd4   : > { %9445 = vmatmul.mubr.msk.f32.vlgmr.msra.gmra.mxu0 %vm608_vm0, %v7404_v30  ;;  %v9734_v30 = vld [vmem:[%s9997_s29 + $0x28] sm:$0xff] }
 0xcd6   : > { %v7368_v39 = vpop.permute.xlu0 %7367 }
 0xcd7   : > { %v7405_v43 = vsel %vm7274_vm4, %v7397_v42, %v7368_v39 }
 0xcd8   : > { %9447 = vmatprep.mubr.msk.f32.mxu0 %vm608_vm0, %v7405_v43 }
 0xcda   : > { %v7372_v54 = vpop.permute.xlu0 %7371 }
 0xcdb   : > { %v7407_v23 = vsel %vm7274_vm4, %v7399_v49, %v7372_v54  ;;  %v7370_v20 = vpop.permute.xlu1 %7369  ;;  %v9735_v49 = vld [vmem:[%s9997_s29 + $0x20] sm:$0xff] }
 0xcdc   : > { %v7406_v3 = vsel %vm7274_vm4, %v7398_v53, %v7370_v20 }
 0xcdd   : > { %9448 = vmatmul.mubr.msk.f32.gmra.mxu0 %vm608_vm0, %v7406_v3 }
 0xcde   : > { %9450 = vmatprep.mubr.msk.f32.mxu0 %vm608_vm0, %v7407_v23  ;;  %v7376_v22 = vpop.permute.xlu0 %7375  ;;  %v9736_v23 = vld [vmem:[%s9997_s29 + $0x38] sm:$0xff] }
 0xcdf   : > { %v7409_v62 = vsel %vm7274_vm4, %v7401_v25, %v7376_v22  ;;  %v7374_v0 = vpop.permute.xlu1 %7373  ;;  %v9737_v25 = vld [vmem:[%s9997_s29 + $0x30] sm:$0xff] }
 0xce0   : > { %v7408_v19 = vsel %vm7274_vm4, %v7400_v56, %v7374_v0 }
 0xce1   : > { %9451 = vmatmul.mubr.msk.f32.gmra.mxu0 %vm608_vm0, %v7408_v19 }
 0xce2   : > { %9453 = vmatprep.mubr.msk.f32.mxu0 %vm608_vm0, %v7409_v62 }
 0xce3   : > { %v7378_v31 = vpop.permute.xlu1 %7377 }
 0xce4   : > { %v7410_v61 = vsel %vm7274_vm4, %v7402_v6, %v7378_v31 }
 0xce5   : > { %9454 = vmatmul.mubr.msk.f32.gmra.mxu0 %vm608_vm0, %v7410_v61 }
 0xd94   : > { %v9446_v57 = vpop.f32.mrf.mxu0 }
 0xd95   : > { %v7518_v12 = vadd.f32 %v9446_v57, %v8523_v14 }
 0xd96   : > { %v7512_v38 = vpop.f32.mrf.mxu0 }
 0xd97   : > { %v7513_v11 = vadd.f32 %v8523_v14, %v7512_v38  ;;  %v7552_v10 = vadd.f32 %v9730_v18, %v7518_v12 }
 0xd99   : > { %v7564_v9 = vsel %vm608_vm0, %v7552_v10, 0.0  ;;  %v7551_v24 = vadd.f32 %v9731_v5, %v7513_v11 }
 0xd9a   : > { %7565 = vadd.xlane.f32.xlu1 %v7564_v9 }
 0xd9b   : > { %v7561_v34 = vsel %vm608_vm0, %v7551_v24, 0.0 }
 0xd9c   : > { %7562 = vadd.xlane.f32.xlu0 %v7561_v34 }
 0xd9d   : > { %v9449_v51 = vpop.f32.mrf.mxu0 }
 0xd9e   : > { %v7528_v55 = vadd.f32 %v9449_v51, %v8523_v14 }
 0xd9f   : > { %v7522_v41 = vpop.f32.mrf.mxu0 }
 0xda0   : > { %v7523_v8 = vadd.f32 %v8523_v14, %v7522_v41  ;;  %v7554_v63 = vadd.f32 %v9732_v59, %v7528_v55 }
 0xda1   : > { %v9452_v2 = vpop.f32.mrf.mxu0 }
 0xda2   : > { %v7538_v60 = vadd.f32 %v9452_v2, %v8523_v14  ;;  %v7570_v47 = vsel %vm608_vm0, %v7554_v63, 0.0  ;;  %v7553_v32 = vadd.f32 %v9733_v29, %v7523_v8 }
 0xda3   : > { %7571 = vadd.xlane.f32.xlu0 %v7570_v47  ;;  %v7532_v26 = vpop.f32.mrf.mxu0 }
 0xda4   : > { %v7533_v48 = vadd.f32 %v8523_v14, %v7532_v26  ;;  %v7556_v21 = vadd.f32 %v9734_v30, %v7538_v60  ;;  %v7567_v43 = vsel %vm608_vm0, %v7553_v32, 0.0 }
 0xda5   : > { %v9455_v42 = vpop.f32.mrf.mxu0 }
 0xda6   : > { %v7548_v39 = vadd.f32 %v9455_v42, %v8523_v14  ;;  %v7576_v13 = vsel %vm608_vm0, %v7556_v21, 0.0  ;;  %v7555_v45 = vadd.f32 %v9735_v49, %v7533_v48 }
 0xda7   : > { %7568 = vadd.xlane.f32.xlu0 %v7567_v43  ;;  %7577 = vadd.xlane.f32.xlu1 %v7576_v13  ;;  %v7542_v54 = vpop.f32.mrf.mxu0 }
 0xda8   : > { %v7543_v53 = vadd.f32 %v8523_v14, %v7542_v54  ;;  %v7558_v20 = vadd.f32 %v9736_v23, %v7548_v39  ;;  %v7573_v3 = vsel %vm608_vm0, %v7555_v45, 0.0  ;;  %v7697_v54 = vld [vmem:[%s11656_s9 + $0x18] sm:$0xff]  ;;  %v7695_v23 = vld [vmem:[%s11656_s9 + $0x8] sm:$0xff] }
 0xda9   : > { %9456 = vmatprep.subr.mxu1 %v7697_v54 }
 0xdaa   : > { %v7582_v4 = vsel %vm608_vm0, %v7558_v20, 0.0  ;;  %v7557_v16 = vadd.f32 %v9737_v25, %v7543_v53  ;;  %9457 = vmatpush3.msra.mxu1 %v7697_v54  ;;  %v7696_v53 = vld [vmem:[%s11656_s9 + $0x10] sm:$0xff] }
 0xdab   : > { %7574 = vadd.xlane.f32.xlu0 %v7573_v3  ;;  %7583 = vadd.xlane.f32.xlu1 %v7582_v4  ;;  %v11740_v3 = vld [vmem:[#allocation25_spill] sm:$0xff]  ;;  %v7846_v4 = vld [vmem:[%s11658_s11 + $0x20] sm:$0xff] }
 0xdac   : > { %v7579_v22 = vsel %vm608_vm0, %v7557_v16, 0.0  ;;  %9458 = vmatprep.subr.mxu1 %v7696_v53 }
 0xdad   : > { %9459 = vmatpush3.msra.mxu1 %v7696_v53 }
 0xdae   : > { %9460 = vmatprep.subr.mxu1 %v7695_v23 }
 0xdaf   : > { %7580 = vadd.xlane.f32.xlu0 %v7579_v22  ;;  %9461 = vmatpush3.msra.mxu1 %v7695_v23 }
 0xe23   : > { %v7566_v56 = vpop.xlane.xlu1 %7565 }
 0xe24   : > { %v7587_v62 = vmul.f32 0.03125, %v7566_v56 }
 0xe25   : > { %v7563_v0 = vpop.xlane.xlu0 %7562 }
 0xe26   : > { %v11162_v19 = vsub.f32 %v7552_v10, %v7587_v62  ;;  %v7586_v28 = vmul.f32 0.03125, %v7563_v0 }
 0xe28   : > { %v11164_v6 = vsub.f32 %v7551_v24, %v7586_v28  ;;  %v7603_v31 = vmul.f32 %v11162_v19, %v11162_v19 }
 0xe2a   : > { %v7613_v61 = vsel %vm608_vm0, %v7603_v31, 0.0  ;;  %v7602_v14 = vmul.f32 %v11164_v6, %v11164_v6 }
 0xe2b   : > { %7614 = vadd.xlane.f32.xlu1 %v7613_v61 }
 0xe2c   : > { %v7572_v57 = vpop.xlane.xlu0 %7571  ;;  %v7610_v12 = vsel %vm608_vm0, %v7602_v14, 0.0 }
 0xe2d   : > { %v7589_v38 = vmul.f32 0.03125, %v7572_v57  ;;  %7611 = vadd.xlane.f32.xlu0 %v7610_v12 }
 0xe2f   : > { %v11172_v11 = vsub.f32 %v7554_v63, %v7589_v38 }
 0xe30   : > { %v7569_v18 = vpop.xlane.xlu0 %7568  ;;  %v7578_v10 = vpop.xlane.xlu1 %7577 }
 0xe31   : > { %v7588_v9 = vmul.f32 0.03125, %v7569_v18  ;;  %v7591_v5 = vmul.f32 0.03125, %v7578_v10  ;;  %v7605_v24 = vmul.f32 %v11172_v11, %v11172_v11 }
 0xe33   : > { %v11176_v34 = vsub.f32 %v7553_v32, %v7588_v9  ;;  %v11178_v51 = vsub.f32 %v7556_v21, %v7591_v5  ;;  %v7619_v55 = vsel %vm608_vm0, %v7605_v24, 0.0 }
 0xe34   : > { %v7575_v41 = vpop.xlane.xlu0 %7574  ;;  %7620 = vadd.xlane.f32.xlu1 %v7619_v55  ;;  %v7584_v8 = vpop.xlane.xlu1 %7583 }
 0xe35   : > { %v7590_v59 = vmul.f32 0.03125, %v7575_v41  ;;  %v7593_v2 = vmul.f32 0.03125, %v7584_v8  ;;  %v7604_v63 = vmul.f32 %v11176_v34, %v11176_v34  ;;  %v7607_v60 = vmul.f32 %v11178_v51, %v11178_v51  ;;  %v8532_v8 = vld [vmem:[%s11660_s13] ss:$0 sm:$0xff] }
 0xe37   : > { %v11185_v47 = vsub.f32 %v7555_v45, %v7590_v59  ;;  %v11187_v29 = vsub.f32 %v7558_v20, %v7593_v2  ;;  %v7616_v32 = vsel %vm608_vm0, %v7604_v63, 0.0  ;;  %v7625_v26 = vsel %vm608_vm0, %v7607_v60, 0.0  ;;  %v7694_v20 = vld [vmem:[%s11656_s9] sm:$0xff] }
 0xe38   : > { %7617 = vadd.xlane.f32.xlu0 %v7616_v32  ;;  %v7581_v48 = vpop.xlane.xlu0 %7580  ;;  %7626 = vadd.xlane.f32.xlu1 %v7625_v26 }
 0xe39   : > { %v7592_v30 = vmul.f32 0.03125, %v7581_v48  ;;  %v7606_v21 = vmul.f32 %v11185_v47, %v11185_v47  ;;  %v7609_v42 = vmul.f32 %v11187_v29, %v11187_v29  ;;  %9462 = vmatprep.subr.mxu1 %v7694_v20 }
 0xe3a   : > { %9463 = vmatpush3.msra.mxu1 %v7694_v20 }
 0xe3b   : > { %v11195_v39 = vsub.f32 %v7557_v16, %v7592_v30  ;;  %v7622_v43 = vsel %vm608_vm0, %v7606_v21, 0.0  ;;  %v7631_v13 = vsel %vm608_vm0, %v7609_v42, 0.0  ;;  %v8533_v21 = vld [vmem:[%s11661_s14] ss:$0 sm:$0xff] }
 0xe3c   : > { %7623 = vadd.xlane.f32.xlu0 %v7622_v43  ;;  %7632 = vadd.xlane.f32.xlu1 %v7631_v13 }
 0xe3d   : > { %v7608_v49 = vmul.f32 %v11195_v39, %v11195_v39 }
 0xe3f   : > { %v7628_v45 = vsel %vm608_vm0, %v7608_v49, 0.0 }
 0xe40   : > { %7629 = vadd.xlane.f32.xlu0 %v7628_v45 }
 0xe4d   : > { %7187 = vrot.lane.b32.xlu1 %v10452_v35, %s11695_s27  ;;  %v11736_v35 = vld [vmem:[#allocation22_spill] sm:$0xff] }
 0xe51   : > { %7189 = vrot.lane.b32.xlu1 %v10460_v40, %s11695_s27  ;;  %v11737_v40 = vld [vmem:[#allocation24_spill] sm:$0xff] }
 0xe55   : > { %7191 = vrot.lane.b32.xlu1 %v10473_v46, %s11695_s27  ;;  %v11738_v46 = vld [vmem:[#allocation23_spill] sm:$0xff] }
 0xe56   : > { %7185 = vrot.lane.b32.xlu0 %v10445_v27, %s11695_s27  ;;  %v7849_v27 = vld [vmem:[%s11658_s11 + $0x38] sm:$0xff] }
 0xe57   : > { %9476 = vmatprep.subr.mxu0 %v7849_v27 }
 0xe58   : > { %9477 = vmatpush3.msra.mxu0 %v7849_v27 }
 0xe59   : > { %7195 = vrot.lane.b32.xlu1 %v10490_v37, %s11695_s27  ;;  %v11739_v37 = vld [vmem:[#allocation27_spill] sm:$0xff] }
 0xe5a   : > { %7193 = vrot.lane.b32.xlu0 %v10469_v15, %s11695_s27  ;;  %v7848_v15 = vld [vmem:[%s11658_s11 + $0x30] sm:$0xff] }
 0xe5b   : > { %9478 = vmatprep.subr.mxu0 %v7848_v15 }
 0xe5c   : > { %9479 = vmatpush3.msra.mxu0 %v7848_v15 }
 0xe5d   : > { %7199 = vrot.lane.b32.xlu1 %v10509_v52, %s11695_s27  ;;  %v7847_v52 = vld [vmem:[%s11658_s11 + $0x28] sm:$0xff] }
 0xe5e   : > { %7197 = vrot.lane.b32.xlu0 %v11736_v35, %s11695_s27  ;;  %9480 = vmatprep.subr.mxu0 %v7847_v52 }
 0xe5f   : > { %9481 = vmatpush3.msra.mxu0 %v7847_v52 }
 0xe60   : > { %9482 = vmatprep.subr.mxu0 %v7846_v4 }
 0xe61   : > { %7211 = vrot.lane.b32.xlu1 %v11737_v40, %s9833_s1  ;;  %9483 = vmatpush3.msra.mxu0 %v7846_v4 }
 0xe62   : > { %7209 = vrot.lane.b32.xlu0 %v11738_v46, %s9833_s1 }
 0xe65   : > { %7215 = vrot.lane.b32.xlu1 %v11739_v37, %s9833_s1 }
 0xe66   : > { %7213 = vrot.lane.b32.xlu0 %v11740_v3, %s9833_s1 }
 0xeb4   : > { %v7615_v25 = vpop.xlane.xlu1 %7614 }
 0xeb5   : > { %v7635_v16 = vmul.f32 0.03125, %v7615_v25 }
 0xeb6   : > { %v7612_v22 = vpop.xlane.xlu0 %7611 }
 0xeb7   : > { %v7643_v56 = vadd.f32 1e-05, %v7635_v16  ;;  %v7634_v62 = vmul.f32 0.03125, %v7612_v22 }
 0xeb9   : > { %9690 = vrsqrt.f32 %v7643_v56  ;;  %v7642_v0 = vadd.f32 1e-05, %v7634_v62  ;;  %v7844_v56 = vld [vmem:[%s11658_s11 + $0x10] sm:$0xff]  ;;  %v7843_v62 = vld [vmem:[%s11658_s11 + $0x8] sm:$0xff] }
 0xebb   : > { %9692 = vrsqrt.f32 %v7642_v0  ;;  %v7842_v0 = vld [vmem:[%s11658_s11] sm:$0xff] }
 0xebd   : > { %v7621_v28 = vpop.xlane.xlu1 %7620 }
 0xebe   : > { %v7637_v31 = vmul.f32 0.03125, %v7621_v28  ;;  %v8534_v28 = vld [vmem:[%s11657_s10] ss:$0 sm:$0xff] }
 0xec0   : > { %v7645_v61 = vadd.f32 1e-05, %v7637_v31 }
 0xec1   : > { %v7618_v14 = vpop.xlane.xlu0 %7617  ;;  %v7627_v57 = vpop.xlane.xlu1 %7626 }
 0xec2   : > { %9694 = vrsqrt.f32 %v7645_v61  ;;  %v7636_v12 = vmul.f32 0.03125, %v7618_v14  ;;  %v7639_v38 = vmul.f32 0.03125, %v7627_v57 }
 0xec4   : > { %v7644_v18 = vadd.f32 1e-05, %v7636_v12  ;;  %v7647_v10 = vadd.f32 1e-05, %v7639_v38 }
 0xec5   : > { %v7624_v9 = vpop.xlane.xlu0 %7623  ;;  %v7633_v5 = vpop.xlane.xlu1 %7632 }
 0xec6   : > { %v9691_v24 = vpop.eup %9690  ;;  %9696 = vrsqrt.f32 %v7644_v18  ;;  %v7638_v55 = vmul.f32 0.03125, %v7624_v9  ;;  %v7641_v41 = vmul.f32 0.03125, %v7633_v5 }
 0xec7   : > { %v7659_v59 = vmul.f32 %v9691_v24, %v11162_v19  ;;  %9698 = vrsqrt.f32 %v7647_v10 }
 0xec8   : > { %v9693_v2 = vpop.eup %9692  ;;  %v7646_v63 = vadd.f32 1e-05, %v7638_v55  ;;  %v7649_v60 = vadd.f32 1e-05, %v7641_v41 }
 0xec9   : > { %v7630_v32 = vpop.xlane.xlu0 %7629  ;;  %v7658_v26 = vmul.f32 %v9693_v2, %v11164_v6  ;;  %v7673_v48 = vmul.f32 %v8532_v8, %v7659_v59 }
 0xeca   : > { %9700 = vrsqrt.f32 %v7646_v63  ;;  %v7640_v30 = vmul.f32 0.03125, %v7630_v32 }
 0xecb   : > { %9702 = vrsqrt.f32 %v7649_v60  ;;  %v7672_v42 = vmul.f32 %v8532_v8, %v7658_v26  ;;  %v11260_v19 = vadd.f32 %v8533_v21, %v7673_v48 }
 0xecc   : > { %v7648_v43 = vadd.f32 1e-05, %v7640_v30 }
 0xecd   : > { %v11258_v13 = vadd.f32 %v8533_v21, %v7672_v42 }
 0xece   : > { %9704 = vrsqrt.f32 %v7648_v43  ;;  %v8543_v43 = vld [vmem:[%s11659_s12] ss:$0 sm:$0xff] }
 0xecf   : > { %v9695_v49 = vpop.eup %9694  ;;  %9464 = vmatprep.mubr.msk.f32.mxu1 %vm608_vm0, %v11258_v13 }
 0xed0   : > { %9465 = vmatmul.mubr.msk.f32.vlgmr.msra.gmra.mxu1 %vm608_vm0, %v11260_v19  ;;  %v7661_v6 = vmul.f32 %v9695_v49, %v11172_v11 }
 0xed2   : > { %v7675_v20 = vmul.f32 %v8532_v8, %v7661_v6 }
 0xed3   : > { %v9697_v45 = vpop.eup %9696 }
 0xed4   : > { %v9699_v54 = vpop.eup %9698  ;;  %v7660_v53 = vmul.f32 %v9697_v45, %v11176_v34  ;;  %v11273_v52 = vadd.f32 %v8533_v21, %v7675_v20 }
 0xed5   : > { %v7663_v23 = vmul.f32 %v9699_v54, %v11178_v51 }
 0xed6   : > { %v7674_v35 = vmul.f32 %v8532_v8, %v7660_v53 }
 0xed7   : > { %v9701_v40 = vpop.eup %9700  ;;  %v7677_v3 = vmul.f32 %v8532_v8, %v7663_v23 }
 0xed8   : > { %v9703_v46 = vpop.eup %9702  ;;  %v11269_v27 = vadd.f32 %v8533_v21, %v7674_v35  ;;  %v7662_v15 = vmul.f32 %v9701_v40, %v11185_v47 }
 0xed9   : > { %v7665_v37 = vmul.f32 %v9703_v46, %v11187_v29  ;;  %v11282_v25 = vadd.f32 %v8533_v21, %v7677_v3 }
 0xeda   : > { %9467 = vmatprep.mubr.msk.f32.mxu1 %vm608_vm0, %v11269_v27  ;;  %v7676_v11 = vmul.f32 %v8532_v8, %v7662_v15 }
 0xedb   : > { %v9705_v34 = vpop.eup %9704  ;;  %9468 = vmatmul.mubr.msk.f32.gmra.mxu1 %vm608_vm0, %v11273_v52  ;;  %v7679_v47 = vmul.f32 %v8532_v8, %v7665_v37 }
 0xedc   : > { %v11279_v51 = vadd.f32 %v8533_v21, %v7676_v11  ;;  %v7664_v4 = vmul.f32 %v9705_v34, %v11195_v39  ;;  %v7845_v39 = vld [vmem:[%s11658_s11 + $0x18] sm:$0xff] }
 0xedd   : > { %v11290_v22 = vadd.f32 %v8533_v21, %v7679_v47  ;;  %9484 = vmatprep.subr.mxu0 %v7845_v39 }
 0xede   : > { %9470 = vmatprep.mubr.msk.f32.mxu1 %vm608_vm0, %v11279_v51  ;;  %v7678_v29 = vmul.f32 %v8532_v8, %v7664_v4  ;;  %9485 = vmatpush3.msra.mxu0 %v7845_v39 }
 0xedf   : > { %9471 = vmatmul.mubr.msk.f32.gmra.mxu1 %vm608_vm0, %v11282_v25  ;;  %9486 = vmatprep.subr.mxu0 %v7844_v56 }
 0xee0   : > { %v11288_v16 = vadd.f32 %v8533_v21, %v7678_v29  ;;  %9487 = vmatpush3.msra.mxu0 %v7844_v56 }
 0xee1   : > { %9488 = vmatprep.subr.mxu0 %v7843_v62 }
 0xee2   : > { %9473 = vmatprep.mubr.msk.f32.mxu1 %vm608_vm0, %v11288_v16  ;;  %9489 = vmatpush3.msra.mxu0 %v7843_v62 }
 0xee3   : > { %9474 = vmatmul.mubr.msk.f32.gmra.mxu1 %vm608_vm0, %v11290_v22  ;;  %9490 = vmatprep.subr.mxu0 %v7842_v0 }
 0xee4   : > { %9491 = vmatpush3.msra.mxu0 %v7842_v0 }
 0xf90   : > { %v9466_v31 = vpop.f32.mrf.mxu1 }
 0xf91   : > { %v7801_v61 = vadd.f32 %v9466_v31, %v8534_v28 }
 0xf92   : > { %v7795_v14 = vpop.f32.mrf.mxu1 }
 0xf93   : > { %v7796_v57 = vadd.f32 %v8534_v28, %v7795_v14  ;;  %v7835_v38 = vmax.f32 %v7801_v61, 0.0 }
 0xf95   : > { %v7834_v12 = vmax.f32 %v7796_v57, 0.0  ;;  %v11741_v57 = vld [vmem:[#allocation29_spill] sm:$0xff] }
 0xf97   : > { %9492 = vmatprep.mubr.msk.f32.mxu0 %vm7857_vm5, %v7834_v12  ;;  %v11743_v12 = vld [vmem:[#allocation26_spill] sm:$0xff] }
 0xf98   : > { %9493 = vmatmul.mubr.msk.f32.vlgmr.msra.gmra.mxu0 %vm7857_vm5, %v7835_v38  ;;  %v11360_v38 = vpop.permute.xlu1 %7187 }
 0xf9b   : > { %v9469_v18 = vpop.f32.mrf.mxu1 }
 0xf9c   : > { %v7811_v10 = vadd.f32 %v9469_v18, %v8534_v28  ;;  %v11362_v18 = vpop.permute.xlu1 %7189 }
 0xf9d   : > { %v7805_v9 = vpop.f32.mrf.mxu1 }
 0xf9e   : > { %v7806_v5 = vadd.f32 %v8534_v28, %v7805_v9  ;;  %v7837_v41 = vmax.f32 %v7811_v10, 0.0  ;;  %v11366_v9 = vpop.permute.xlu0 %7185 }
 0xf9f   : > { %v9472_v24 = vpop.f32.mrf.mxu1 }
 0xfa0   : > { %v7836_v55 = vmax.f32 %v7806_v5, 0.0  ;;  %v7821_v8 = vadd.f32 %v9472_v24, %v8534_v28  ;;  %v11364_v10 = vpop.permute.xlu1 %7191 }
 0xfa1   : > { %v7815_v59 = vpop.f32.mrf.mxu1 }
 0xfa2   : > { %v7816_v2 = vadd.f32 %v8534_v28, %v7815_v59  ;;  %9495 = vmatprep.mubr.msk.f32.mxu0 %vm7857_vm5, %v7836_v55  ;;  %v7839_v32 = vmax.f32 %v7821_v8, 0.0  ;;  %v7194_v5 = vpop.permute.xlu0 %7193 }
 0xfa3   : > { %v9475_v63 = vpop.f32.mrf.mxu1  ;;  %9496 = vmatmul.mubr.msk.f32.gmra.mxu0 %vm7857_vm5, %v7837_v41 }
 0xfa4   : > { %v7838_v60 = vmax.f32 %v7816_v2, 0.0  ;;  %v7831_v26 = vadd.f32 %v9475_v63, %v8534_v28 }
 0xfa5   : > { %v7825_v48 = vpop.f32.mrf.mxu1 }
 0xfa6   : > { %v7826_v30 = vadd.f32 %v8534_v28, %v7825_v48  ;;  %9498 = vmatprep.mubr.msk.f32.mxu0 %vm7857_vm5, %v7838_v60  ;;  %v7841_v42 = vmax.f32 %v7831_v26, 0.0  ;;  %v11368_v55 = vpop.permute.xlu0 %7197 }
 0xfa7   : > { %9499 = vmatmul.mubr.msk.f32.gmra.mxu0 %vm7857_vm5, %v7839_v32 }
 0xfa8   : > { %v7840_v21 = vmax.f32 %v7826_v30, 0.0 }
 0xfaa   : > { %9501 = vmatprep.mubr.msk.f32.mxu0 %vm7857_vm5, %v7840_v21  ;;  %v11372_v41 = vpop.permute.xlu0 %7209 }
 0xfab   : > { %9502 = vmatmul.mubr.msk.f32.gmra.mxu0 %vm7857_vm5, %v7841_v42 }
0x1058   : > { %v9494_v49 = vpop.f32.mrf.mxu0 }
0x1059   : > { %v7954_v6 = vadd.f32 %v9494_v49, %v8543_v43 }
0x105a   : > { %v7948_v45 = vpop.f32.mrf.mxu0 }
0x105b   : > { %v7988_v54 = vadd.f32 %v7954_v6, %v11260_v19  ;;  %v7949_v53 = vadd.f32 %v8543_v43, %v7948_v45 }
0x105d   : > { %v7987_v23 = vadd.f32 %v7949_v53, %v11258_v13  ;;  %v8000_v20 = vsel %vm608_vm0, %v7988_v54, 0.0 }
0x105e   : > { %8001 = vadd.xlane.f32.xlu1 %v8000_v20 }
0x105f   : > { %v7997_v35 = vsel %vm608_vm0, %v7987_v23, 0.0 }
0x1060   : > { %7998 = vadd.xlane.f32.xlu0 %v7997_v35 }
0x1063   : > { %v9497_v40 = vpop.f32.mrf.mxu0 }
0x1064   : > { %v7964_v46 = vadd.f32 %v9497_v40, %v8543_v43 }
0x1065   : > { %v7958_v15 = vpop.f32.mrf.mxu0 }
0x1066   : > { %v7990_v37 = vadd.f32 %v7964_v46, %v11273_v52  ;;  %v7959_v3 = vadd.f32 %v8543_v43, %v7958_v15 }
0x1067   : > { %v9500_v11 = vpop.f32.mrf.mxu0 }
0x1068   : > { %v7989_v34 = vadd.f32 %v7959_v3, %v11269_v27  ;;  %v7974_v4 = vadd.f32 %v9500_v11, %v8543_v43  ;;  %v8006_v19 = vsel %vm608_vm0, %v7990_v37, 0.0 }
0x1069   : > { %8007 = vadd.xlane.f32.xlu1 %v8006_v19  ;;  %v7968_v13 = vpop.f32.mrf.mxu0 }
0x106a   : > { %v7992_v47 = vadd.f32 %v7974_v4, %v11282_v25  ;;  %v7969_v29 = vadd.f32 %v8543_v43, %v7968_v13  ;;  %v8003_v39 = vsel %vm608_vm0, %v7989_v34, 0.0 }
0x106b   : > { %v9503_v56 = vpop.f32.mrf.mxu0  ;;  %8004 = vadd.xlane.f32.xlu0 %v8003_v39 }
0x106c   : > { %v7991_v62 = vadd.f32 %v7969_v29, %v11279_v51  ;;  %v7984_v0 = vadd.f32 %v9503_v56, %v8543_v43  ;;  %v8012_v52 = vsel %vm608_vm0, %v7992_v47, 0.0 }
0x106d   : > { %8013 = vadd.xlane.f32.xlu1 %v8012_v52  ;;  %v7978_v28 = vpop.f32.mrf.mxu0 }
0x106e   : > { %v11334_v27 = vadd.f32 %v7984_v0, %v11290_v22  ;;  %v7979_v31 = vadd.f32 %v8543_v43, %v7978_v28  ;;  %v8009_v61 = vsel %vm608_vm0, %v7991_v62, 0.0  ;;  %v11742_v22 = vld [vmem:[#allocation30_spill] sm:$0xff] }
0x106f   : > { %8010 = vadd.xlane.f32.xlu0 %v8009_v61 }
0x1070   : > { %v11338_v25 = vadd.f32 %v7979_v31, %v11288_v16  ;;  %v8018_v14 = vsel %vm608_vm0, %v11334_v27, 0.0  ;;  %v11744_v16 = vld [vmem:[#allocation28_spill] sm:$0xff] }
0x1071   : > { %8019 = vadd.xlane.f32.xlu1 %v8018_v14  ;;  %v11746_v14 = vld [vmem:[#allocation19_spill] sm:$0xff] }
0x1072   : > { %v8015_v51 = vsel %vm608_vm0, %v11338_v25, 0.0 }
0x1073   : > { %8016 = vadd.xlane.f32.xlu0 %v8015_v51  ;;  %v7261_v51 = vsel %vm970_vm2, %v11746_v14, %v7194_v5 }
0x1082   : > { %7219 = vrot.lane.b32.xlu1 %v11741_v57, %s9833_s1 }
0x1086   : > { %7223 = vrot.lane.b32.xlu1 %v11742_v22, %s9833_s1 }
0x1089   : > { %7217 = vrot.lane.b32.xlu0 %v11743_v12, %s9833_s1 }
0x108a   : > { %7235 = vrot.lane.b32.xlu1 %v11029_v44, %s9834_s30  ;;  %v7196_v44 = vpop.permute.xlu1 %7195 }
0x108d   : > { %7221 = vrot.lane.b32.xlu0 %v11744_v16, %s9833_s1  ;;  %s11422_s1 = sand.u32 1, %s9820_s28   ;;  %v11747_v16 = vld [vmem:[#allocation20_spill] sm:$0xff] }
0x108e   : > { %7239 = vrot.lane.b32.xlu1 %v11053_v50, %s9834_s30  ;;  %v7200_v24 = vpop.permute.xlu1 %7199  ;;  %s8270_s29 = sshll.u32 %s11422_s1, 6 }
0x108f   : > { %s11458_s24 = scalar_lea.vmem [#allocation4], %s8270_s29  ;;  %s11508_s22 = scalar_lea.vmem [#allocation2], %s8270_s29 }
0x1090   : > { %s8172_s21 = sshll.u32 %s11458_s24, 4  ;;  %s9835_s29 = smov [#allocation4]   ;;  %s11534_s21 = int_to_ptr.vmem [resolvable:$true] %s8172_s21 }
0x1091   : > { %7233 = vrot.lane.b32.xlu0 %v11022_v36, %s9834_s30  ;;  %s9738_s20 = scalar_lea.vmem %s11534_s21, 1024 }
0x1092   : > { %v11370_v50 = vpop.permute.xlu1 %7211  ;;  %p9739_p11 = scmp.ne.s32.totalorder %s11534_s21, %s9738_s20 }
0x1094   : > { %p9740_p12 = pnand %p9739_p11, %p9971_p5 }
0x1095   : > { %7237 = vrot.lane.b32.xlu0 %v11038_v17, %s9834_s30  ;;  %v11376_v17 = vpop.permute.xlu0 %7213 }
0x1096   : > { %v11374_v36 = vpop.permute.xlu1 %7215  ;;  %p9741_p13 = pneg %p9740_p12 }
0x10e7   : > { %v8002_v8 = vpop.xlane.xlu1 %8001 }
0x10e8   : > { %v8022_v59 = vmul.f32 0.03125, %v8002_v8 }
0x10e9   : > { %v7999_v2 = vpop.xlane.xlu0 %7998 }
0x10ea   : > { %v11378_v63 = vsub.f32 %v7988_v54, %v8022_v59  ;;  %v8021_v60 = vmul.f32 0.03125, %v7999_v2  ;;  %v11748_v2 = vld [vmem:[#allocation21_spill] sm:$0xff] }
0x10ec   : > { %v11380_v32 = vsub.f32 %v7987_v23, %v8021_v60  ;;  %v8038_v26 = vmul.f32 %v11378_v63, %v11378_v63  ;;  %v7263_v60 = vsel %vm970_vm2, %v11748_v2, %v11368_v55 }
0x10ee   : > { %v8048_v48 = vsel %vm608_vm0, %v8038_v26, 0.0  ;;  %v8037_v30 = vmul.f32 %v11380_v32, %v11380_v32 }
0x10ef   : > { %8049 = vadd.xlane.f32.xlu1 %v8048_v48  ;;  %v11749_v48 = vld [vmem:[#allocation14_spill] sm:$0xff] }
0x10f0   : > { %v8045_v21 = vsel %vm608_vm0, %v8037_v30, 0.0  ;;  %v7258_v30 = vsel %vm970_vm2, %v11749_v48, %v11360_v38 }
0x10f1   : > { %8046 = vadd.xlane.f32.xlu0 %v8045_v21  ;;  %v7267_v21 = vsel %vm7265_vm3, %v7258_v30, %v11370_v50  ;;  %v11751_v50 = vld [vmem:[#allocation16_spill] sm:$0xff] }
0x10f2   : > { %v8008_v42 = vpop.xlane.xlu1 %8007 }
0x10f3   : > { %v8024_v43 = vmul.f32 0.03125, %v8008_v42 }
0x10f4   : > { %v8005_v49 = vpop.xlane.xlu0 %8004 }
0x10f5   : > { %v11388_v6 = vsub.f32 %v7990_v37, %v8024_v43  ;;  %v8023_v45 = vmul.f32 0.03125, %v8005_v49  ;;  %v11750_v43 = vld [vmem:[#allocation15_spill] sm:$0xff] }
0x10f6   : > { %v8014_v54 = vpop.xlane.xlu1 %8013  ;;  %v7257_v49 = vsel %vm970_vm2, %v11750_v43, %v11366_v9 }
0x10f7   : > { %v11390_v53 = vsub.f32 %v7989_v34, %v8023_v45  ;;  %v8026_v23 = vmul.f32 0.03125, %v8014_v54  ;;  %v8040_v20 = vmul.f32 %v11388_v6, %v11388_v6  ;;  %v7266_v55 = vsel %vm7265_vm3, %v7257_v49, %v11372_v41 }
0x10f8   : > { %v8011_v35 = vpop.xlane.xlu0 %8010  ;;  %v7260_v54 = vsel %vm970_vm2, %v11751_v50, %v11364_v10 }
0x10f9   : > { %v11394_v40 = vsub.f32 %v7992_v47, %v8026_v23  ;;  %v8025_v46 = vmul.f32 0.03125, %v8011_v35  ;;  %v8054_v15 = vsel %vm608_vm0, %v8040_v20, 0.0  ;;  %v8039_v3 = vmul.f32 %v11390_v53, %v11390_v53  ;;  %v11752_v20 = vld [vmem:[#allocation17_spill] sm:$0xff] }
0x10fa   : > { %8055 = vadd.xlane.f32.xlu1 %v8054_v15  ;;  %v8020_v37 = vpop.xlane.xlu1 %8019  ;;  %v7269_v23 = vsel %vm7265_vm3, %v7260_v54, %v11374_v36  ;;  %v7259_v35 = vsel %vm970_vm2, %v11752_v20, %v11362_v18 }
0x10fb   : > { %v11399_v11 = vsub.f32 %v7991_v62, %v8025_v46  ;;  %v8028_v4 = vmul.f32 0.03125, %v8020_v37  ;;  %v8051_v34 = vsel %vm608_vm0, %v8039_v3, 0.0  ;;  %v8042_v19 = vmul.f32 %v11394_v40, %v11394_v40  ;;  %v11745_v62 = vld [vmem:[#allocation18_spill] sm:$0xff] }
0x10fc   : > { %8052 = vadd.xlane.f32.xlu0 %v8051_v34  ;;  %v8017_v13 = vpop.xlane.xlu0 %8016  ;;  %v7262_v0 = vsel %vm970_vm2, %v11745_v62, %v7196_v44  ;;  %v7264_v44 = vsel %vm970_vm2, %v11747_v16, %v7200_v24  ;;  %v7268_v15 = vsel %vm7265_vm3, %v7259_v35, %v11376_v17 }
0x10fd   : > { %v11405_v47 = vsub.f32 %v11334_v27, %v8028_v4  ;;  %v8027_v29 = vmul.f32 0.03125, %v8017_v13  ;;  %v8060_v39 = vsel %vm608_vm0, %v8042_v19, 0.0  ;;  %v8041_v56 = vmul.f32 %v11399_v11, %v11399_v11 }
0x10fe   : > { %8061 = vadd.xlane.f32.xlu1 %v8060_v39  ;;  %v7220_v52 = vpop.permute.xlu1 %7219 }
0x10ff   : > { %v11413_v28 = vsub.f32 %v11338_v25, %v8027_v29  ;;  %v11416_v31 = vsel %vm7265_vm3, %v7262_v0, %v7220_v52  ;;  %v8057_v27 = vsel %vm608_vm0, %v8041_v56, 0.0  ;;  %v8044_v61 = vmul.f32 %v11405_v47, %v11405_v47 }
0x1100   : > { %8058 = vadd.xlane.f32.xlu0 %v8057_v27  ;;  %v7218_v57 = vpop.permute.xlu0 %7217 }
0x1101   : > { %v11427_v22 = vsel %vm7265_vm3, %v7261_v51, %v7218_v57  ;;  %v8066_v25 = vsel %vm608_vm0, %v8044_v61, 0.0  ;;  %v8043_v12 = vmul.f32 %v11413_v28, %v11413_v28  ;;  %v11498_v57 = vld [vmem:[%s11663_s16] ss:$0 sm:$0xff] }
0x1102   : > { %8067 = vadd.xlane.f32.xlu1 %v8066_v25  ;;  %v7224_v8 = vpop.permute.xlu1 %7223 }
0x1103   : > { %v11436_v59 = vsel %vm7265_vm3, %v7264_v44, %v7224_v8  ;;  %v8063_v5 = vsel %vm608_vm0, %v8043_v12, 0.0 }
0x1104   : > { %8064 = vadd.xlane.f32.xlu0 %v8063_v5  ;;  %v7222_v26 = vpop.permute.xlu0 %7221 }
0x1105   : > { %v11446_v24 = vsel %vm7265_vm3, %v7263_v60, %v7222_v26 }
0x1106   : > { %v7236_v42 = vpop.permute.xlu1 %7235 }
0x1107   : > { %v7276_v45 = vsel %vm7274_vm4, %v7267_v21, %v7236_v42 }
0x1108   : > { %7284 = vst.msk [vmem:[%s11458_s24 + $0x8] sm:$0xff] %vm608_vm0, %v7276_v45  ;;  %v7234_v38 = vpop.permute.xlu0 %7233 }
0x1109   : > { %v7275_v9 = vsel %vm7274_vm4, %v7266_v55, %v7234_v38 }
0x110a   : > { %7283 = vst.msk [vmem:[%s11458_s24] sm:$0xff] %vm608_vm0, %v7275_v9  ;;  %v7240_v41 = vpop.permute.xlu1 %7239 }
0x110b   : > { %v7278_v46 = vsel %vm7274_vm4, %v7269_v23, %v7240_v41 }
0x110c   : > { %7286 = vst.msk [vmem:[%s11458_s24 + $0x18] sm:$0xff] %vm608_vm0, %v7278_v46  ;;  %v7238_v10 = vpop.permute.xlu0 %7237 }
0x110d   : > { %v7277_v3 = vsel %vm7274_vm4, %v7268_v15, %v7238_v10 }
0x110e   : > { %7285 = vst.msk [vmem:[%s11458_s24 + $0x10] sm:$0xff] %vm608_vm0, %v7277_v3 }
0x1113   : > { %7243 = vrot.lane.b32.xlu1 %v11066_v7, %s9834_s30 }
0x1117   : > { %7247 = vrot.lane.b32.xlu1 %v11079_v1, %s9834_s30 }
0x111a   : > { %7241 = vrot.lane.b32.xlu0 %v11048_v58, %s9834_s30 }
0x111e   : > { %7245 = vrot.lane.b32.xlu0 %v11063_v33, %s9834_s30  ;;  %v11492_v33 = vld [vmem:[%s11662_s15] ss:$0 sm:$0xff]  ;;  %s9742_s30 = sshll.u32 %s9835_s29, 4  ;;  %s9743_s30 = int_to_ptr.vmem [resolvable:$false] %s9742_s30 }
0x111f   : > { %s9744_s23 = scalar_lea.vmem %s9743_s30, 2048  ;;  %p9745_p0 = scmp.lt.s32.totalorder %s11534_s21, %s9743_s30 }
0x1120   : > { %p9746_p1 = scmp.lt.s32.totalorder %s9744_s23, %s9738_s20 }
0x1122   : > { %p9747_p2 = por %p9746_p1, %p9745_p0 }
0x1124   : > { %p9748_p3 = pnand %p9747_p2, %p9741_p13 }
0x1178   : > { %v8050_v18 = vpop.xlane.xlu1 %8049 }
0x1179   : > { %v8070_v36 = vmul.f32 0.03125, %v8050_v18 }
0x117a   : > { %v8047_v17 = vpop.xlane.xlu0 %8046 }
0x117b   : > { %v8078_v37 = vadd.f32 1e-05, %v8070_v36  ;;  %v8069_v4 = vmul.f32 0.03125, %v8047_v17 }
0x117d   : > { %9706 = vrsqrt.f32 %v8078_v37  ;;  %v8077_v34 = vadd.f32 1e-05, %v8069_v4 }
0x117f   : > { %9708 = vrsqrt.f32 %v8077_v34 }
0x1183   : > { %v8056_v19 = vpop.xlane.xlu1 %8055 }
0x1184   : > { %v8072_v13 = vmul.f32 0.03125, %v8056_v19 }
0x1185   : > { %v8053_v7 = vpop.xlane.xlu0 %8052 }
0x1186   : > { %v8080_v29 = vadd.f32 1e-05, %v8072_v13  ;;  %v8071_v39 = vmul.f32 0.03125, %v8053_v7 }
0x1187   : > { %v8062_v1 = vpop.xlane.xlu1 %8061 }
0x1188   : > { %9710 = vrsqrt.f32 %v8080_v29  ;;  %v8079_v56 = vadd.f32 1e-05, %v8071_v39  ;;  %v8074_v58 = vmul.f32 0.03125, %v8062_v1 }
0x1189   : > { %v8059_v62 = vpop.xlane.xlu0 %8058 }
0x118a   : > { %v9707_v0 = vpop.eup %9706  ;;  %9712 = vrsqrt.f32 %v8079_v56  ;;  %v8082_v52 = vadd.f32 1e-05, %v8074_v58  ;;  %v8073_v27 = vmul.f32 0.03125, %v8059_v62 }
0x118b   : > { %v8094_v61 = vmul.f32 %v9707_v0, %v11378_v63  ;;  %v8068_v14 = vpop.xlane.xlu1 %8067 }
0x118c   : > { %v9709_v51 = vpop.eup %9708  ;;  %9714 = vrsqrt.f32 %v8082_v52  ;;  %v8081_v25 = vadd.f32 1e-05, %v8073_v27  ;;  %v8076_v12 = vmul.f32 0.03125, %v8068_v14 }
0x118d   : > { %v8108_v16 = vmul.f32 %v11492_v33, %v8094_v61  ;;  %v8093_v44 = vmul.f32 %v9709_v51, %v11380_v32  ;;  %v8065_v8 = vpop.xlane.xlu0 %8064 }
0x118e   : > { %9716 = vrsqrt.f32 %v8081_v25  ;;  %v8084_v63 = vadd.f32 1e-05, %v8076_v12  ;;  %v8075_v5 = vmul.f32 0.03125, %v8065_v8 }
0x118f   : > { %v8122_v2 = vadd.f32 %v11498_v57, %v8108_v16  ;;  %v8107_v60 = vmul.f32 %v11492_v33, %v8093_v44  ;;  %v7244_v26 = vpop.permute.xlu1 %7243 }
0x1190   : > { %9718 = vrsqrt.f32 %v8084_v63  ;;  %v8083_v48 = vadd.f32 1e-05, %v8075_v5  ;;  %v7280_v30 = vsel %vm7274_vm4, %v11416_v31, %v7244_v26 }
0x1191   : > { %8130 = vst.msk [vmem:[%s11508_s22 + $0x8] sm:$0xff] %vm608_vm0, %v8122_v2  ;;  %v8121_v32 = vadd.f32 %v11498_v57, %v8107_v60  ;;  %7288 = vst.msk [vmem:[%s11458_s24 + $0x28] sm:$0xff] %vm608_vm0, %v7280_v30  ;;  %v7242_v21 = vpop.permute.xlu0 %7241 }
0x1192   : > { %9720 = vrsqrt.f32 %v8083_v48  ;;  %v7279_v42 = vsel %vm7274_vm4, %v11427_v22, %v7242_v21 }
0x1193   : > { %8129 = vst.msk [vmem:[%s11508_s22] sm:$0xff] %vm608_vm0, %v8121_v32  ;;  %7287 = vst.msk [vmem:[%s11458_s24 + $0x20] sm:$0xff] %vm608_vm0, %v7279_v42  ;;  %v7248_v31 = vpop.permute.xlu1 %7247 }
0x1194   : > { %v7282_v43 = vsel %vm7274_vm4, %v11436_v59, %v7248_v31 }
0x1195   : > { %v9711_v49 = vpop.eup %9710  ;;  %7290 = vst.msk [vmem:[%s11458_s24 + $0x38] sm:$0xff] %vm608_vm0, %v7282_v43  ;;  %v7246_v45 = vpop.permute.xlu0 %7245 }
0x1196   : > { %v8096_v22 = vmul.f32 %v9711_v49, %v11388_v6  ;;  %v7281_v59 = vsel %vm7274_vm4, %v11446_v24, %v7246_v45 }
0x1197   : > { %v9713_v55 = vpop.eup %9712  ;;  %7289 = vst.msk [vmem:[%s11458_s24 + $0x30] sm:$0xff] %vm608_vm0, %v7281_v59 }
0x1198   : > { %v8110_v38 = vmul.f32 %v11492_v33, %v8096_v22  ;;  %v8095_v50 = vmul.f32 %v9713_v55, %v11390_v53 }
0x1199   : > { %9751 = shalt.err (!%p9748_p3)
}
0x119a   : > { %s9752_s24 = scalar_lea.hbm %s11532_s25, 1024  ;;  %s9756_s29 = scalar_lea.hbm %s11665_s18, 2048 }
0x119b   : > { %p9753_p4 = scmp.ne.s32.totalorder %s11532_s25, %s9752_s24  ;;  %p9757_p9 = scmp.lt.s32.totalorder %s11532_s25, %s11665_s18 }
0x119c   : > { %p9758_p10 = scmp.lt.s32.totalorder %s9756_s29, %s9752_s24 }
0x119d   : > { %p9754_p7 = pnand %p9753_p4, %p9971_p5 }
0x119e   : > { %p9759_p11 = por %p9758_p10, %p9757_p9 }
0x119f   : > { %p9755_p8 = pneg %p9754_p7 }
0x11a1   : > { %p9760_p12 = pnand %p9759_p11, %p9755_p8 }
0x11a3   : > { %9763 = shalt.err (!%p9760_p12)
}
0x11a4   : > { %s11697_s23 = smov 128   ;;  %s11753_s20 = smov 8   ;;  %v9715_v6 = vpop.eup %9714  ;;  %v8124_v53 = vadd.f32 %v11498_v57, %v8110_v38  ;;  %v8109_v24 = vmul.f32 %v11492_v33, %v8095_v50 }
0x11a5   : > { %s11754_s30 = scalar_lea.sflag [#allocation5], %s11422_s1  ;;  %v8098_v54 = vmul.f32 %v9715_v6, %v11394_v40  ;;  %v9717_v9 = vpop.eup %9716  ;;  %s8156_s3 = sshll.u32 %s11508_s22, 4  ;;  %s11602_s3 = int_to_ptr.vmem [resolvable:$true] %s8156_s3 }
0x11a6   : > { %9513 = dma.vmem_to_hbm [thread:$0]  (%p9971_p5), %s11534_s21, 1024, %s11532_s25, %s11754_s30, %s11697_s23, %s11697_s23, %s11753_s20   ;;  %v8123_v23 = vadd.f32 %v11498_v57, %v8109_v24  ;;  %v8097_v20 = vmul.f32 %v9717_v9, %v11399_v11  ;;  %v9719_v35 = vpop.eup %9718 }
0x11a7   : > { %8132 = vst.msk [vmem:[%s11508_s22 + $0x18] sm:$0xff] %vm608_vm0, %v8124_v53  ;;  %v8112_v41 = vmul.f32 %v11492_v33, %v8098_v54  ;;  %v8100_v15 = vmul.f32 %v9719_v35, %v11405_v47  ;;  %v9721_v10 = vpop.eup %9720  ;;  %s11755_s4 = sshll.u32 %s9954_s0, 10  ;;  %s11756_s25 = sld [smem:[#allocation36_spill]] }
0x11a8   : > { %8131 = vst.msk [vmem:[%s11508_s22 + $0x10] sm:$0xff] %vm608_vm0, %v8123_v23  ;;  %v8111_v40 = vmul.f32 %v11492_v33, %v8097_v20  ;;  %v8099_v18 = vmul.f32 %v9721_v10, %v11413_v28  ;;  %s8138_s24 = scalar_lea.sflag [#allocation3], %s11422_s1  ;;  %s9764_s29 = scalar_lea.vmem %s11602_s3, 1024 }
0x11a9   : > { %v8126_v46 = vadd.f32 %v11498_v57, %v8112_v41  ;;  %v8114_v11 = vmul.f32 %v11492_v33, %v8100_v15  ;;  %p9765_p13 = scmp.ne.s32.totalorder %s11602_s3, %s9764_s29  ;;  %s9837_s30 = smov [#allocation2]  }
0x11aa   : > { %v8125_v3 = vadd.f32 %v11498_v57, %v8111_v40  ;;  %v8113_v17 = vmul.f32 %v11492_v33, %v8099_v18  ;;  %s9768_s0 = sshll.u32 %s9837_s30, 4  ;;  %s9769_s0 = int_to_ptr.vmem [resolvable:$false] %s9768_s0 }
0x11ab   : > { %8134 = vst.msk [vmem:[%s11508_s22 + $0x28] sm:$0xff] %vm608_vm0, %v8126_v46  ;;  %v8128_v36 = vadd.f32 %v11498_v57, %v8114_v11  ;;  %p9766_p0 = pnand %p9765_p13, %p9971_p5  ;;  %s9770_s23 = scalar_lea.vmem %s9769_s0, 2048 }
0x11ac   : > { %8133 = vst.msk [vmem:[%s11508_s22 + $0x20] sm:$0xff] %vm608_vm0, %v8125_v3  ;;  %v8127_v47 = vadd.f32 %v11498_v57, %v8113_v17  ;;  %p9771_p2 = scmp.lt.s32.totalorder %s11602_s3, %s9769_s0  ;;  %p9772_p3 = scmp.lt.s32.totalorder %s9770_s23, %s9764_s29 }
0x11ad   : > { %8136 = vst.msk [vmem:[%s11508_s22 + $0x38] sm:$0xff] %vm608_vm0, %v8128_v36  ;;  %s11600_s19 = scalar_lea.hbm %s11756_s25, %s11755_s4  ;;  %p9767_p1 = pneg %p9766_p0 }
0x11ae   : > { %8135 = vst.msk [vmem:[%s11508_s22 + $0x30] sm:$0xff] %vm608_vm0, %v8127_v47  ;;  %p9773_p4 = por %p9772_p3, %p9771_p2 }
0x11b0   : > { %p9774_p7 = pnand %p9773_p4, %p9767_p1 }
0x11b2   : > { %9777 = shalt.err (!%p9774_p7)
}
0x11b3   : > { %s9778_s22 = scalar_lea.hbm %s11600_s19, 1024  ;;  %s9782_s27 = scalar_lea.hbm %s11756_s25, 2048 }
0x11b4   : > { %p9779_p8 = scmp.ne.s32.totalorder %s11600_s19, %s9778_s22  ;;  %p9783_p11 = scmp.lt.s32.totalorder %s11600_s19, %s11756_s25 }
0x11b5   : > { %p9784_p12 = scmp.lt.s32.totalorder %s9782_s27, %s9778_s22 }
0x11b6   : > { %p9780_p9 = pnand %p9779_p8, %p9971_p5 }
0x11b7   : > { %p9785_p13 = por %p9784_p12, %p9783_p11 }
0x11b8   : > { %p9781_p10 = pneg %p9780_p9 }
0x11ba   : > { %p9786_p0 = pnand %p9785_p13, %p9781_p10 }
0x11bc   : > { %9789 = shalt.err (!%p9786_p0)
}
0x11bd   : > { %s11757_s23 = smov 128  }
0x11be   : > { %9512 = dma.vmem_to_hbm [thread:$0]  (%p9971_p5), %s11602_s3, 1024, %s11600_s19, %s8138_s24, %s11757_s23, %s11757_s23, %s11753_s20  }
0x11bf PF: > { %s11758_s29 = sld [smem:[#allocation10_spill]] }
0x11c0   : > { %s11759_s0 = sld [smem:[#allocation8_spill]] }
0x11c5   : > { %p9523_p1 = scmp.ge.s32.totalorder %s11758_s29, 2 }
0x11c6   : > { %s8187_s4 = sand.u32 1, %s11759_s0  }
0x11c7   : > { %p9517_p2 = pnand %p9523_p1, %p9975_p6  ;;  %s8188_s22 = scalar_lea.sflag [#allocation3], %s8187_s4 }
0x11c9   : > { %p9518_p3 = pneg %p9517_p2 }
0x11cb   : > { %9807 = dma.done.wait (%p9518_p3), %s8188_s22, 1024  }
0x11cc   : > { %9809 = vsyncadd (%p9518_p3), %s8188_s22, 4294966272  ;;  %s8197_s27 = scalar_lea.sflag [#allocation5], %s8187_s4 }
0x11cd   : > { %9811 = dma.done.wait (%p9518_p3), %s8197_s27, 1024  }
0x11ce   : > { %9813 = vsyncadd (%p9518_p3), %s8197_s27, 4294966272  ;;  %s11761_s30 = sld [smem:[#allocation11_spill]]  ;;  %s11764_s27 = smov %s9820_s28 }
0x11cf   : > { %s11762_s2 = sld [smem:[#allocation9_spill]] }
0x11d0   : > { %s11763_s29 = sld [smem:[#allocation12_spill]] }
0x11d4   : > { %p32_p5 = scmp.ge.s32.totalorder %s11761_s30, 4  }
0x11d5   : > { %s11765_s28 = smov %s11762_s2 }
0x11d6   :  { %34 = sbr.rel (!%p32_p5) target bundleno = 12 (0xc), region = 158 }
0x11db   :  { %8202 = vsyncpa [#allocation3], 1 }
0x11dc   :  { %8204 = vsyncpa [#allocation3 + $0x1], 1 }
0x11dd   :  { %8205 = vsyncpa [#allocation5], 1 }
0x11de   :  { %8207 = vsyncpa [#allocation5 + $0x1], 1 }

</bundles_post_ra>
